<compile_context>
chip_gen: v7x
topology: tpu7x:2x2x1
jax: 0.10.0
libtpu: 0.0.40
codegen_flags: <defaults>
</compile_context>

<pallas_src>
import math

import jax
import jax.numpy as jnp
from jax.experimental import pallas as pl
from jax.experimental.pallas import tpu as pltpu

VMEM_LIMIT = 32 * 1024 * 1024
BN_EPS = 1e-5


def _round_up(x, m):
    return (x + m - 1) // m * m


def _row_tile(m, tm=512):
    tm_eff = min(tm, _round_up(m, 8))
    mp = _round_up(m, tm_eff)
    return tm_eff, mp


# -----------------------------------------------------------------------------
# Pallas kernels
# -----------------------------------------------------------------------------

def _conv_mm_stats_kernel(a_ref, w_ref, o_ref, sum_ref, sq_ref):
    """Row-tiled bf16 conv matmul (no bias: BN cancels it) + BN stats accumulation."""
    @pl.when(pl.program_id(0) == 0)
    def _():
        sum_ref[...] = jnp.zeros_like(sum_ref)
        sq_ref[...] = jnp.zeros_like(sq_ref)

    acc = jnp.dot(a_ref[...], w_ref[...], preferred_element_type=jnp.float32)
    o_ref[...] = acc.astype(o_ref.dtype)
    sum_ref[...] += jnp.sum(acc, axis=0, keepdims=True)
    sq_ref[...] += jnp.sum(acc * acc, axis=0, keepdims=True)


def conv_mm_stats(patches, w, tm=512):
    """patches (M, K) bf16, w (K, C) bf16 -> y (Mp, C) bf16, sum/sumsq (1, C) f32."""
    m, k = patches.shape
    c = w.shape[1]
    tm_eff, mp = _row_tile(m, tm)
    if mp != m:
        patches = jnp.pad(patches, ((0, mp - m), (0, 0)))
    y, s, sq = pl.pallas_call(
        _conv_mm_stats_kernel,
        out_shape=(jax.ShapeDtypeStruct((mp, c), jnp.bfloat16),
                   jax.ShapeDtypeStruct((1, c), jnp.float32),
                   jax.ShapeDtypeStruct((1, c), jnp.float32)),
        grid=(mp // tm_eff,),
        in_specs=[pl.BlockSpec((tm_eff, k), lambda i: (i, 0)),
                  pl.BlockSpec((k, c), lambda i: (0, 0))],
        out_specs=(pl.BlockSpec((tm_eff, c), lambda i: (i, 0)),
                   pl.BlockSpec((1, c), lambda i: (0, 0)),
                   pl.BlockSpec((1, c), lambda i: (0, 0))),
        compiler_params=pltpu.CompilerParams(
            dimension_semantics=("arbitrary",),   # stats accumulate across row tiles
            vmem_limit_bytes=VMEM_LIMIT),
    )(patches, w)
    return y, s, sq, tm_eff


def _bn_relu_kernel(y_ref, sc_ref, sh_ref, o_ref):
    y = y_ref[...].astype(jnp.float32)
    o_ref[...] = jnp.maximum(y * sc_ref[...] + sh_ref[...], 0.0).astype(o_ref.dtype)


def bn_relu_apply(y, scale, shift, tm_eff):
    mp, c = y.shape
    return pl.pallas_call(
        _bn_relu_kernel,
        out_shape=jax.ShapeDtypeStruct((mp, c), jnp.bfloat16),
        grid=(mp // tm_eff,),
        in_specs=[pl.BlockSpec((tm_eff, c), lambda i: (i, 0)),
                  pl.BlockSpec((1, c), lambda i: (0, 0)),
                  pl.BlockSpec((1, c), lambda i: (0, 0))],
        out_specs=pl.BlockSpec((tm_eff, c), lambda i: (i, 0)),
        compiler_params=pltpu.CompilerParams(
            dimension_semantics=("parallel",),
            vmem_limit_bytes=VMEM_LIMIT),
    )(y, scale, shift)


def _mm_bias_kernel(a_ref, w_ref, b_ref, o_ref):
    o_ref[...] = (jnp.dot(a_ref[...], w_ref[...], preferred_element_type=jnp.float32)
                  + b_ref[...]).astype(o_ref.dtype)


def matmul_bias(a, w, b, out_dtype=jnp.float32, tm=512):
    """Row-tiled a (M, K) bf16 @ w (K, N) bf16 + b (1, N) f32 -> (M, N) out_dtype."""
    m, k = a.shape
    n_out = w.shape[1]
    tm_eff, mp = _row_tile(m, tm)
    if mp != m:
        a = jnp.pad(a, ((0, mp - m), (0, 0)))
    y = pl.pallas_call(
        _mm_bias_kernel,
        out_shape=jax.ShapeDtypeStruct((mp, n_out), out_dtype),
        grid=(mp // tm_eff,),
        in_specs=[pl.BlockSpec((tm_eff, k), lambda i: (i, 0)),
                  pl.BlockSpec((k, n_out), lambda i: (0, 0)),
                  pl.BlockSpec((1, n_out), lambda i: (0, 0))],
        out_specs=pl.BlockSpec((tm_eff, n_out), lambda i: (i, 0)),
        compiler_params=pltpu.CompilerParams(
            dimension_semantics=("parallel",),
            vmem_limit_bytes=VMEM_LIMIT),
    )(a, w, b)
    return y[:m] if mp != m else y


def _gru_kernel(xg_ref, h0_ref, whh0_ref, bhh0_ref, wih1_ref, bih1_ref,
                whh1_ref, bhh1_ref, hout_ref):
    """2-layer GRU recurrence. Layer-0 input gates (xg) are precomputed outside.

    Gate order (PyTorch): r, z, n — packed along the last (lane) axis, 3H padded
    to 128 lanes.
    """
    T = xg_ref.shape[0]
    H = h0_ref.shape[2]

    whh0 = whh0_ref[...]
    bhh0 = bhh0_ref[...]
    wih1 = wih1_ref[...]
    bih1 = bih1_ref[...]
    whh1 = whh1_ref[...]
    bhh1 = bhh1_ref[...]

    def cell(xg, h, whh, bhh):
        hg = jnp.dot(h.astype(jnp.bfloat16), whh,
                     preferred_element_type=jnp.float32) + bhh
        r = jax.nn.sigmoid(xg[:, 0:H] + hg[:, 0:H])
        z = jax.nn.sigmoid(xg[:, H:2 * H] + hg[:, H:2 * H])
        n = jnp.tanh(xg[:, 2 * H:3 * H] + r * hg[:, 2 * H:3 * H])
        return (1.0 - z) * n + z * h

    def body(t, carry):
        h0, h1 = carry
        xg0 = xg_ref[t]                                   # (N, 128) f32, bih0 folded in
        h0n = cell(xg0, h0, whh0, bhh0)
        xg1 = jnp.dot(h0n.astype(jnp.bfloat16), wih1,
                      preferred_element_type=jnp.float32) + bih1
        h1n = cell(xg1, h1, whh1, bhh1)
        return (h0n, h1n)

    unroll = True if T <= 16 else 4
    hf0, hf1 = jax.lax.fori_loop(0, T, body, (h0_ref[0], h0_ref[1]),
                                 unroll=unroll)
    hout_ref[0] = hf0
    hout_ref[1] = hf1


def gru_recurrence(xg, h0, p):
    """xg: (T, N, 128) f32 precomputed layer-0 gates; h0: (2, N, 40) -> (2, N, 40)."""
    T, N, G = xg.shape
    H = h0.shape[-1]
    return pl.pallas_call(
        _gru_kernel,
        out_shape=jax.ShapeDtypeStruct((2, N, H), jnp.float32),
        grid=(1,),
        in_specs=[
            pl.BlockSpec((T, N, G), lambda i: (0, 0, 0)),
            pl.BlockSpec((2, N, H), lambda i: (0, 0, 0)),
            pl.BlockSpec((H, G), lambda i: (0, 0)),
            pl.BlockSpec((1, G), lambda i: (0, 0)),
            pl.BlockSpec((H, G), lambda i: (0, 0)),
            pl.BlockSpec((1, G), lambda i: (0, 0)),
            pl.BlockSpec((H, G), lambda i: (0, 0)),
            pl.BlockSpec((1, G), lambda i: (0, 0)),
        ],
        out_specs=pl.BlockSpec((2, N, H), lambda i: (0, 0, 0)),
        compiler_params=pltpu.CompilerParams(
            dimension_semantics=("arbitrary",),
            vmem_limit_bytes=VMEM_LIMIT),
    )(xg, h0, p["whh0"], p["bhh0"], p["wih1"], p["bih1"], p["whh1"], p["bhh1"])


def _nce_kernel(enc_ref, c_ref, wk_ref, wkb_ref, nce_ref, cor_ref):
    """All Wk predictions in one (H, T*D) matmul; unrolled per-timestep scores."""
    T, B, D = enc_ref.shape
    pred_all = jnp.dot(c_ref[...], wk_ref[...],
                       preferred_element_type=jnp.float32) + wkb_ref[...]   # (B, T*D)
    row = jax.lax.broadcasted_iota(jnp.int32, (B, B), 0)
    col = jax.lax.broadcasted_iota(jnp.int32, (B, B), 1)
    nce_sum = jnp.zeros((1, 1), jnp.float32)
    for i in range(T):                                    # static, unrolled
        pred_i = pred_all[:, i * D:(i + 1) * D].astype(jnp.bfloat16)
        # total = encode_samples[i] @ pred_i.T -> (B, B)
        total = jax.lax.dot_general(enc_ref[i], pred_i, (((1,), (1,)), ((), ())),
                                    preferred_element_type=jnp.float32)
        # log_softmax over dim=1
        m = jnp.max(total, axis=1, keepdims=True)
        sh = total - m
        lse = jnp.log(jnp.sum(jnp.exp(sh), axis=1, keepdims=True))
        logsm = sh - lse
        nce_sum = nce_sum + jnp.sum(jnp.where(row == col, logsm, 0.0),
                                    axis=(0, 1), keepdims=True)
        if i == T - 1:
            # softmax over dim=1, argmax over dim=0 (last timestep only, as in ref)
            sm = jnp.exp(logsm)
            colmax = jnp.max(sm, axis=0, keepdims=True)
            is_max = sm >= colmax
            argmax0 = jnp.min(jnp.where(is_max, row, B), axis=0, keepdims=True)
            target = jax.lax.broadcasted_iota(jnp.int32, (1, B), 1)
            cor_ref[...] = jnp.sum((argmax0 == target).astype(jnp.int32),
                                   axis=(0, 1), keepdims=True)
    nce_ref[...] = nce_sum


def nce_pallas(encode, c_t, wk_w, wk_b):
    T, B, D = encode.shape
    H = c_t.shape[1]
    return pl.pallas_call(
        _nce_kernel,
        out_shape=(jax.ShapeDtypeStruct((1, 1), jnp.float32),
                   jax.ShapeDtypeStruct((1, 1), jnp.int32)),
        grid=(1,),
        in_specs=[
            pl.BlockSpec((T, B, D), lambda i: (0, 0, 0)),
            pl.BlockSpec((B, H), lambda i: (0, 0)),
            pl.BlockSpec((H, T * D), lambda i: (0, 0)),
            pl.BlockSpec((1, T * D), lambda i: (0, 0)),
        ],
        out_specs=(pl.BlockSpec((1, 1), lambda i: (0, 0)),
                   pl.BlockSpec((1, 1), lambda i: (0, 0))),
        compiler_params=pltpu.CompilerParams(
            dimension_semantics=("arbitrary",),
            vmem_limit_bytes=VMEM_LIMIT),
    )(encode, c_t, wk_w, wk_b)


# -----------------------------------------------------------------------------
# Plain-JAX glue (channels-last im2col, BN stats finalize, parameter setup)
# -----------------------------------------------------------------------------

def im2col_cl(x, k, s, p):
    """x: (N, L, C) channels-last -> patches (N*L_out, k*C), L_out."""
    n, l, c = x.shape
    xp = jnp.pad(x, ((0, 0), (p, p), (0, 0)))
    l_out = (l + 2 * p - k) // s + 1
    idx = jnp.arange(l_out)[:, None] * s + jnp.arange(k)[None, :]     # (L_out, k)
    patches = xp[:, idx, :]                                           # (N, L_out, k, C)
    return patches.reshape(n * l_out, k * c), l_out


def conv_bn_relu_cl(x, wmat, gamma, beta, k, s, pad, c_true):
    """Conv1d (channels-last, via im2col+tiled Pallas matmul) + BN(batch stats)+ReLU."""
    n, l, _ = x.shape
    patches, l_out = im2col_cl(x, k, s, pad)                 # (M, k*C_in) bf16
    m_true = n * l_out
    y, s_sum, s_sq, tm_eff = conv_mm_stats(patches, wmat)    # (Mp, Cpad) bf16, (1, Cpad)
    mean = s_sum[0] / float(m_true)
    var = jnp.maximum(s_sq[0] / float(m_true) - mean * mean, 0.0)
    scale = gamma * jax.lax.rsqrt(var + BN_EPS)
    shift = beta - mean * scale
    out = bn_relu_apply(y, scale[None, :], shift[None, :], tm_eff)    # (Mp, Cpad) bf16
    out = out[:m_true].reshape(n, l_out, -1)
    if out.shape[-1] != c_true:
        out = out[:, :, :c_true]                              # strip lane padding (conv1)
    return out                                                # (N, L_out, C) bf16


def init_params(key, timestep):
    H, D, G = 40, 256, 128
    ks = jax.random.split(key, 32)
    kit = iter(ks)

    def kaiming(k, shape, fan_out):
        return jax.random.normal(k, shape, jnp.float32) * math.sqrt(2.0 / fan_out)

    def unif(k, shape, bound):
        return jax.random.uniform(k, shape, jnp.float32, -bound, bound)

    p = {}
    # Encoder convs: (C_in, C_out, k, C_out padded to lane-dense width)
    conv_cfg = [(1, 64, 8, 128), (64, 128, 8, 128), (128, 256, 4, 256)]
    for li, (ci, co, kk, cp) in enumerate(conv_cfg, start=1):
        w = kaiming(next(kit), (kk * ci, co), co * kk)        # matmul layout (k*C_in, C_out)
        if cp != co:
            w = jnp.pad(w, ((0, 0), (0, cp - co)))
        p[f"w{li}"] = w.astype(jnp.bfloat16)
        p[f"g{li}"] = jnp.ones((cp,), jnp.float32)            # BN gamma = 1
        p[f"be{li}"] = jnp.zeros((cp,), jnp.float32)          # BN beta  = 0
        # conv bias omitted on purpose: train-mode BN cancels it exactly.
    # Projection 256 -> 256 (stored pre-transposed: (in, out))
    p["wp"] = kaiming(next(kit), (D, D), D).astype(jnp.bfloat16)
    p["bp"] = unif(next(kit), (1, D), 1.0 / math.sqrt(D))
    # GRU(256 -> 40, 2 layers); gates r,z,n packed on the lane axis, 3H=120 -> 128
    def gate_w(k1, in_dim):
        w = kaiming(k1, (in_dim, 3 * H), 3 * H)
        return jnp.pad(w, ((0, 0), (0, G - 3 * H))).astype(jnp.bfloat16)

    def gate_b(k1):
        b = unif(k1, (1, 3 * H), 1.0 / math.sqrt(H))
        return jnp.pad(b, ((0, 0), (0, G - 3 * H)))

    p["wih0"] = gate_w(next(kit), D)
    p["whh0"] = gate_w(next(kit), H)
    p["wih1"] = gate_w(next(kit), H)
    p["whh1"] = gate_w(next(kit), H)
    p["bih0"] = gate_b(next(kit))
    p["bhh0"] = gate_b(next(kit))
    p["bih1"] = gate_b(next(kit))
    p["bhh1"] = gate_b(next(kit))
    # Wk: `timestep` Linear(40 -> 256), concatenated along the output: (H, T*D)
    p["wk_w"] = kaiming(next(kit), (H, timestep * D), D).astype(jnp.bfloat16)
    p["wk_b"] = unif(next(kit), (1, timestep * D), 1.0 / math.sqrt(H))
    return p


def cdck5_forward(x, hidden0, p, timestep, t_samples):
    """x: (N, 1, L) audio, hidden0: (2, N, 40). Returns (accuracy, nce, hidden)."""
    N = x.shape[0]
    H = hidden0.shape[-1]

    # ---- encoder (channels-last, total stride 32) + 256-d projection ----
    xc = jnp.transpose(x, (0, 2, 1)).astype(jnp.bfloat16)            # (N, L, 1)
    h = conv_bn_relu_cl(xc, p["w1"], p["g1"], p["be1"], 8, 4, 2, 64)
    h = conv_bn_relu_cl(h, p["w2"], p["g2"], p["be2"], 8, 4, 2, 128)
    h = conv_bn_relu_cl(h, p["w3"], p["g3"], p["be3"], 4, 2, 1, 256)  # (N, L3, 256) bf16
    _, L, D = h.shape
    z = matmul_bias(h.reshape(N * L, D), p["wp"], p["bp"],
                    out_dtype=jnp.float32).reshape(N, L, D)           # (N, L, 256) f32

    # ---- positive samples and context sequence ----
    encode_samples = jnp.transpose(
        z[:, t_samples + 1:t_samples + 1 + timestep, :], (1, 0, 2))   # (T, N, 256)
    forward_seq = z[:, :t_samples + 1, :]                             # (N, t+1, 256)

    # ---- 2-layer GRU: hoist layer-0 input projection out of the recurrence ----
    Tctx = t_samples + 1
    seq2d = jnp.transpose(forward_seq, (1, 0, 2)).reshape(Tctx * N, D)
    xg = matmul_bias(seq2d.astype(jnp.bfloat16), p["wih0"], p["bih0"],
                     out_dtype=jnp.float32).reshape(Tctx, N, -1)      # (T, N, 128)
    hidden = gru_recurrence(xg, hidden0, p)                           # (2, N, 40)
    c_t = hidden[1]                                                   # (N, 40)

    # ---- InfoNCE head (all Wk preds in one matmul + scores + accuracy) ----
    nce_sum, correct = nce_pallas(encode_samples.astype(jnp.bfloat16),
                                  c_t.astype(jnp.bfloat16),
                                  p["wk_w"], p["wk_b"])
    nce = nce_sum[0, 0] / (-1.0 * N * timestep)
    accuracy = correct[0, 0].astype(jnp.float32) / N
    return accuracy, nce, hidden


# -----------------------------------------------------------------------------
# Demo
# -----------------------------------------------------------------------------

if __name__ == "__main__":
    batch, seq_len, timestep = 2, 512, 4
    key = jax.random.PRNGKey(0)
    kx, kt, kp = jax.random.split(key, 3)

    x = jax.random.normal(kx, (batch, 1, seq_len), jnp.float32)
    hidden0 = jnp.zeros((2, batch, 40), jnp.float32)                  # init_hidden
    params = init_params(kp, timestep)

    n_frames = seq_len // 32
    t_samples = int(jax.random.randint(kt, (), 0, n_frames - timestep))

    forward_jit = jax.jit(cdck5_forward, static_argnums=(3, 4))
    accuracy, nce, hidden = forward_jit(x, hidden0, params, timestep, t_samples)
    jax.block_until_ready((accuracy, nce, hidden))
    assert hidden.shape == (2, batch, 40)
    assert bool(jnp.isfinite(nce)) and bool(jnp.isfinite(accuracy))
    print("KERNEL_OK")
</pallas_src>

<mosaic_0001>
module attributes {stable_mosaic.version = 11 : i64} {
  func.func @_conv_mm_stats_kernel(%arg0: i32, %arg1: memref<256x8xbf16, #tpu.memory_space<vmem>>, %arg2: memref<8x128xbf16, #tpu.memory_space<vmem>>, %arg3: memref<256x128xbf16, #tpu.memory_space<vmem>>, %arg4: memref<1x128xf32, #tpu.memory_space<vmem>>, %arg5: memref<1x128xf32, #tpu.memory_space<vmem>>) attributes {dimension_semantics = [#tpu.dimension_semantics<arbitrary>], iteration_bounds = array<i64: 1>, scalar_prefetch = 0 : i64, scratch_operands = 0 : i64, tpu.core_type = #tpu.core_type<tc>, window_params = [{transform_indices = @transform_0, window_bounds = array<i64: 256, 8>}, {pipeline_mode = #tpu.pipeline_mode<synchronous>, transform_indices = @transform_1, window_bounds = array<i64: 8, 128>}, {transform_indices = @transform_2, window_bounds = array<i64: 256, 128>}, {pipeline_mode = #tpu.pipeline_mode<synchronous>, transform_indices = @transform_3, window_bounds = array<i64: 1, 128>}, {pipeline_mode = #tpu.pipeline_mode<synchronous>, transform_indices = @transform_4, window_bounds = array<i64: 1, 128>}]} {
    %c0_i32 = arith.constant 0 : i32
    %0 = arith.cmpi eq, %arg0, %c0_i32 : i32
    %1 = arith.extui %0 : i1 to i32
    %c0_i32_0 = arith.constant 0 : i32
    %2 = arith.cmpi ne, %1, %c0_i32_0 : i32
    scf.if %2 {
      %cst_16 = arith.constant 0.000000e+00 : f32
      %19 = vector.broadcast %cst_16 : f32 to vector<1x128xf32>
      %c0_17 = arith.constant 0 : index
      %c0_18 = arith.constant 0 : index
      %20 = vector.load %arg4[%c0_17, %c0_18] : memref<1x128xf32, #tpu.memory_space<vmem>>, vector<1x128xf32>
      tpu.vector_store %arg4[%c0_17, %c0_18], %19 {strides = array<i32>} : memref<1x128xf32, #tpu.memory_space<vmem>>, vector<1x128xf32>,
      %cst_19 = arith.constant 0.000000e+00 : f32
      %21 = vector.broadcast %cst_19 : f32 to vector<1x128xf32>
      %c0_20 = arith.constant 0 : index
      %c0_21 = arith.constant 0 : index
      %22 = vector.load %arg5[%c0_20, %c0_21] : memref<1x128xf32, #tpu.memory_space<vmem>>, vector<1x128xf32>
      tpu.vector_store %arg5[%c0_20, %c0_21], %21 {strides = array<i32>} : memref<1x128xf32, #tpu.memory_space<vmem>>, vector<1x128xf32>,
    } else {
    }
    %c0 = arith.constant 0 : index
    %c0_1 = arith.constant 0 : index
    %3 = vector.load %arg1[%c0, %c0_1] : memref<256x8xbf16, #tpu.memory_space<vmem>>, vector<256x8xbf16>
    %c0_2 = arith.constant 0 : index
    %c0_3 = arith.constant 0 : index
    %4 = vector.load %arg2[%c0_2, %c0_3] : memref<8x128xbf16, #tpu.memory_space<vmem>>, vector<8x128xbf16>
    %cst = arith.constant dense<0.000000e+00> : vector<256x128xf32>
    %5 = tpu.matmul %3, %4, %cst {dimension_numbers = #tpu.dot_dimension_numbers<[1], [0], [0], [1], [0, 0, 1, 1], [], []>} : vector<256x8xbf16>, vector<8x128xbf16>, vector<256x128xf32> -> vector<256x128xf32>
    %6 = arith.truncf %5 : vector<256x128xf32> to vector<256x128xbf16>
    %c0_4 = arith.constant 0 : index
    %c0_5 = arith.constant 0 : index
    %7 = vector.load %arg3[%c0_4, %c0_5] : memref<256x128xbf16, #tpu.memory_space<vmem>>, vector<256x128xbf16>
    tpu.vector_store %arg3[%c0_4, %c0_5], %6 {strides = array<i32>} : memref<256x128xbf16, #tpu.memory_space<vmem>>, vector<256x128xbf16>,
    %c0_6 = arith.constant 0 : index
    %c0_7 = arith.constant 0 : index
    %8 = vector.load %arg4[%c0_6, %c0_7] : memref<1x128xf32, #tpu.memory_space<vmem>>, vector<1x128xf32>
    %cst_8 = arith.constant dense<0.000000e+00> : vector<128xf32>
    %9 = vector.multi_reduction <add>, %5, %cst_8 [0] : vector<256x128xf32> to vector<128xf32>
    %10 = vector.shape_cast %9 : vector<128xf32> to vector<1x128xf32>
    %11 = arith.addf %8, %10 : vector<1x128xf32>
    %c0_9 = arith.constant 0 : index
    %c0_10 = arith.constant 0 : index
    %12 = vector.load %arg4[%c0_9, %c0_10] : memref<1x128xf32, #tpu.memory_space<vmem>>, vector<1x128xf32>
    tpu.vector_store %arg4[%c0_9, %c0_10], %11 {strides = array<i32>} : memref<1x128xf32, #tpu.memory_space<vmem>>, vector<1x128xf32>,
    %c0_11 = arith.constant 0 : index
    %c0_12 = arith.constant 0 : index
    %13 = vector.load %arg5[%c0_11, %c0_12] : memref<1x128xf32, #tpu.memory_space<vmem>>, vector<1x128xf32>
    %14 = arith.mulf %5, %5 : vector<256x128xf32>
    %cst_13 = arith.constant dense<0.000000e+00> : vector<128xf32>
    %15 = vector.multi_reduction <add>, %14, %cst_13 [0] : vector<256x128xf32> to vector<128xf32>
    %16 = vector.shape_cast %15 : vector<128xf32> to vector<1x128xf32>
    %17 = arith.addf %13, %16 : vector<1x128xf32>
    %c0_14 = arith.constant 0 : index
    %c0_15 = arith.constant 0 : index
    %18 = vector.load %arg5[%c0_14, %c0_15] : memref<1x128xf32, #tpu.memory_space<vmem>>, vector<1x128xf32>
    tpu.vector_store %arg5[%c0_14, %c0_15], %17 {strides = array<i32>} : memref<1x128xf32, #tpu.memory_space<vmem>>, vector<1x128xf32>,
    return
  }
  func.func @transform_0(%arg0: i32) -> (i32, i32) {
    %c0_i32 = arith.constant 0 : i32
    %c0_i32_0 = arith.constant 0 : i32
    return %arg0, %c0_i32 : i32, i32
  }
  func.func @transform_1(%arg0: i32) -> (i32, i32) {
    %c0_i32 = arith.constant 0 : i32
    %c0_i32_0 = arith.constant 0 : i32
    %c0_i32_1 = arith.constant 0 : i32
    return %c0_i32, %c0_i32_0 : i32, i32
  }
  func.func @transform_2(%arg0: i32) -> (i32, i32) {
    %c0_i32 = arith.constant 0 : i32
    %c0_i32_0 = arith.constant 0 : i32
    return %arg0, %c0_i32 : i32, i32
  }
  func.func @transform_3(%arg0: i32) -> (i32, i32) {
    %c0_i32 = arith.constant 0 : i32
    %c0_i32_0 = arith.constant 0 : i32
    %c0_i32_1 = arith.constant 0 : i32
    return %c0_i32, %c0_i32_0 : i32, i32
  }
  func.func @transform_4(%arg0: i32) -> (i32, i32) {
    %c0_i32 = arith.constant 0 : i32
    %c0_i32_0 = arith.constant 0 : i32
    %c0_i32_1 = arith.constant 0 : i32
    return %c0_i32, %c0_i32_0 : i32, i32
  }
}

module attributes {stable_mosaic.version = 11 : i64} {
  func.func @_bn_relu_kernel(%arg0: i32, %arg1: memref<256x128xbf16, #tpu.memory_space<vmem>>, %arg2: memref<1x128xf32, #tpu.memory_space<vmem>>, %arg3: memref<1x128xf32, #tpu.memory_space<vmem>>, %arg4: memref<256x128xbf16, #tpu.memory_space<vmem>>) attributes {dimension_semantics = [#tpu.dimension_semantics<parallel>], iteration_bounds = array<i64: 1>, scalar_prefetch = 0 : i64, scratch_operands = 0 : i64, tpu.core_type = #tpu.core_type<tc>, window_params = [{transform_indices = @transform_0, window_bounds = array<i64: 256, 128>}, {pipeline_mode = #tpu.pipeline_mode<synchronous>, transform_indices = @transform_1, window_bounds = array<i64: 1, 128>}, {pipeline_mode = #tpu.pipeline_mode<synchronous>, transform_indices = @transform_2, window_bounds = array<i64: 1, 128>}, {transform_indices = @transform_3, window_bounds = array<i64: 256, 128>}]} {
    %c0 = arith.constant 0 : index
    %c0_0 = arith.constant 0 : index
    %0 = vector.load %arg1[%c0, %c0_0] : memref<256x128xbf16, #tpu.memory_space<vmem>>, vector<256x128xbf16>
    %1 = arith.extf %0 : vector<256x128xbf16> to vector<256x128xf32>
    %c0_1 = arith.constant 0 : index
    %c0_2 = arith.constant 0 : index
    %2 = vector.load %arg2[%c0_1, %c0_2] : memref<1x128xf32, #tpu.memory_space<vmem>>, vector<1x128xf32>
    %3 = vector.broadcast %2 : vector<1x128xf32> to vector<256x128xf32>
    %4 = arith.mulf %1, %3 : vector<256x128xf32>
    %c0_3 = arith.constant 0 : index
    %c0_4 = arith.constant 0 : index
    %5 = vector.load %arg3[%c0_3, %c0_4] : memref<1x128xf32, #tpu.memory_space<vmem>>, vector<1x128xf32>
    %6 = vector.broadcast %5 : vector<1x128xf32> to vector<256x128xf32>
    %7 = arith.addf %4, %6 : vector<256x128xf32>
    %cst = arith.constant 0.000000e+00 : f32
    %8 = vector.broadcast %cst : f32 to vector<256x128xf32>
    %9 = arith.maximumf %7, %8 : vector<256x128xf32>
    %10 = arith.truncf %9 : vector<256x128xf32> to vector<256x128xbf16>
    %c0_5 = arith.constant 0 : index
    %c0_6 = arith.constant 0 : index
    %11 = vector.load %arg4[%c0_5, %c0_6] : memref<256x128xbf16, #tpu.memory_space<vmem>>, vector<256x128xbf16>
    tpu.vector_store %arg4[%c0_5, %c0_6], %10 {strides = array<i32>} : memref<256x128xbf16, #tpu.memory_space<vmem>>, vector<256x128xbf16>,
    return
  }
  func.func @transform_0(%arg0: i32) -> (i32, i32) {
    %c0_i32 = arith.constant 0 : i32
    %c0_i32_0 = arith.constant 0 : i32
    return %arg0, %c0_i32 : i32, i32
  }
  func.func @transform_1(%arg0: i32) -> (i32, i32) {
    %c0_i32 = arith.constant 0 : i32
    %c0_i32_0 = arith.constant 0 : i32
    %c0_i32_1 = arith.constant 0 : i32
    return %c0_i32, %c0_i32_0 : i32, i32
  }
  func.func @transform_2(%arg0: i32) -> (i32, i32) {
    %c0_i32 = arith.constant 0 : i32
    %c0_i32_0 = arith.constant 0 : i32
    %c0_i32_1 = arith.constant 0 : i32
    return %c0_i32, %c0_i32_0 : i32, i32
  }
  func.func @transform_3(%arg0: i32) -> (i32, i32) {
    %c0_i32 = arith.constant 0 : i32
    %c0_i32_0 = arith.constant 0 : i32
    return %arg0, %c0_i32 : i32, i32
  }
}

module attributes {stable_mosaic.version = 11 : i64} {
  func.func @_conv_mm_stats_kernel(%arg0: i32, %arg1: memref<64x512xbf16, #tpu.memory_space<vmem>>, %arg2: memref<512x128xbf16, #tpu.memory_space<vmem>>, %arg3: memref<64x128xbf16, #tpu.memory_space<vmem>>, %arg4: memref<1x128xf32, #tpu.memory_space<vmem>>, %arg5: memref<1x128xf32, #tpu.memory_space<vmem>>) attributes {dimension_semantics = [#tpu.dimension_semantics<arbitrary>], iteration_bounds = array<i64: 1>, scalar_prefetch = 0 : i64, scratch_operands = 0 : i64, tpu.core_type = #tpu.core_type<tc>, window_params = [{transform_indices = @transform_0, window_bounds = array<i64: 64, 512>}, {pipeline_mode = #tpu.pipeline_mode<synchronous>, transform_indices = @transform_1, window_bounds = array<i64: 512, 128>}, {transform_indices = @transform_2, window_bounds = array<i64: 64, 128>}, {pipeline_mode = #tpu.pipeline_mode<synchronous>, transform_indices = @transform_3, window_bounds = array<i64: 1, 128>}, {pipeline_mode = #tpu.pipeline_mode<synchronous>, transform_indices = @transform_4, window_bounds = array<i64: 1, 128>}]} {
    %c0_i32 = arith.constant 0 : i32
    %0 = arith.cmpi eq, %arg0, %c0_i32 : i32
    %1 = arith.extui %0 : i1 to i32
    %c0_i32_0 = arith.constant 0 : i32
    %2 = arith.cmpi ne, %1, %c0_i32_0 : i32
    scf.if %2 {
      %cst_16 = arith.constant 0.000000e+00 : f32
      %19 = vector.broadcast %cst_16 : f32 to vector<1x128xf32>
      %c0_17 = arith.constant 0 : index
      %c0_18 = arith.constant 0 : index
      %20 = vector.load %arg4[%c0_17, %c0_18] : memref<1x128xf32, #tpu.memory_space<vmem>>, vector<1x128xf32>
      tpu.vector_store %arg4[%c0_17, %c0_18], %19 {strides = array<i32>} : memref<1x128xf32, #tpu.memory_space<vmem>>, vector<1x128xf32>,
      %cst_19 = arith.constant 0.000000e+00 : f32
      %21 = vector.broadcast %cst_19 : f32 to vector<1x128xf32>
      %c0_20 = arith.constant 0 : index
      %c0_21 = arith.constant 0 : index
      %22 = vector.load %arg5[%c0_20, %c0_21] : memref<1x128xf32, #tpu.memory_space<vmem>>, vector<1x128xf32>
      tpu.vector_store %arg5[%c0_20, %c0_21], %21 {strides = array<i32>} : memref<1x128xf32, #tpu.memory_space<vmem>>, vector<1x128xf32>,
    } else {
    }
    %c0 = arith.constant 0 : index
    %c0_1 = arith.constant 0 : index
    %3 = vector.load %arg1[%c0, %c0_1] : memref<64x512xbf16, #tpu.memory_space<vmem>>, vector<64x512xbf16>
    %c0_2 = arith.constant 0 : index
    %c0_3 = arith.constant 0 : index
    %4 = vector.load %arg2[%c0_2, %c0_3] : memref<512x128xbf16, #tpu.memory_space<vmem>>, vector<512x128xbf16>
    %cst = arith.constant dense<0.000000e+00> : vector<64x128xf32>
    %5 = tpu.matmul %3, %4, %cst {dimension_numbers = #tpu.dot_dimension_numbers<[1], [0], [0], [1], [0, 0, 1, 1], [], []>} : vector<64x512xbf16>, vector<512x128xbf16>, vector<64x128xf32> -> vector<64x128xf32>
    %6 = arith.truncf %5 : vector<64x128xf32> to vector<64x128xbf16>
    %c0_4 = arith.constant 0 : index
    %c0_5 = arith.constant 0 : index
    %7 = vector.load %arg3[%c0_4, %c0_5] : memref<64x128xbf16, #tpu.memory_space<vmem>>, vector<64x128xbf16>
    tpu.vector_store %arg3[%c0_4, %c0_5], %6 {strides = array<i32>} : memref<64x128xbf16, #tpu.memory_space<vmem>>, vector<64x128xbf16>,
    %c0_6 = arith.constant 0 : index
    %c0_7 = arith.constant 0 : index
    %8 = vector.load %arg4[%c0_6, %c0_7] : memref<1x128xf32, #tpu.memory_space<vmem>>, vector<1x128xf32>
    %cst_8 = arith.constant dense<0.000000e+00> : vector<128xf32>
    %9 = vector.multi_reduction <add>, %5, %cst_8 [0] : vector<64x128xf32> to vector<128xf32>
    %10 = vector.shape_cast %9 : vector<128xf32> to vector<1x128xf32>
    %11 = arith.addf %8, %10 : vector<1x128xf32>
    %c0_9 = arith.constant 0 : index
    %c0_10 = arith.constant 0 : index
    %12 = vector.load %arg4[%c0_9, %c0_10] : memref<1x128xf32, #tpu.memory_space<vmem>>, vector<1x128xf32>
    tpu.vector_store %arg4[%c0_9, %c0_10], %11 {strides = array<i32>} : memref<1x128xf32, #tpu.memory_space<vmem>>, vector<1x128xf32>,
    %c0_11 = arith.constant 0 : index
    %c0_12 = arith.constant 0 : index
    %13 = vector.load %arg5[%c0_11, %c0_12] : memref<1x128xf32, #tpu.memory_space<vmem>>, vector<1x128xf32>
    %14 = arith.mulf %5, %5 : vector<64x128xf32>
    %cst_13 = arith.constant dense<0.000000e+00> : vector<128xf32>
    %15 = vector.multi_reduction <add>, %14, %cst_13 [0] : vector<64x128xf32> to vector<128xf32>
    %16 = vector.shape_cast %15 : vector<128xf32> to vector<1x128xf32>
    %17 = arith.addf %13, %16 : vector<1x128xf32>
    %c0_14 = arith.constant 0 : index
    %c0_15 = arith.constant 0 : index
    %18 = vector.load %arg5[%c0_14, %c0_15] : memref<1x128xf32, #tpu.memory_space<vmem>>, vector<1x128xf32>
    tpu.vector_store %arg5[%c0_14, %c0_15], %17 {strides = array<i32>} : memref<1x128xf32, #tpu.memory_space<vmem>>, vector<1x128xf32>,
    return
  }
  func.func @transform_0(%arg0: i32) -> (i32, i32) {
    %c0_i32 = arith.constant 0 : i32
    %c0_i32_0 = arith.constant 0 : i32
    return %arg0, %c0_i32 : i32, i32
  }
  func.func @transform_1(%arg0: i32) -> (i32, i32) {
    %c0_i32 = arith.constant 0 : i32
    %c0_i32_0 = arith.constant 0 : i32
    %c0_i32_1 = arith.constant 0 : i32
    return %c0_i32, %c0_i32_0 : i32, i32
  }
  func.func @transform_2(%arg0: i32) -> (i32, i32) {
    %c0_i32 = arith.constant 0 : i32
    %c0_i32_0 = arith.constant 0 : i32
    return %arg0, %c0_i32 : i32, i32
  }
  func.func @transform_3(%arg0: i32) -> (i32, i32) {
    %c0_i32 = arith.constant 0 : i32
    %c0_i32_0 = arith.constant 0 : i32
    %c0_i32_1 = arith.constant 0 : i32
    return %c0_i32, %c0_i32_0 : i32, i32
  }
  func.func @transform_4(%arg0: i32) -> (i32, i32) {
    %c0_i32 = arith.constant 0 : i32
    %c0_i32_0 = arith.constant 0 : i32
    %c0_i32_1 = arith.constant 0 : i32
    return %c0_i32, %c0_i32_0 : i32, i32
  }
}

module attributes {stable_mosaic.version = 11 : i64} {
  func.func @_bn_relu_kernel(%arg0: i32, %arg1: memref<64x128xbf16, #tpu.memory_space<vmem>>, %arg2: memref<1x128xf32, #tpu.memory_space<vmem>>, %arg3: memref<1x128xf32, #tpu.memory_space<vmem>>, %arg4: memref<64x128xbf16, #tpu.memory_space<vmem>>) attributes {dimension_semantics = [#tpu.dimension_semantics<parallel>], iteration_bounds = array<i64: 1>, scalar_prefetch = 0 : i64, scratch_operands = 0 : i64, tpu.core_type = #tpu.core_type<tc>, window_params = [{transform_indices = @transform_0, window_bounds = array<i64: 64, 128>}, {pipeline_mode = #tpu.pipeline_mode<synchronous>, transform_indices = @transform_1, window_bounds = array<i64: 1, 128>}, {pipeline_mode = #tpu.pipeline_mode<synchronous>, transform_indices = @transform_2, window_bounds = array<i64: 1, 128>}, {transform_indices = @transform_3, window_bounds = array<i64: 64, 128>}]} {
    %c0 = arith.constant 0 : index
    %c0_0 = arith.constant 0 : index
    %0 = vector.load %arg1[%c0, %c0_0] : memref<64x128xbf16, #tpu.memory_space<vmem>>, vector<64x128xbf16>
    %1 = arith.extf %0 : vector<64x128xbf16> to vector<64x128xf32>
    %c0_1 = arith.constant 0 : index
    %c0_2 = arith.constant 0 : index
    %2 = vector.load %arg2[%c0_1, %c0_2] : memref<1x128xf32, #tpu.memory_space<vmem>>, vector<1x128xf32>
    %3 = vector.broadcast %2 : vector<1x128xf32> to vector<64x128xf32>
    %4 = arith.mulf %1, %3 : vector<64x128xf32>
    %c0_3 = arith.constant 0 : index
    %c0_4 = arith.constant 0 : index
    %5 = vector.load %arg3[%c0_3, %c0_4] : memref<1x128xf32, #tpu.memory_space<vmem>>, vector<1x128xf32>
    %6 = vector.broadcast %5 : vector<1x128xf32> to vector<64x128xf32>
    %7 = arith.addf %4, %6 : vector<64x128xf32>
    %cst = arith.constant 0.000000e+00 : f32
    %8 = vector.broadcast %cst : f32 to vector<64x128xf32>
    %9 = arith.maximumf %7, %8 : vector<64x128xf32>
    %10 = arith.truncf %9 : vector<64x128xf32> to vector<64x128xbf16>
    %c0_5 = arith.constant 0 : index
    %c0_6 = arith.constant 0 : index
    %11 = vector.load %arg4[%c0_5, %c0_6] : memref<64x128xbf16, #tpu.memory_space<vmem>>, vector<64x128xbf16>
    tpu.vector_store %arg4[%c0_5, %c0_6], %10 {strides = array<i32>} : memref<64x128xbf16, #tpu.memory_space<vmem>>, vector<64x128xbf16>,
    return
  }
  func.func @transform_0(%arg0: i32) -> (i32, i32) {
    %c0_i32 = arith.constant 0 : i32
    %c0_i32_0 = arith.constant 0 : i32
    return %arg0, %c0_i32 : i32, i32
  }
  func.func @transform_1(%arg0: i32) -> (i32, i32) {
    %c0_i32 = arith.constant 0 : i32
    %c0_i32_0 = arith.constant 0 : i32
    %c0_i32_1 = arith.constant 0 : i32
    return %c0_i32, %c0_i32_0 : i32, i32
  }
  func.func @transform_2(%arg0: i32) -> (i32, i32) {
    %c0_i32 = arith.constant 0 : i32
    %c0_i32_0 = arith.constant 0 : i32
    %c0_i32_1 = arith.constant 0 : i32
    return %c0_i32, %c0_i32_0 : i32, i32
  }
  func.func @transform_3(%arg0: i32) -> (i32, i32) {
    %c0_i32 = arith.constant 0 : i32
    %c0_i32_0 = arith.constant 0 : i32
    return %arg0, %c0_i32 : i32, i32
  }
}

module attributes {stable_mosaic.version = 11 : i64} {
  func.func @_bn_relu_kernel(%arg0: i32, %arg1: memref<32x256xbf16, #tpu.memory_space<vmem>>, %arg2: memref<1x256xf32, #tpu.memory_space<vmem>>, %arg3: memref<1x256xf32, #tpu.memory_space<vmem>>, %arg4: memref<32x256xbf16, #tpu.memory_space<vmem>>) attributes {dimension_semantics = [#tpu.dimension_semantics<parallel>], iteration_bounds = array<i64: 1>, scalar_prefetch = 0 : i64, scratch_operands = 0 : i64, tpu.core_type = #tpu.core_type<tc>, window_params = [{transform_indices = @transform_0, window_bounds = array<i64: 32, 256>}, {pipeline_mode = #tpu.pipeline_mode<synchronous>, transform_indices = @transform_1, window_bounds = array<i64: 1, 256>}, {pipeline_mode = #tpu.pipeline_mode<synchronous>, transform_indices = @transform_2, window_bounds = array<i64: 1, 256>}, {transform_indices = @transform_3, window_bounds = array<i64: 32, 256>}]} {
    %c0 = arith.constant 0 : index
    %c0_0 = arith.constant 0 : index
    %0 = vector.load %arg1[%c0, %c0_0] : memref<32x256xbf16, #tpu.memory_space<vmem>>, vector<32x256xbf16>
    %1 = arith.extf %0 : vector<32x256xbf16> to vector<32x256xf32>
    %c0_1 = arith.constant 0 : index
    %c0_2 = arith.constant 0 : index
    %2 = vector.load %arg2[%c0_1, %c0_2] : memref<1x256xf32, #tpu.memory_space<vmem>>, vector<1x256xf32>
    %3 = vector.broadcast %2 : vector<1x256xf32> to vector<32x256xf32>
    %4 = arith.mulf %1, %3 : vector<32x256xf32>
    %c0_3 = arith.constant 0 : index
    %c0_4 = arith.constant 0 : index
    %5 = vector.load %arg3[%c0_3, %c0_4] : memref<1x256xf32, #tpu.memory_space<vmem>>, vector<1x256xf32>
    %6 = vector.broadcast %5 : vector<1x256xf32> to vector<32x256xf32>
    %7 = arith.addf %4, %6 : vector<32x256xf32>
    %cst = arith.constant 0.000000e+00 : f32
    %8 = vector.broadcast %cst : f32 to vector<32x256xf32>
    %9 = arith.maximumf %7, %8 : vector<32x256xf32>
    %10 = arith.truncf %9 : vector<32x256xf32> to vector<32x256xbf16>
    %c0_5 = arith.constant 0 : index
    %c0_6 = arith.constant 0 : index
    %11 = vector.load %arg4[%c0_5, %c0_6] : memref<32x256xbf16, #tpu.memory_space<vmem>>, vector<32x256xbf16>
    tpu.vector_store %arg4[%c0_5, %c0_6], %10 {strides = array<i32>} : memref<32x256xbf16, #tpu.memory_space<vmem>>, vector<32x256xbf16>,
    return
  }
  func.func @transform_0(%arg0: i32) -> (i32, i32) {
    %c0_i32 = arith.constant 0 : i32
    %c0_i32_0 = arith.constant 0 : i32
    return %arg0, %c0_i32 : i32, i32
  }
  func.func @transform_1(%arg0: i32) -> (i32, i32) {
    %c0_i32 = arith.constant 0 : i32
    %c0_i32_0 = arith.constant 0 : i32
    %c0_i32_1 = arith.constant 0 : i32
    return %c0_i32, %c0_i32_0 : i32, i32
  }
  func.func @transform_2(%arg0: i32) -> (i32, i32) {
    %c0_i32 = arith.constant 0 : i32
    %c0_i32_0 = arith.constant 0 : i32
    %c0_i32_1 = arith.constant 0 : i32
    return %c0_i32, %c0_i32_0 : i32, i32
  }
  func.func @transform_3(%arg0: i32) -> (i32, i32) {
    %c0_i32 = arith.constant 0 : i32
    %c0_i32_0 = arith.constant 0 : i32
    return %arg0, %c0_i32 : i32, i32
  }
}

module attributes {stable_mosaic.version = 11 : i64} {
  func.func @_conv_mm_stats_kernel(%arg0: i32, %arg1: memref<32x512xbf16, #tpu.memory_space<vmem>>, %arg2: memref<512x256xbf16, #tpu.memory_space<vmem>>, %arg3: memref<32x256xbf16, #tpu.memory_space<vmem>>, %arg4: memref<1x256xf32, #tpu.memory_space<vmem>>, %arg5: memref<1x256xf32, #tpu.memory_space<vmem>>) attributes {dimension_semantics = [#tpu.dimension_semantics<arbitrary>], iteration_bounds = array<i64: 1>, scalar_prefetch = 0 : i64, scratch_operands = 0 : i64, tpu.core_type = #tpu.core_type<tc>, window_params = [{transform_indices = @transform_0, window_bounds = array<i64: 32, 512>}, {pipeline_mode = #tpu.pipeline_mode<synchronous>, transform_indices = @transform_1, window_bounds = array<i64: 512, 256>}, {transform_indices = @transform_2, window_bounds = array<i64: 32, 256>}, {pipeline_mode = #tpu.pipeline_mode<synchronous>, transform_indices = @transform_3, window_bounds = array<i64: 1, 256>}, {pipeline_mode = #tpu.pipeline_mode<synchronous>, transform_indices = @transform_4, window_bounds = array<i64: 1, 256>}]} {
    %c0_i32 = arith.constant 0 : i32
    %0 = arith.cmpi eq, %arg0, %c0_i32 : i32
    %1 = arith.extui %0 : i1 to i32
    %c0_i32_0 = arith.constant 0 : i32
    %2 = arith.cmpi ne, %1, %c0_i32_0 : i32
    scf.if %2 {
      %cst_16 = arith.constant 0.000000e+00 : f32
      %19 = vector.broadcast %cst_16 : f32 to vector<1x256xf32>
      %c0_17 = arith.constant 0 : index
      %c0_18 = arith.constant 0 : index
      %20 = vector.load %arg4[%c0_17, %c0_18] : memref<1x256xf32, #tpu.memory_space<vmem>>, vector<1x256xf32>
      tpu.vector_store %arg4[%c0_17, %c0_18], %19 {strides = array<i32>} : memref<1x256xf32, #tpu.memory_space<vmem>>, vector<1x256xf32>,
      %cst_19 = arith.constant 0.000000e+00 : f32
      %21 = vector.broadcast %cst_19 : f32 to vector<1x256xf32>
      %c0_20 = arith.constant 0 : index
      %c0_21 = arith.constant 0 : index
      %22 = vector.load %arg5[%c0_20, %c0_21] : memref<1x256xf32, #tpu.memory_space<vmem>>, vector<1x256xf32>
      tpu.vector_store %arg5[%c0_20, %c0_21], %21 {strides = array<i32>} : memref<1x256xf32, #tpu.memory_space<vmem>>, vector<1x256xf32>,
    } else {
    }
    %c0 = arith.constant 0 : index
    %c0_1 = arith.constant 0 : index
    %3 = vector.load %arg1[%c0, %c0_1] : memref<32x512xbf16, #tpu.memory_space<vmem>>, vector<32x512xbf16>
    %c0_2 = arith.constant 0 : index
    %c0_3 = arith.constant 0 : index
    %4 = vector.load %arg2[%c0_2, %c0_3] : memref<512x256xbf16, #tpu.memory_space<vmem>>, vector<512x256xbf16>
    %cst = arith.constant dense<0.000000e+00> : vector<32x256xf32>
    %5 = tpu.matmul %3, %4, %cst {dimension_numbers = #tpu.dot_dimension_numbers<[1], [0], [0], [1], [0, 0, 1, 1], [], []>} : vector<32x512xbf16>, vector<512x256xbf16>, vector<32x256xf32> -> vector<32x256xf32>
    %6 = arith.truncf %5 : vector<32x256xf32> to vector<32x256xbf16>
    %c0_4 = arith.constant 0 : index
    %c0_5 = arith.constant 0 : index
    %7 = vector.load %arg3[%c0_4, %c0_5] : memref<32x256xbf16, #tpu.memory_space<vmem>>, vector<32x256xbf16>
    tpu.vector_store %arg3[%c0_4, %c0_5], %6 {strides = array<i32>} : memref<32x256xbf16, #tpu.memory_space<vmem>>, vector<32x256xbf16>,
    %c0_6 = arith.constant 0 : index
    %c0_7 = arith.constant 0 : index
    %8 = vector.load %arg4[%c0_6, %c0_7] : memref<1x256xf32, #tpu.memory_space<vmem>>, vector<1x256xf32>
    %cst_8 = arith.constant dense<0.000000e+00> : vector<256xf32>
    %9 = vector.multi_reduction <add>, %5, %cst_8 [0] : vector<32x256xf32> to vector<256xf32>
    %10 = vector.shape_cast %9 : vector<256xf32> to vector<1x256xf32>
    %11 = arith.addf %8, %10 : vector<1x256xf32>
    %c0_9 = arith.constant 0 : index
    %c0_10 = arith.constant 0 : index
    %12 = vector.load %arg4[%c0_9, %c0_10] : memref<1x256xf32, #tpu.memory_space<vmem>>, vector<1x256xf32>
    tpu.vector_store %arg4[%c0_9, %c0_10], %11 {strides = array<i32>} : memref<1x256xf32, #tpu.memory_space<vmem>>, vector<1x256xf32>,
    %c0_11 = arith.constant 0 : index
    %c0_12 = arith.constant 0 : index
    %13 = vector.load %arg5[%c0_11, %c0_12] : memref<1x256xf32, #tpu.memory_space<vmem>>, vector<1x256xf32>
    %14 = arith.mulf %5, %5 : vector<32x256xf32>
    %cst_13 = arith.constant dense<0.000000e+00> : vector<256xf32>
    %15 = vector.multi_reduction <add>, %14, %cst_13 [0] : vector<32x256xf32> to vector<256xf32>
    %16 = vector.shape_cast %15 : vector<256xf32> to vector<1x256xf32>
    %17 = arith.addf %13, %16 : vector<1x256xf32>
    %c0_14 = arith.constant 0 : index
    %c0_15 = arith.constant 0 : index
    %18 = vector.load %arg5[%c0_14, %c0_15] : memref<1x256xf32, #tpu.memory_space<vmem>>, vector<1x256xf32>
    tpu.vector_store %arg5[%c0_14, %c0_15], %17 {strides = array<i32>} : memref<1x256xf32, #tpu.memory_space<vmem>>, vector<1x256xf32>,
    return
  }
  func.func @transform_0(%arg0: i32) -> (i32, i32) {
    %c0_i32 = arith.constant 0 : i32
    %c0_i32_0 = arith.constant 0 : i32
    return %arg0, %c0_i32 : i32, i32
  }
  func.func @transform_1(%arg0: i32) -> (i32, i32) {
    %c0_i32 = arith.constant 0 : i32
    %c0_i32_0 = arith.constant 0 : i32
    %c0_i32_1 = arith.constant 0 : i32
    return %c0_i32, %c0_i32_0 : i32, i32
  }
  func.func @transform_2(%arg0: i32) -> (i32, i32) {
    %c0_i32 = arith.constant 0 : i32
    %c0_i32_0 = arith.constant 0 : i32
    return %arg0, %c0_i32 : i32, i32
  }
  func.func @transform_3(%arg0: i32) -> (i32, i32) {
    %c0_i32 = arith.constant 0 : i32
    %c0_i32_0 = arith.constant 0 : i32
    %c0_i32_1 = arith.constant 0 : i32
    return %c0_i32, %c0_i32_0 : i32, i32
  }
  func.func @transform_4(%arg0: i32) -> (i32, i32) {
    %c0_i32 = arith.constant 0 : i32
    %c0_i32_0 = arith.constant 0 : i32
    %c0_i32_1 = arith.constant 0 : i32
    return %c0_i32, %c0_i32_0 : i32, i32
  }
}

module attributes {stable_mosaic.version = 11 : i64} {
  func.func @_mm_bias_kernel(%arg0: i32, %arg1: memref<32x256xbf16, #tpu.memory_space<vmem>>, %arg2: memref<256x256xbf16, #tpu.memory_space<vmem>>, %arg3: memref<1x256xf32, #tpu.memory_space<vmem>>, %arg4: memref<32x256xf32, #tpu.memory_space<vmem>>) attributes {dimension_semantics = [#tpu.dimension_semantics<parallel>], iteration_bounds = array<i64: 1>, scalar_prefetch = 0 : i64, scratch_operands = 0 : i64, tpu.core_type = #tpu.core_type<tc>, window_params = [{transform_indices = @transform_0, window_bounds = array<i64: 32, 256>}, {pipeline_mode = #tpu.pipeline_mode<synchronous>, transform_indices = @transform_1, window_bounds = array<i64: 256, 256>}, {pipeline_mode = #tpu.pipeline_mode<synchronous>, transform_indices = @transform_2, window_bounds = array<i64: 1, 256>}, {transform_indices = @transform_3, window_bounds = array<i64: 32, 256>}]} {
    %c0 = arith.constant 0 : index
    %c0_0 = arith.constant 0 : index
    %0 = vector.load %arg1[%c0, %c0_0] : memref<32x256xbf16, #tpu.memory_space<vmem>>, vector<32x256xbf16>
    %c0_1 = arith.constant 0 : index
    %c0_2 = arith.constant 0 : index
    %1 = vector.load %arg2[%c0_1, %c0_2] : memref<256x256xbf16, #tpu.memory_space<vmem>>, vector<256x256xbf16>
    %cst = arith.constant dense<0.000000e+00> : vector<32x256xf32>
    %2 = tpu.matmul %0, %1, %cst {dimension_numbers = #tpu.dot_dimension_numbers<[1], [0], [0], [1], [0, 0, 1, 1], [], []>} : vector<32x256xbf16>, vector<256x256xbf16>, vector<32x256xf32> -> vector<32x256xf32>
    %c0_3 = arith.constant 0 : index
    %c0_4 = arith.constant 0 : index
    %3 = vector.load %arg3[%c0_3, %c0_4] : memref<1x256xf32, #tpu.memory_space<vmem>>, vector<1x256xf32>
    %4 = vector.broadcast %3 : vector<1x256xf32> to vector<32x256xf32>
    %5 = arith.addf %2, %4 : vector<32x256xf32>
    %c0_5 = arith.constant 0 : index
    %c0_6 = arith.constant 0 : index
    %6 = vector.load %arg4[%c0_5, %c0_6] : memref<32x256xf32, #tpu.memory_space<vmem>>, vector<32x256xf32>
    tpu.vector_store %arg4[%c0_5, %c0_6], %5 {strides = array<i32>} : memref<32x256xf32, #tpu.memory_space<vmem>>, vector<32x256xf32>,
    return
  }
  func.func @transform_0(%arg0: i32) -> (i32, i32) {
    %c0_i32 = arith.constant 0 : i32
    %c0_i32_0 = arith.constant 0 : i32
    return %arg0, %c0_i32 : i32, i32
  }
  func.func @transform_1(%arg0: i32) -> (i32, i32) {
    %c0_i32 = arith.constant 0 : i32
    %c0_i32_0 = arith.constant 0 : i32
    %c0_i32_1 = arith.constant 0 : i32
    return %c0_i32, %c0_i32_0 : i32, i32
  }
  func.func @transform_2(%arg0: i32) -> (i32, i32) {
    %c0_i32 = arith.constant 0 : i32
    %c0_i32_0 = arith.constant 0 : i32
    %c0_i32_1 = arith.constant 0 : i32
    return %c0_i32, %c0_i32_0 : i32, i32
  }
  func.func @transform_3(%arg0: i32) -> (i32, i32) {
    %c0_i32 = arith.constant 0 : i32
    %c0_i32_0 = arith.constant 0 : i32
    return %arg0, %c0_i32 : i32, i32
  }
}

module attributes {stable_mosaic.version = 11 : i64} {
  func.func @_mm_bias_kernel(%arg0: i32, %arg1: memref<8x256xbf16, #tpu.memory_space<vmem>>, %arg2: memref<256x128xbf16, #tpu.memory_space<vmem>>, %arg3: memref<1x128xf32, #tpu.memory_space<vmem>>, %arg4: memref<8x128xf32, #tpu.memory_space<vmem>>) attributes {dimension_semantics = [#tpu.dimension_semantics<parallel>], iteration_bounds = array<i64: 1>, scalar_prefetch = 0 : i64, scratch_operands = 0 : i64, tpu.core_type = #tpu.core_type<tc>, window_params = [{transform_indices = @transform_0, window_bounds = array<i64: 8, 256>}, {pipeline_mode = #tpu.pipeline_mode<synchronous>, transform_indices = @transform_1, window_bounds = array<i64: 256, 128>}, {pipeline_mode = #tpu.pipeline_mode<synchronous>, transform_indices = @transform_2, window_bounds = array<i64: 1, 128>}, {transform_indices = @transform_3, window_bounds = array<i64: 8, 128>}]} {
    %c0 = arith.constant 0 : index
    %c0_0 = arith.constant 0 : index
    %0 = vector.load %arg1[%c0, %c0_0] : memref<8x256xbf16, #tpu.memory_space<vmem>>, vector<8x256xbf16>
    %c0_1 = arith.constant 0 : index
    %c0_2 = arith.constant 0 : index
    %1 = vector.load %arg2[%c0_1, %c0_2] : memref<256x128xbf16, #tpu.memory_space<vmem>>, vector<256x128xbf16>
    %cst = arith.constant dense<0.000000e+00> : vector<8x128xf32>
    %2 = tpu.matmul %0, %1, %cst {dimension_numbers = #tpu.dot_dimension_numbers<[1], [0], [0], [1], [0, 0, 1, 1], [], []>} : vector<8x256xbf16>, vector<256x128xbf16>, vector<8x128xf32> -> vector<8x128xf32>
    %c0_3 = arith.constant 0 : index
    %c0_4 = arith.constant 0 : index
    %3 = vector.load %arg3[%c0_3, %c0_4] : memref<1x128xf32, #tpu.memory_space<vmem>>, vector<1x128xf32>
    %4 = vector.broadcast %3 : vector<1x128xf32> to vector<8x128xf32>
    %5 = arith.addf %2, %4 : vector<8x128xf32>
    %c0_5 = arith.constant 0 : index
    %c0_6 = arith.constant 0 : index
    %6 = vector.load %arg4[%c0_5, %c0_6] : memref<8x128xf32, #tpu.memory_space<vmem>>, vector<8x128xf32>
    tpu.vector_store %arg4[%c0_5, %c0_6], %5 {strides = array<i32>} : memref<8x128xf32, #tpu.memory_space<vmem>>, vector<8x128xf32>,
    return
  }
  func.func @transform_0(%arg0: i32) -> (i32, i32) {
    %c0_i32 = arith.constant 0 : i32
    %c0_i32_0 = arith.constant 0 : i32
    return %arg0, %c0_i32 : i32, i32
  }
  func.func @transform_1(%arg0: i32) -> (i32, i32) {
    %c0_i32 = arith.constant 0 : i32
    %c0_i32_0 = arith.constant 0 : i32
    %c0_i32_1 = arith.constant 0 : i32
    return %c0_i32, %c0_i32_0 : i32, i32
  }
  func.func @transform_2(%arg0: i32) -> (i32, i32) {
    %c0_i32 = arith.constant 0 : i32
    %c0_i32_0 = arith.constant 0 : i32
    %c0_i32_1 = arith.constant 0 : i32
    return %c0_i32, %c0_i32_0 : i32, i32
  }
  func.func @transform_3(%arg0: i32) -> (i32, i32) {
    %c0_i32 = arith.constant 0 : i32
    %c0_i32_0 = arith.constant 0 : i32
    return %arg0, %c0_i32 : i32, i32
  }
}

module attributes {stable_mosaic.version = 11 : i64} {
  func.func @_gru_kernel(%arg0: i32, %arg1: memref<3x2x128xf32, #tpu.memory_space<vmem>>, %arg2: memref<2x2x40xf32, #tpu.memory_space<vmem>>, %arg3: memref<40x128xbf16, #tpu.memory_space<vmem>>, %arg4: memref<1x128xf32, #tpu.memory_space<vmem>>, %arg5: memref<40x128xbf16, #tpu.memory_space<vmem>>, %arg6: memref<1x128xf32, #tpu.memory_space<vmem>>, %arg7: memref<40x128xbf16, #tpu.memory_space<vmem>>, %arg8: memref<1x128xf32, #tpu.memory_space<vmem>>, %arg9: memref<2x2x40xf32, #tpu.memory_space<vmem>>) attributes {dimension_semantics = [#tpu.dimension_semantics<arbitrary>], iteration_bounds = array<i64: 1>, scalar_prefetch = 0 : i64, scratch_operands = 0 : i64, tpu.core_type = #tpu.core_type<tc>, window_params = [{pipeline_mode = #tpu.pipeline_mode<synchronous>, transform_indices = @transform_0, window_bounds = array<i64: 3, 2, 128>}, {pipeline_mode = #tpu.pipeline_mode<synchronous>, transform_indices = @transform_1, window_bounds = array<i64: 2, 2, 40>}, {pipeline_mode = #tpu.pipeline_mode<synchronous>, transform_indices = @transform_2, window_bounds = array<i64: 40, 128>}, {pipeline_mode = #tpu.pipeline_mode<synchronous>, transform_indices = @transform_3, window_bounds = array<i64: 1, 128>}, {pipeline_mode = #tpu.pipeline_mode<synchronous>, transform_indices = @transform_4, window_bounds = array<i64: 40, 128>}, {pipeline_mode = #tpu.pipeline_mode<synchronous>, transform_indices = @transform_5, window_bounds = array<i64: 1, 128>}, {pipeline_mode = #tpu.pipeline_mode<synchronous>, transform_indices = @transform_6, window_bounds = array<i64: 40, 128>}, {pipeline_mode = #tpu.pipeline_mode<synchronous>, transform_indices = @transform_7, window_bounds = array<i64: 1, 128>}, {pipeline_mode = #tpu.pipeline_mode<synchronous>, transform_indices = @transform_8, window_bounds = array<i64: 2, 2, 40>}]} {
    %c0 = arith.constant 0 : index
    %c0_0 = arith.constant 0 : index
    %0 = vector.load %arg3[%c0, %c0_0] : memref<40x128xbf16, #tpu.memory_space<vmem>>, vector<40x128xbf16>
    %c0_1 = arith.constant 0 : index
    %c0_2 = arith.constant 0 : index
    %1 = vector.load %arg4[%c0_1, %c0_2] : memref<1x128xf32, #tpu.memory_space<vmem>>, vector<1x128xf32>
    %c0_3 = arith.constant 0 : index
    %c0_4 = arith.constant 0 : index
    %2 = vector.load %arg5[%c0_3, %c0_4] : memref<40x128xbf16, #tpu.memory_space<vmem>>, vector<40x128xbf16>
    %c0_5 = arith.constant 0 : index
    %c0_6 = arith.constant 0 : index
    %3 = vector.load %arg6[%c0_5, %c0_6] : memref<1x128xf32, #tpu.memory_space<vmem>>, vector<1x128xf32>
    %c0_7 = arith.constant 0 : index
    %c0_8 = arith.constant 0 : index
    %4 = vector.load %arg7[%c0_7, %c0_8] : memref<40x128xbf16, #tpu.memory_space<vmem>>, vector<40x128xbf16>
    %c0_9 = arith.constant 0 : index
    %c0_10 = arith.constant 0 : index
    %5 = vector.load %arg8[%c0_9, %c0_10] : memref<1x128xf32, #tpu.memory_space<vmem>>, vector<1x128xf32>
    %c0_11 = arith.constant 0 : index
    %c0_12 = arith.constant 0 : index
    %c0_13 = arith.constant 0 : index
    %6 = vector.load %arg2[%c0_11, %c0_12, %c0_13] : memref<2x2x40xf32, #tpu.memory_space<vmem>>, vector<1x2x40xf32>
    %7 = vector.shape_cast %6 : vector<1x2x40xf32> to vector<2x40xf32>
    %c1 = arith.constant 1 : index
    %c0_14 = arith.constant 0 : index
    %c0_15 = arith.constant 0 : index
    %8 = vector.load %arg2[%c1, %c0_14, %c0_15] : memref<2x2x40xf32, #tpu.memory_space<vmem>>, vector<1x2x40xf32>
    %9 = vector.shape_cast %8 : vector<1x2x40xf32> to vector<2x40xf32>
    %c0_i32 = arith.constant 0 : i32
    %10 = arith.index_cast %c0_i32 : i32 to index
    %c0_16 = arith.constant 0 : index
    %c0_17 = arith.constant 0 : index
    %11 = vector.load %arg1[%10, %c0_16, %c0_17] : memref<3x2x128xf32, #tpu.memory_space<vmem>>, vector<1x2x128xf32>
    %12 = vector.shape_cast %11 : vector<1x2x128xf32> to vector<2x128xf32>
    %13 = arith.truncf %7 : vector<2x40xf32> to vector<2x40xbf16>
    %cst = arith.constant dense<0.000000e+00> : vector<2x128xf32>
    %14 = tpu.matmul %13, %0, %cst {dimension_numbers = #tpu.dot_dimension_numbers<[1], [0], [0], [1], [0, 0, 1, 1], [], []>} : vector<2x40xbf16>, vector<40x128xbf16>, vector<2x128xf32> -> vector<2x128xf32>
    %15 = vector.broadcast %1 : vector<1x128xf32> to vector<2x128xf32>
    %16 = arith.addf %14, %15 : vector<2x128xf32>
    %17 = vector.extract_strided_slice %12 {offsets = [0, 0], sizes = [2, 40], strides = [1, 1]} : vector<2x128xf32> to vector<2x40xf32>
    %18 = vector.extract_strided_slice %16 {offsets = [0, 0], sizes = [2, 40], strides = [1, 1]} : vector<2x128xf32> to vector<2x40xf32>
    %19 = arith.addf %17, %18 : vector<2x40xf32>
    %20 = arith.negf %19 : vector<2x40xf32>
    %21 = math.exp %20 : vector<2x40xf32>
    %cst_18 = arith.constant 1.000000e+00 : f32
    %22 = vector.broadcast %cst_18 : f32 to vector<2x40xf32>
    %23 = arith.addf %22, %21 : vector<2x40xf32>
    %24 = arith.divf %22, %23 : vector<2x40xf32>
    %25 = vector.extract_strided_slice %12 {offsets = [0, 40], sizes = [2, 40], strides = [1, 1]} : vector<2x128xf32> to vector<2x40xf32>
    %26 = vector.extract_strided_slice %16 {offsets = [0, 40], sizes = [2, 40], strides = [1, 1]} : vector<2x128xf32> to vector<2x40xf32>
    %27 = arith.addf %25, %26 : vector<2x40xf32>
    %28 = arith.negf %27 : vector<2x40xf32>
    %29 = math.exp %28 : vector<2x40xf32>
    %cst_19 = arith.constant 1.000000e+00 : f32
    %30 = vector.broadcast %cst_19 : f32 to vector<2x40xf32>
    %31 = arith.addf %30, %29 : vector<2x40xf32>
    %32 = arith.divf %30, %31 : vector<2x40xf32>
    %33 = vector.extract_strided_slice %12 {offsets = [0, 80], sizes = [2, 40], strides = [1, 1]} : vector<2x128xf32> to vector<2x40xf32>
    %34 = vector.extract_strided_slice %16 {offsets = [0, 80], sizes = [2, 40], strides = [1, 1]} : vector<2x128xf32> to vector<2x40xf32>
    %35 = arith.mulf %24, %34 : vector<2x40xf32>
    %36 = arith.addf %33, %35 : vector<2x40xf32>
    %37 = math.tanh %36 : vector<2x40xf32>
    %cst_20 = arith.constant 1.000000e+00 : f32
    %38 = vector.broadcast %cst_20 : f32 to vector<2x40xf32>
    %39 = arith.subf %38, %32 : vector<2x40xf32>
    %40 = arith.mulf %39, %37 : vector<2x40xf32>
    %41 = arith.mulf %32, %7 : vector<2x40xf32>
    %42 = arith.addf %40, %41 : vector<2x40xf32>
    %43 = arith.truncf %42 : vector<2x40xf32> to vector<2x40xbf16>
    %cst_21 = arith.constant dense<0.000000e+00> : vector<2x128xf32>
    %44 = tpu.matmul %43, %2, %cst_21 {dimension_numbers = #tpu.dot_dimension_numbers<[1], [0], [0], [1], [0, 0, 1, 1], [], []>} : vector<2x40xbf16>, vector<40x128xbf16>, vector<2x128xf32> -> vector<2x128xf32>
    %45 = vector.broadcast %3 : vector<1x128xf32> to vector<2x128xf32>
    %46 = arith.addf %44, %45 : vector<2x128xf32>
    %47 = arith.truncf %9 : vector<2x40xf32> to vector<2x40xbf16>
    %cst_22 = arith.constant dense<0.000000e+00> : vector<2x128xf32>
    %48 = tpu.matmul %47, %4, %cst_22 {dimension_numbers = #tpu.dot_dimension_numbers<[1], [0], [0], [1], [0, 0, 1, 1], [], []>} : vector<2x40xbf16>, vector<40x128xbf16>, vector<2x128xf32> -> vector<2x128xf32>
    %49 = vector.broadcast %5 : vector<1x128xf32> to vector<2x128xf32>
    %50 = arith.addf %48, %49 : vector<2x128xf32>
    %51 = vector.extract_strided_slice %46 {offsets = [0, 0], sizes = [2, 40], strides = [1, 1]} : vector<2x128xf32> to vector<2x40xf32>
    %52 = vector.extract_strided_slice %50 {offsets = [0, 0], sizes = [2, 40], strides = [1, 1]} : vector<2x128xf32> to vector<2x40xf32>
    %53 = arith.addf %51, %52 : vector<2x40xf32>
    %54 = arith.negf %53 : vector<2x40xf32>
    %55 = math.exp %54 : vector<2x40xf32>
    %cst_23 = arith.constant 1.000000e+00 : f32
    %56 = vector.broadcast %cst_23 : f32 to vector<2x40xf32>
    %57 = arith.addf %56, %55 : vector<2x40xf32>
    %58 = arith.divf %56, %57 : vector<2x40xf32>
    %59 = vector.extract_strided_slice %46 {offsets = [0, 40], sizes = [2, 40], strides = [1, 1]} : vector<2x128xf32> to vector<2x40xf32>
    %60 = vector.extract_strided_slice %50 {offsets = [0, 40], sizes = [2, 40], strides = [1, 1]} : vector<2x128xf32> to vector<2x40xf32>
    %61 = arith.addf %59, %60 : vector<2x40xf32>
    %62 = arith.negf %61 : vector<2x40xf32>
    %63 = math.exp %62 : vector<2x40xf32>
    %cst_24 = arith.constant 1.000000e+00 : f32
    %64 = vector.broadcast %cst_24 : f32 to vector<2x40xf32>
    %65 = arith.addf %64, %63 : vector<2x40xf32>
    %66 = arith.divf %64, %65 : vector<2x40xf32>
    %67 = vector.extract_strided_slice %46 {offsets = [0, 80], sizes = [2, 40], strides = [1, 1]} : vector<2x128xf32> to vector<2x40xf32>
    %68 = vector.extract_strided_slice %50 {offsets = [0, 80], sizes = [2, 40], strides = [1, 1]} : vector<2x128xf32> to vector<2x40xf32>
    %69 = arith.mulf %58, %68 : vector<2x40xf32>
    %70 = arith.addf %67, %69 : vector<2x40xf32>
    %71 = math.tanh %70 : vector<2x40xf32>
    %cst_25 = arith.constant 1.000000e+00 : f32
    %72 = vector.broadcast %cst_25 : f32 to vector<2x40xf32>
    %73 = arith.subf %72, %66 : vector<2x40xf32>
    %74 = arith.mulf %73, %71 : vector<2x40xf32>
    %75 = arith.mulf %66, %9 : vector<2x40xf32>
    %76 = arith.addf %74, %75 : vector<2x40xf32>
    %c1_i32 = arith.constant 1 : i32
    %77 = arith.index_cast %c1_i32 : i32 to index
    %c0_26 = arith.constant 0 : index
    %c0_27 = arith.constant 0 : index
    %78 = vector.load %arg1[%77, %c0_26, %c0_27] : memref<3x2x128xf32, #tpu.memory_space<vmem>>, vector<1x2x128xf32>
    %79 = vector.shape_cast %78 : vector<1x2x128xf32> to vector<2x128xf32>
    %80 = arith.truncf %42 : vector<2x40xf32> to vector<2x40xbf16>
    %cst_28 = arith.constant dense<0.000000e+00> : vector<2x128xf32>
    %81 = tpu.matmul %80, %0, %cst_28 {dimension_numbers = #tpu.dot_dimension_numbers<[1], [0], [0], [1], [0, 0, 1, 1], [], []>} : vector<2x40xbf16>, vector<40x128xbf16>, vector<2x128xf32> -> vector<2x128xf32>
    %82 = vector.broadcast %1 : vector<1x128xf32> to vector<2x128xf32>
    %83 = arith.addf %81, %82 : vector<2x128xf32>
    %84 = vector.extract_strided_slice %79 {offsets = [0, 0], sizes = [2, 40], strides = [1, 1]} : vector<2x128xf32> to vector<2x40xf32>
    %85 = vector.extract_strided_slice %83 {offsets = [0, 0], sizes = [2, 40], strides = [1, 1]} : vector<2x128xf32> to vector<2x40xf32>
    %86 = arith.addf %84, %85 : vector<2x40xf32>
    %87 = arith.negf %86 : vector<2x40xf32>
    %88 = math.exp %87 : vector<2x40xf32>
    %cst_29 = arith.constant 1.000000e+00 : f32
    %89 = vector.broadcast %cst_29 : f32 to vector<2x40xf32>
    %90 = arith.addf %89, %88 : vector<2x40xf32>
    %91 = arith.divf %89, %90 : vector<2x40xf32>
    %92 = vector.extract_strided_slice %79 {offsets = [0, 40], sizes = [2, 40], strides = [1, 1]} : vector<2x128xf32> to vector<2x40xf32>
    %93 = vector.extract_strided_slice %83 {offsets = [0, 40], sizes = [2, 40], strides = [1, 1]} : vector<2x128xf32> to vector<2x40xf32>
    %94 = arith.addf %92, %93 : vector<2x40xf32>
    %95 = arith.negf %94 : vector<2x40xf32>
    %96 = math.exp %95 : vector<2x40xf32>
    %cst_30 = arith.constant 1.000000e+00 : f32
    %97 = vector.broadcast %cst_30 : f32 to vector<2x40xf32>
    %98 = arith.addf %97, %96 : vector<2x40xf32>
    %99 = arith.divf %97, %98 : vector<2x40xf32>
    %100 = vector.extract_strided_slice %79 {offsets = [0, 80], sizes = [2, 40], strides = [1, 1]} : vector<2x128xf32> to vector<2x40xf32>
    %101 = vector.extract_strided_slice %83 {offsets = [0, 80], sizes = [2, 40], strides = [1, 1]} : vector<2x128xf32> to vector<2x40xf32>
    %102 = arith.mulf %91, %101 : vector<2x40xf32>
    %103 = arith.addf %100, %102 : vector<2x40xf32>
    %104 = math.tanh %103 : vector<2x40xf32>
    %cst_31 = arith.constant 1.000000e+00 : f32
    %105 = vector.broadcast %cst_31 : f32 to vector<2x40xf32>
    %106 = arith.subf %105, %99 : vector<2x40xf32>
    %107 = arith.mulf %106, %104 : vector<2x40xf32>
    %108 = arith.mulf %99, %42 : vector<2x40xf32>
    %109 = arith.addf %107, %108 : vector<2x40xf32>
    %110 = arith.truncf %109 : vector<2x40xf32> to vector<2x40xbf16>
    %cst_32 = arith.constant dense<0.000000e+00> : vector<2x128xf32>
    %111 = tpu.matmul %110, %2, %cst_32 {dimension_numbers = #tpu.dot_dimension_numbers<[1], [0], [0], [1], [0, 0, 1, 1], [], []>} : vector<2x40xbf16>, vector<40x128xbf16>, vector<2x128xf32> -> vector<2x128xf32>
    %112 = vector.broadcast %3 : vector<1x128xf32> to vector<2x128xf32>
    %113 = arith.addf %111, %112 : vector<2x128xf32>
    %114 = arith.truncf %76 : vector<2x40xf32> to vector<2x40xbf16>
    %cst_33 = arith.constant dense<0.000000e+00> : vector<2x128xf32>
    %115 = tpu.matmul %114, %4, %cst_33 {dimension_numbers = #tpu.dot_dimension_numbers<[1], [0], [0], [1], [0, 0, 1, 1], [], []>} : vector<2x40xbf16>, vector<40x128xbf16>, vector<2x128xf32> -> vector<2x128xf32>
    %116 = vector.broadcast %5 : vector<1x128xf32> to vector<2x128xf32>
    %117 = arith.addf %115, %116 : vector<2x128xf32>
    %118 = vector.extract_strided_slice %113 {offsets = [0, 0], sizes = [2, 40], strides = [1, 1]} : vector<2x128xf32> to vector<2x40xf32>
    %119 = vector.extract_strided_slice %117 {offsets = [0, 0], sizes = [2, 40], strides = [1, 1]} : vector<2x128xf32> to vector<2x40xf32>
    %120 = arith.addf %118, %119 : vector<2x40xf32>
    %121 = arith.negf %120 : vector<2x40xf32>
    %122 = math.exp %121 : vector<2x40xf32>
    %cst_34 = arith.constant 1.000000e+00 : f32
    %123 = vector.broadcast %cst_34 : f32 to vector<2x40xf32>
    %124 = arith.addf %123, %122 : vector<2x40xf32>
    %125 = arith.divf %123, %124 : vector<2x40xf32>
    %126 = vector.extract_strided_slice %113 {offsets = [0, 40], sizes = [2, 40], strides = [1, 1]} : vector<2x128xf32> to vector<2x40xf32>
    %127 = vector.extract_strided_slice %117 {offsets = [0, 40], sizes = [2, 40], strides = [1, 1]} : vector<2x128xf32> to vector<2x40xf32>
    %128 = arith.addf %126, %127 : vector<2x40xf32>
    %129 = arith.negf %128 : vector<2x40xf32>
    %130 = math.exp %129 : vector<2x40xf32>
    %cst_35 = arith.constant 1.000000e+00 : f32
    %131 = vector.broadcast %cst_35 : f32 to vector<2x40xf32>
    %132 = arith.addf %131, %130 : vector<2x40xf32>
    %133 = arith.divf %131, %132 : vector<2x40xf32>
    %134 = vector.extract_strided_slice %113 {offsets = [0, 80], sizes = [2, 40], strides = [1, 1]} : vector<2x128xf32> to vector<2x40xf32>
    %135 = vector.extract_strided_slice %117 {offsets = [0, 80], sizes = [2, 40], strides = [1, 1]} : vector<2x128xf32> to vector<2x40xf32>
    %136 = arith.mulf %125, %135 : vector<2x40xf32>
    %137 = arith.addf %134, %136 : vector<2x40xf32>
    %138 = math.tanh %137 : vector<2x40xf32>
    %cst_36 = arith.constant 1.000000e+00 : f32
    %139 = vector.broadcast %cst_36 : f32 to vector<2x40xf32>
    %140 = arith.subf %139, %133 : vector<2x40xf32>
    %141 = arith.mulf %140, %138 : vector<2x40xf32>
    %142 = arith.mulf %133, %76 : vector<2x40xf32>
    %143 = arith.addf %141, %142 : vector<2x40xf32>
    %c2_i32 = arith.constant 2 : i32
    %144 = arith.index_cast %c2_i32 : i32 to index
    %c0_37 = arith.constant 0 : index
    %c0_38 = arith.constant 0 : index
    %145 = vector.load %arg1[%144, %c0_37, %c0_38] : memref<3x2x128xf32, #tpu.memory_space<vmem>>, vector<1x2x128xf32>
    %146 = vector.shape_cast %145 : vector<1x2x128xf32> to vector<2x128xf32>
    %147 = arith.truncf %109 : vector<2x40xf32> to vector<2x40xbf16>
    %cst_39 = arith.constant dense<0.000000e+00> : vector<2x128xf32>
    %148 = tpu.matmul %147, %0, %cst_39 {dimension_numbers = #tpu.dot_dimension_numbers<[1], [0], [0], [1], [0, 0, 1, 1], [], []>} : vector<2x40xbf16>, vector<40x128xbf16>, vector<2x128xf32> -> vector<2x128xf32>
    %149 = vector.broadcast %1 : vector<1x128xf32> to vector<2x128xf32>
    %150 = arith.addf %148, %149 : vector<2x128xf32>
    %151 = vector.extract_strided_slice %146 {offsets = [0, 0], sizes = [2, 40], strides = [1, 1]} : vector<2x128xf32> to vector<2x40xf32>
    %152 = vector.extract_strided_slice %150 {offsets = [0, 0], sizes = [2, 40], strides = [1, 1]} : vector<2x128xf32> to vector<2x40xf32>
    %153 = arith.addf %151, %152 : vector<2x40xf32>
    %154 = arith.negf %153 : vector<2x40xf32>
    %155 = math.exp %154 : vector<2x40xf32>
    %cst_40 = arith.constant 1.000000e+00 : f32
    %156 = vector.broadcast %cst_40 : f32 to vector<2x40xf32>
    %157 = arith.addf %156, %155 : vector<2x40xf32>
    %158 = arith.divf %156, %157 : vector<2x40xf32>
    %159 = vector.extract_strided_slice %146 {offsets = [0, 40], sizes = [2, 40], strides = [1, 1]} : vector<2x128xf32> to vector<2x40xf32>
    %160 = vector.extract_strided_slice %150 {offsets = [0, 40], sizes = [2, 40], strides = [1, 1]} : vector<2x128xf32> to vector<2x40xf32>
    %161 = arith.addf %159, %160 : vector<2x40xf32>
    %162 = arith.negf %161 : vector<2x40xf32>
    %163 = math.exp %162 : vector<2x40xf32>
    %cst_41 = arith.constant 1.000000e+00 : f32
    %164 = vector.broadcast %cst_41 : f32 to vector<2x40xf32>
    %165 = arith.addf %164, %163 : vector<2x40xf32>
    %166 = arith.divf %164, %165 : vector<2x40xf32>
    %167 = vector.extract_strided_slice %146 {offsets = [0, 80], sizes = [2, 40], strides = [1, 1]} : vector<2x128xf32> to vector<2x40xf32>
    %168 = vector.extract_strided_slice %150 {offsets = [0, 80], sizes = [2, 40], strides = [1, 1]} : vector<2x128xf32> to vector<2x40xf32>
    %169 = arith.mulf %158, %168 : vector<2x40xf32>
    %170 = arith.addf %167, %169 : vector<2x40xf32>
    %171 = math.tanh %170 : vector<2x40xf32>
    %cst_42 = arith.constant 1.000000e+00 : f32
    %172 = vector.broadcast %cst_42 : f32 to vector<2x40xf32>
    %173 = arith.subf %172, %166 : vector<2x40xf32>
    %174 = arith.mulf %173, %171 : vector<2x40xf32>
    %175 = arith.mulf %166, %109 : vector<2x40xf32>
    %176 = arith.addf %174, %175 : vector<2x40xf32>
    %177 = arith.truncf %176 : vector<2x40xf32> to vector<2x40xbf16>
    %cst_43 = arith.constant dense<0.000000e+00> : vector<2x128xf32>
    %178 = tpu.matmul %177, %2, %cst_43 {dimension_numbers = #tpu.dot_dimension_numbers<[1], [0], [0], [1], [0, 0, 1, 1], [], []>} : vector<2x40xbf16>, vector<40x128xbf16>, vector<2x128xf32> -> vector<2x128xf32>
    %179 = vector.broadcast %3 : vector<1x128xf32> to vector<2x128xf32>
    %180 = arith.addf %178, %179 : vector<2x128xf32>
    %181 = arith.truncf %143 : vector<2x40xf32> to vector<2x40xbf16>
    %cst_44 = arith.constant dense<0.000000e+00> : vector<2x128xf32>
    %182 = tpu.matmul %181, %4, %cst_44 {dimension_numbers = #tpu.dot_dimension_numbers<[1], [0], [0], [1], [0, 0, 1, 1], [], []>} : vector<2x40xbf16>, vector<40x128xbf16>, vector<2x128xf32> -> vector<2x128xf32>
    %183 = vector.broadcast %5 : vector<1x128xf32> to vector<2x128xf32>
    %184 = arith.addf %182, %183 : vector<2x128xf32>
    %185 = vector.extract_strided_slice %180 {offsets = [0, 0], sizes = [2, 40], strides = [1, 1]} : vector<2x128xf32> to vector<2x40xf32>
    %186 = vector.extract_strided_slice %184 {offsets = [0, 0], sizes = [2, 40], strides = [1, 1]} : vector<2x128xf32> to vector<2x40xf32>
    %187 = arith.addf %185, %186 : vector<2x40xf32>
    %188 = arith.negf %187 : vector<2x40xf32>
    %189 = math.exp %188 : vector<2x40xf32>
    %cst_45 = arith.constant 1.000000e+00 : f32
    %190 = vector.broadcast %cst_45 : f32 to vector<2x40xf32>
    %191 = arith.addf %190, %189 : vector<2x40xf32>
    %192 = arith.divf %190, %191 : vector<2x40xf32>
    %193 = vector.extract_strided_slice %180 {offsets = [0, 40], sizes = [2, 40], strides = [1, 1]} : vector<2x128xf32> to vector<2x40xf32>
    %194 = vector.extract_strided_slice %184 {offsets = [0, 40], sizes = [2, 40], strides = [1, 1]} : vector<2x128xf32> to vector<2x40xf32>
    %195 = arith.addf %193, %194 : vector<2x40xf32>
    %196 = arith.negf %195 : vector<2x40xf32>
    %197 = math.exp %196 : vector<2x40xf32>
    %cst_46 = arith.constant 1.000000e+00 : f32
    %198 = vector.broadcast %cst_46 : f32 to vector<2x40xf32>
    %199 = arith.addf %198, %197 : vector<2x40xf32>
    %200 = arith.divf %198, %199 : vector<2x40xf32>
    %201 = vector.extract_strided_slice %180 {offsets = [0, 80], sizes = [2, 40], strides = [1, 1]} : vector<2x128xf32> to vector<2x40xf32>
    %202 = vector.extract_strided_slice %184 {offsets = [0, 80], sizes = [2, 40], strides = [1, 1]} : vector<2x128xf32> to vector<2x40xf32>
    %203 = arith.mulf %192, %202 : vector<2x40xf32>
    %204 = arith.addf %201, %203 : vector<2x40xf32>
    %205 = math.tanh %204 : vector<2x40xf32>
    %cst_47 = arith.constant 1.000000e+00 : f32
    %206 = vector.broadcast %cst_47 : f32 to vector<2x40xf32>
    %207 = arith.subf %206, %200 : vector<2x40xf32>
    %208 = arith.mulf %207, %205 : vector<2x40xf32>
    %209 = arith.mulf %200, %143 : vector<2x40xf32>
    %210 = arith.addf %208, %209 : vector<2x40xf32>
    %c3_i32 = arith.constant 3 : i32
    %c0_48 = arith.constant 0 : index
    %c0_49 = arith.constant 0 : index
    %c0_50 = arith.constant 0 : index
    %211 = vector.load %arg9[%c0_48, %c0_49, %c0_50] : memref<2x2x40xf32, #tpu.memory_space<vmem>>, vector<1x2x40xf32>
    %212 = vector.shape_cast %211 : vector<1x2x40xf32> to vector<2x40xf32>
    %213 = vector.shape_cast %176 : vector<2x40xf32> to vector<1x2x40xf32>
    tpu.vector_store %arg9[%c0_48, %c0_49, %c0_50], %213 {strides = array<i32>} : memref<2x2x40xf32, #tpu.memory_space<vmem>>, vector<1x2x40xf32>,
    %c1_51 = arith.constant 1 : index
    %c0_52 = arith.constant 0 : index
    %c0_53 = arith.constant 0 : index
    %214 = vector.load %arg9[%c1_51, %c0_52, %c0_53] : memref<2x2x40xf32, #tpu.memory_space<vmem>>, vector<1x2x40xf32>
    %215 = vector.shape_cast %214 : vector<1x2x40xf32> to vector<2x40xf32>
    %216 = vector.shape_cast %210 : vector<2x40xf32> to vector<1x2x40xf32>
    tpu.vector_store %arg9[%c1_51, %c0_52, %c0_53], %216 {strides = array<i32>} : memref<2x2x40xf32, #tpu.memory_space<vmem>>, vector<1x2x40xf32>,
    return
  }
  func.func @transform_0(%arg0: i32) -> (i32, i32, i32) {
    %c0_i32 = arith.constant 0 : i32
    %c0_i32_0 = arith.constant 0 : i32
    %c0_i32_1 = arith.constant 0 : i32
    %c0_i32_2 = arith.constant 0 : i32
    return %c0_i32, %c0_i32_0, %c0_i32_1 : i32, i32, i32
  }
  func.func @transform_1(%arg0: i32) -> (i32, i32, i32) {
    %c0_i32 = arith.constant 0 : i32
    %c0_i32_0 = arith.constant 0 : i32
    %c0_i32_1 = arith.constant 0 : i32
    %c0_i32_2 = arith.constant 0 : i32
    return %c0_i32, %c0_i32_0, %c0_i32_1 : i32, i32, i32
  }
  func.func @transform_2(%arg0: i32) -> (i32, i32) {
    %c0_i32 = arith.constant 0 : i32
    %c0_i32_0 = arith.constant 0 : i32
    %c0_i32_1 = arith.constant 0 : i32
    return %c0_i32, %c0_i32_0 : i32, i32
  }
  func.func @transform_3(%arg0: i32) -> (i32, i32) {
    %c0_i32 = arith.constant 0 : i32
    %c0_i32_0 = arith.constant 0 : i32
    %c0_i32_1 = arith.constant 0 : i32
    return %c0_i32, %c0_i32_0 : i32, i32
  }
  func.func @transform_4(%arg0: i32) -> (i32, i32) {
    %c0_i32 = arith.constant 0 : i32
    %c0_i32_0 = arith.constant 0 : i32
    %c0_i32_1 = arith.constant 0 : i32
    return %c0_i32, %c0_i32_0 : i32, i32
  }
  func.func @transform_5(%arg0: i32) -> (i32, i32) {
    %c0_i32 = arith.constant 0 : i32
    %c0_i32_0 = arith.constant 0 : i32
    %c0_i32_1 = arith.constant 0 : i32
    return %c0_i32, %c0_i32_0 : i32, i32
  }
  func.func @transform_6(%arg0: i32) -> (i32, i32) {
    %c0_i32 = arith.constant 0 : i32
    %c0_i32_0 = arith.constant 0 : i32
    %c0_i32_1 = arith.constant 0 : i32
    return %c0_i32, %c0_i32_0 : i32, i32
  }
  func.func @transform_7(%arg0: i32) -> (i32, i32) {
    %c0_i32 = arith.constant 0 : i32
    %c0_i32_0 = arith.constant 0 : i32
    %c0_i32_1 = arith.constant 0 : i32
    return %c0_i32, %c0_i32_0 : i32, i32
  }
  func.func @transform_8(%arg0: i32) -> (i32, i32, i32) {
    %c0_i32 = arith.constant 0 : i32
    %c0_i32_0 = arith.constant 0 : i32
    %c0_i32_1 = arith.constant 0 : i32
    %c0_i32_2 = arith.constant 0 : i32
    return %c0_i32, %c0_i32_0, %c0_i32_1 : i32, i32, i32
  }
}

module attributes {stable_mosaic.version = 11 : i64} {
  func.func @_nce_kernel(%arg0: i32, %arg1: memref<4x2x256xbf16, #tpu.memory_space<vmem>>, %arg2: memref<2x40xbf16, #tpu.memory_space<vmem>>, %arg3: memref<40x1024xbf16, #tpu.memory_space<vmem>>, %arg4: memref<1x1024xf32, #tpu.memory_space<vmem>>, %arg5: memref<1x1xf32, #tpu.memory_space<vmem>>, %arg6: memref<1x1xi32, #tpu.memory_space<vmem>>) attributes {dimension_semantics = [#tpu.dimension_semantics<arbitrary>], iteration_bounds = array<i64: 1>, scalar_prefetch = 0 : i64, scratch_operands = 0 : i64, tpu.core_type = #tpu.core_type<tc>, window_params = [{pipeline_mode = #tpu.pipeline_mode<synchronous>, transform_indices = @transform_0, window_bounds = array<i64: 4, 2, 256>}, {pipeline_mode = #tpu.pipeline_mode<synchronous>, transform_indices = @transform_1, window_bounds = array<i64: 2, 40>}, {pipeline_mode = #tpu.pipeline_mode<synchronous>, transform_indices = @transform_2, window_bounds = array<i64: 40, 1024>}, {pipeline_mode = #tpu.pipeline_mode<synchronous>, transform_indices = @transform_3, window_bounds = array<i64: 1, 1024>}, {pipeline_mode = #tpu.pipeline_mode<synchronous>, transform_indices = @transform_4, window_bounds = array<i64: 1, 1>}, {pipeline_mode = #tpu.pipeline_mode<synchronous>, transform_indices = @transform_5, window_bounds = array<i64: 1, 1>}]} {
    %c0 = arith.constant 0 : index
    %c0_0 = arith.constant 0 : index
    %0 = vector.load %arg2[%c0, %c0_0] : memref<2x40xbf16, #tpu.memory_space<vmem>>, vector<2x40xbf16>
    %c0_1 = arith.constant 0 : index
    %c0_2 = arith.constant 0 : index
    %1 = vector.load %arg3[%c0_1, %c0_2] : memref<40x1024xbf16, #tpu.memory_space<vmem>>, vector<40x1024xbf16>
    %cst = arith.constant dense<0.000000e+00> : vector<2x1024xf32>
    %2 = tpu.matmul %0, %1, %cst {dimension_numbers = #tpu.dot_dimension_numbers<[1], [0], [0], [1], [0, 0, 1, 1], [], []>} : vector<2x40xbf16>, vector<40x1024xbf16>, vector<2x1024xf32> -> vector<2x1024xf32>
    %c0_3 = arith.constant 0 : index
    %c0_4 = arith.constant 0 : index
    %3 = vector.load %arg4[%c0_3, %c0_4] : memref<1x1024xf32, #tpu.memory_space<vmem>>, vector<1x1024xf32>
    %4 = vector.broadcast %3 : vector<1x1024xf32> to vector<2x1024xf32>
    %5 = arith.addf %2, %4 : vector<2x1024xf32>
    %6 = tpu.iota {dimensions = array<i32: 0>} : vector<2x2xi32>
    %7 = tpu.iota {dimensions = array<i32: 1>} : vector<2x2xi32>
    %cst_5 = arith.constant 0.000000e+00 : f32
    %8 = vector.broadcast %cst_5 : f32 to vector<1x1xf32>
    %9 = vector.extract_strided_slice %5 {offsets = [0, 0], sizes = [2, 256], strides = [1, 1]} : vector<2x1024xf32> to vector<2x256xf32>
    %10 = arith.truncf %9 : vector<2x256xf32> to vector<2x256xbf16>
    %c0_6 = arith.constant 0 : index
    %c0_7 = arith.constant 0 : index
    %c0_8 = arith.constant 0 : index
    %11 = vector.load %arg1[%c0_6, %c0_7, %c0_8] : memref<4x2x256xbf16, #tpu.memory_space<vmem>>, vector<1x2x256xbf16>
    %12 = vector.shape_cast %11 : vector<1x2x256xbf16> to vector<2x256xbf16>
    %cst_9 = arith.constant dense<0.000000e+00> : vector<2x2xf32>
    %13 = tpu.matmul %12, %10, %cst_9 {dimension_numbers = #tpu.dot_dimension_numbers<[1], [1], [0], [0], [0, 0, 1, 0], [], []>} : vector<2x256xbf16>, vector<2x256xbf16>, vector<2x2xf32> -> vector<2x2xf32>
    %cst_10 = arith.constant dense<0xFF800000> : vector<2xf32>
    %14 = vector.multi_reduction <maximumf>, %13, %cst_10 [1] : vector<2x2xf32> to vector<2xf32>
    %15 = vector.shape_cast %14 : vector<2xf32> to vector<2x1xf32>
    %16 = vector.broadcast %15 : vector<2x1xf32> to vector<2x2xf32>
    %17 = arith.subf %13, %16 : vector<2x2xf32>
    %18 = math.exp %17 : vector<2x2xf32>
    %cst_11 = arith.constant dense<0.000000e+00> : vector<2xf32>
    %19 = vector.multi_reduction <add>, %18, %cst_11 [1] : vector<2x2xf32> to vector<2xf32>
    %20 = vector.shape_cast %19 : vector<2xf32> to vector<2x1xf32>
    %21 = math.log %20 : vector<2x1xf32>
    %22 = vector.broadcast %21 : vector<2x1xf32> to vector<2x2xf32>
    %23 = arith.subf %17, %22 : vector<2x2xf32>
    %24 = arith.cmpi eq, %6, %7 : vector<2x2xi32>
    %cst_12 = arith.constant 0.000000e+00 : f32
    %25 = vector.broadcast %cst_12 : f32 to vector<2x2xf32>
    %26 = arith.select %24, %23, %25 : vector<2x2xi1>, vector<2x2xf32>
    %27 = vector.shape_cast %26 : vector<2x2xf32> to vector<1x2x2xf32>
    %cst_13 = arith.constant dense<0.000000e+00> : vector<1xf32>
    %28 = vector.multi_reduction <add>, %27, %cst_13 [1, 2] : vector<1x2x2xf32> to vector<1xf32>
    %29 = vector.shape_cast %28 : vector<1xf32> to vector<1x1x1xf32>
    %30 = vector.extract %29[0, 0, 0] : f32 from vector<1x1x1xf32>
    %31 = vector.broadcast %30 : f32 to vector<1x1xf32>
    %32 = arith.addf %8, %31 : vector<1x1xf32>
    %33 = vector.extract_strided_slice %5 {offsets = [0, 256], sizes = [2, 256], strides = [1, 1]} : vector<2x1024xf32> to vector<2x256xf32>
    %34 = arith.truncf %33 : vector<2x256xf32> to vector<2x256xbf16>
    %c1 = arith.constant 1 : index
    %c0_14 = arith.constant 0 : index
    %c0_15 = arith.constant 0 : index
    %35 = vector.load %arg1[%c1, %c0_14, %c0_15] : memref<4x2x256xbf16, #tpu.memory_space<vmem>>, vector<1x2x256xbf16>
    %36 = vector.shape_cast %35 : vector<1x2x256xbf16> to vector<2x256xbf16>
    %cst_16 = arith.constant dense<0.000000e+00> : vector<2x2xf32>
    %37 = tpu.matmul %36, %34, %cst_16 {dimension_numbers = #tpu.dot_dimension_numbers<[1], [1], [0], [0], [0, 0, 1, 0], [], []>} : vector<2x256xbf16>, vector<2x256xbf16>, vector<2x2xf32> -> vector<2x2xf32>
    %cst_17 = arith.constant dense<0xFF800000> : vector<2xf32>
    %38 = vector.multi_reduction <maximumf>, %37, %cst_17 [1] : vector<2x2xf32> to vector<2xf32>
    %39 = vector.shape_cast %38 : vector<2xf32> to vector<2x1xf32>
    %40 = vector.broadcast %39 : vector<2x1xf32> to vector<2x2xf32>
    %41 = arith.subf %37, %40 : vector<2x2xf32>
    %42 = math.exp %41 : vector<2x2xf32>
    %cst_18 = arith.constant dense<0.000000e+00> : vector<2xf32>
    %43 = vector.multi_reduction <add>, %42, %cst_18 [1] : vector<2x2xf32> to vector<2xf32>
    %44 = vector.shape_cast %43 : vector<2xf32> to vector<2x1xf32>
    %45 = math.log %44 : vector<2x1xf32>
    %46 = vector.broadcast %45 : vector<2x1xf32> to vector<2x2xf32>
    %47 = arith.subf %41, %46 : vector<2x2xf32>
    %48 = arith.cmpi eq, %6, %7 : vector<2x2xi32>
    %cst_19 = arith.constant 0.000000e+00 : f32
    %49 = vector.broadcast %cst_19 : f32 to vector<2x2xf32>
    %50 = arith.select %48, %47, %49 : vector<2x2xi1>, vector<2x2xf32>
    %51 = vector.shape_cast %50 : vector<2x2xf32> to vector<1x2x2xf32>
    %cst_20 = arith.constant dense<0.000000e+00> : vector<1xf32>
    %52 = vector.multi_reduction <add>, %51, %cst_20 [1, 2] : vector<1x2x2xf32> to vector<1xf32>
    %53 = vector.shape_cast %52 : vector<1xf32> to vector<1x1x1xf32>
    %54 = vector.extract %53[0, 0, 0] : f32 from vector<1x1x1xf32>
    %55 = vector.broadcast %54 : f32 to vector<1x1xf32>
    %56 = arith.addf %32, %55 : vector<1x1xf32>
    %57 = vector.extract_strided_slice %5 {offsets = [0, 512], sizes = [2, 256], strides = [1, 1]} : vector<2x1024xf32> to vector<2x256xf32>
    %58 = arith.truncf %57 : vector<2x256xf32> to vector<2x256xbf16>
    %c2 = arith.constant 2 : index
    %c0_21 = arith.constant 0 : index
    %c0_22 = arith.constant 0 : index
    %59 = vector.load %arg1[%c2, %c0_21, %c0_22] : memref<4x2x256xbf16, #tpu.memory_space<vmem>>, vector<1x2x256xbf16>
    %60 = vector.shape_cast %59 : vector<1x2x256xbf16> to vector<2x256xbf16>
    %cst_23 = arith.constant dense<0.000000e+00> : vector<2x2xf32>
    %61 = tpu.matmul %60, %58, %cst_23 {dimension_numbers = #tpu.dot_dimension_numbers<[1], [1], [0], [0], [0, 0, 1, 0], [], []>} : vector<2x256xbf16>, vector<2x256xbf16>, vector<2x2xf32> -> vector<2x2xf32>
    %cst_24 = arith.constant dense<0xFF800000> : vector<2xf32>
    %62 = vector.multi_reduction <maximumf>, %61, %cst_24 [1] : vector<2x2xf32> to vector<2xf32>
    %63 = vector.shape_cast %62 : vector<2xf32> to vector<2x1xf32>
    %64 = vector.broadcast %63 : vector<2x1xf32> to vector<2x2xf32>
    %65 = arith.subf %61, %64 : vector<2x2xf32>
    %66 = math.exp %65 : vector<2x2xf32>
    %cst_25 = arith.constant dense<0.000000e+00> : vector<2xf32>
    %67 = vector.multi_reduction <add>, %66, %cst_25 [1] : vector<2x2xf32> to vector<2xf32>
    %68 = vector.shape_cast %67 : vector<2xf32> to vector<2x1xf32>
    %69 = math.log %68 : vector<2x1xf32>
    %70 = vector.broadcast %69 : vector<2x1xf32> to vector<2x2xf32>
    %71 = arith.subf %65, %70 : vector<2x2xf32>
    %72 = arith.cmpi eq, %6, %7 : vector<2x2xi32>
    %cst_26 = arith.constant 0.000000e+00 : f32
    %73 = vector.broadcast %cst_26 : f32 to vector<2x2xf32>
    %74 = arith.select %72, %71, %73 : vector<2x2xi1>, vector<2x2xf32>
    %75 = vector.shape_cast %74 : vector<2x2xf32> to vector<1x2x2xf32>
    %cst_27 = arith.constant dense<0.000000e+00> : vector<1xf32>
    %76 = vector.multi_reduction <add>, %75, %cst_27 [1, 2] : vector<1x2x2xf32> to vector<1xf32>
    %77 = vector.shape_cast %76 : vector<1xf32> to vector<1x1x1xf32>
    %78 = vector.extract %77[0, 0, 0] : f32 from vector<1x1x1xf32>
    %79 = vector.broadcast %78 : f32 to vector<1x1xf32>
    %80 = arith.addf %56, %79 : vector<1x1xf32>
    %81 = vector.extract_strided_slice %5 {offsets = [0, 768], sizes = [2, 256], strides = [1, 1]} : vector<2x1024xf32> to vector<2x256xf32>
    %82 = arith.truncf %81 : vector<2x256xf32> to vector<2x256xbf16>
    %c3 = arith.constant 3 : index
    %c0_28 = arith.constant 0 : index
    %c0_29 = arith.constant 0 : index
    %83 = vector.load %arg1[%c3, %c0_28, %c0_29] : memref<4x2x256xbf16, #tpu.memory_space<vmem>>, vector<1x2x256xbf16>
    %84 = vector.shape_cast %83 : vector<1x2x256xbf16> to vector<2x256xbf16>
    %cst_30 = arith.constant dense<0.000000e+00> : vector<2x2xf32>
    %85 = tpu.matmul %84, %82, %cst_30 {dimension_numbers = #tpu.dot_dimension_numbers<[1], [1], [0], [0], [0, 0, 1, 0], [], []>} : vector<2x256xbf16>, vector<2x256xbf16>, vector<2x2xf32> -> vector<2x2xf32>
    %cst_31 = arith.constant dense<0xFF800000> : vector<2xf32>
    %86 = vector.multi_reduction <maximumf>, %85, %cst_31 [1] : vector<2x2xf32> to vector<2xf32>
    %87 = vector.shape_cast %86 : vector<2xf32> to vector<2x1xf32>
    %88 = vector.broadcast %87 : vector<2x1xf32> to vector<2x2xf32>
    %89 = arith.subf %85, %88 : vector<2x2xf32>
    %90 = math.exp %89 : vector<2x2xf32>
    %cst_32 = arith.constant dense<0.000000e+00> : vector<2xf32>
    %91 = vector.multi_reduction <add>, %90, %cst_32 [1] : vector<2x2xf32> to vector<2xf32>
    %92 = vector.shape_cast %91 : vector<2xf32> to vector<2x1xf32>
    %93 = math.log %92 : vector<2x1xf32>
    %94 = vector.broadcast %93 : vector<2x1xf32> to vector<2x2xf32>
    %95 = arith.subf %89, %94 : vector<2x2xf32>
    %96 = arith.cmpi eq, %6, %7 : vector<2x2xi32>
    %cst_33 = arith.constant 0.000000e+00 : f32
    %97 = vector.broadcast %cst_33 : f32 to vector<2x2xf32>
    %98 = arith.select %96, %95, %97 : vector<2x2xi1>, vector<2x2xf32>
    %99 = vector.shape_cast %98 : vector<2x2xf32> to vector<1x2x2xf32>
    %cst_34 = arith.constant dense<0.000000e+00> : vector<1xf32>
    %100 = vector.multi_reduction <add>, %99, %cst_34 [1, 2] : vector<1x2x2xf32> to vector<1xf32>
    %101 = vector.shape_cast %100 : vector<1xf32> to vector<1x1x1xf32>
    %102 = vector.extract %101[0, 0, 0] : f32 from vector<1x1x1xf32>
    %103 = vector.broadcast %102 : f32 to vector<1x1xf32>
    %104 = arith.addf %80, %103 : vector<1x1xf32>
    %105 = math.exp %95 : vector<2x2xf32>
    %cst_35 = arith.constant dense<0xFF800000> : vector<2xf32>
    %106 = vector.multi_reduction <maximumf>, %105, %cst_35 [0] : vector<2x2xf32> to vector<2xf32>
    %107 = vector.shape_cast %106 : vector<2xf32> to vector<1x2xf32>
    %108 = vector.broadcast %107 : vector<1x2xf32> to vector<2x2xf32>
    %109 = arith.cmpf oge, %105, %108 : vector<2x2xf32>
    %c2_i32 = arith.constant 2 : i32
    %110 = vector.broadcast %c2_i32 : i32 to vector<2x2xi32>
    %111 = arith.select %109, %6, %110 : vector<2x2xi1>, vector<2x2xi32>
    %cst_36 = arith.constant dense<2147483647> : vector<2xi32>
    %112 = vector.multi_reduction <minsi>, %111, %cst_36 [0] : vector<2x2xi32> to vector<2xi32>
    %113 = vector.shape_cast %112 : vector<2xi32> to vector<1x2xi32>
    %114 = tpu.iota {dimensions = array<i32: 1>} : vector<1x2xi32>
    %115 = arith.cmpi eq, %113, %114 : vector<1x2xi32>
    %116 = arith.extui %115 : vector<1x2xi1> to vector<1x2xi32>
    %117 = vector.shape_cast %116 : vector<1x2xi32> to vector<1x1x2xi32>
    %cst_37 = arith.constant dense<0> : vector<1xi32>
    %118 = vector.multi_reduction <add>, %117, %cst_37 [1, 2] : vector<1x1x2xi32> to vector<1xi32>
    %119 = vector.shape_cast %118 : vector<1xi32> to vector<1x1x1xi32>
    %120 = vector.extract %119[0, 0, 0] : i32 from vector<1x1x1xi32>
    %121 = vector.broadcast %120 : i32 to vector<1x1xi32>
    %c0_38 = arith.constant 0 : index
    %c0_39 = arith.constant 0 : index
    %122 = vector.load %arg6[%c0_38, %c0_39] : memref<1x1xi32, #tpu.memory_space<vmem>>, vector<1x1xi32>
    tpu.vector_store %arg6[%c0_38, %c0_39], %121 {strides = array<i32>} : memref<1x1xi32, #tpu.memory_space<vmem>>, vector<1x1xi32>,
    %c0_40 = arith.constant 0 : index
    %c0_41 = arith.constant 0 : index
    %123 = vector.load %arg5[%c0_40, %c0_41] : memref<1x1xf32, #tpu.memory_space<vmem>>, vector<1x1xf32>
    tpu.vector_store %arg5[%c0_40, %c0_41], %104 {strides = array<i32>} : memref<1x1xf32, #tpu.memory_space<vmem>>, vector<1x1xf32>,
    return
  }
  func.func @transform_0(%arg0: i32) -> (i32, i32, i32) {
    %c0_i32 = arith.constant 0 : i32
    %c0_i32_0 = arith.constant 0 : i32
    %c0_i32_1 = arith.constant 0 : i32
    %c0_i32_2 = arith.constant 0 : i32
    return %c0_i32, %c0_i32_0, %c0_i32_1 : i32, i32, i32
  }
  func.func @transform_1(%arg0: i32) -> (i32, i32) {
    %c0_i32 = arith.constant 0 : i32
    %c0_i32_0 = arith.constant 0 : i32
    %c0_i32_1 = arith.constant 0 : i32
    return %c0_i32, %c0_i32_0 : i32, i32
  }
  func.func @transform_2(%arg0: i32) -> (i32, i32) {
    %c0_i32 = arith.constant 0 : i32
    %c0_i32_0 = arith.constant 0 : i32
    %c0_i32_1 = arith.constant 0 : i32
    return %c0_i32, %c0_i32_0 : i32, i32
  }
  func.func @transform_3(%arg0: i32) -> (i32, i32) {
    %c0_i32 = arith.constant 0 : i32
    %c0_i32_0 = arith.constant 0 : i32
    %c0_i32_1 = arith.constant 0 : i32
    return %c0_i32, %c0_i32_0 : i32, i32
  }
  func.func @transform_4(%arg0: i32) -> (i32, i32) {
    %c0_i32 = arith.constant 0 : i32
    %c0_i32_0 = arith.constant 0 : i32
    %c0_i32_1 = arith.constant 0 : i32
    return %c0_i32, %c0_i32_0 : i32, i32
  }
  func.func @transform_5(%arg0: i32) -> (i32, i32) {
    %c0_i32 = arith.constant 0 : i32
    %c0_i32_0 = arith.constant 0 : i32
    %c0_i32_1 = arith.constant 0 : i32
    return %c0_i32, %c0_i32_0 : i32, i32
  }
}

</mosaic_0001>

<bundles_post_ra>
// kernel: cdck5_forward.11
= control target key start
LH: loop header
LB: loop body
LE: loop exit
PB: predicated region body
PF: predicated region fallthrough
CT: control target
= control target key end

     0   :  { %s782_s0 = inlined_call_operand.vmem [shape: bf16[256,128], index: 0, kind: input, shape index: {}]   ;;  %s783_s1 = inlined_call_operand.vmem [shape: f32[1,128], index: 1, kind: input, shape index: {}]   ;;  %s784_s2 = inlined_call_operand.vmem [shape: f32[1,128], index: 2, kind: input, shape index: {}]   ;;  %s785_s3 = inlined_call_operand.vmem [shape: bf16[256,128], index: 3, kind: output, shape index: {}]  }
   0x1   :  { %v419_v0 = vld [vmem:[%s782_s0] sm:$0xff]   ;;  %v562_v4 = vld [vmem:[%s782_s0 + $0x8] sm:$0xff]   ;;  %v563_v5 = vld [vmem:[%s782_s0 + $0x10] sm:$0xff]  }
   0x2   :  { %v618_v1 = vld [vmem:[%s783_s1] ss:$0 sm:$0xff]  ;;  %v420_v2 = vunpack.c.l.bf16 %v419_v0  ;;  %v421_v3 = vunpack.c.h.bf16 %v419_v0  ;;  %v564_v6 = vld [vmem:[%s782_s0 + $0x18] sm:$0xff]   ;;  %v424_v8 = vunpack.c.l.bf16 %v562_v4  ;;  %v425_v9 = vunpack.c.h.bf16 %v562_v4  ;;  %v566_v33 = vld [vmem:[%s782_s0 + $0x28] sm:$0xff]  }
   0x3   :  { %v632_v7 = vld [vmem:[%s784_s2] ss:$0 sm:$0xff]  ;;  %v428_v10 = vunpack.c.l.bf16 %v563_v5  ;;  %v429_v11 = vunpack.c.h.bf16 %v563_v5  ;;  %v432_v14 = vunpack.c.l.bf16 %v564_v6  ;;  %v433_v15 = vunpack.c.h.bf16 %v564_v6  ;;  %v567_v38 = vld [vmem:[%s782_s0 + $0x30] sm:$0xff]   ;;  %v568_v43 = vld [vmem:[%s782_s0 + $0x38] sm:$0xff]  }
   0x4   :  { %v85_v12 = vmul.f32 %v420_v2, %v618_v1  ;;  %v86_v13 = vmul.f32 %v421_v3, %v618_v1  ;;  %v87_v16 = vmul.f32 %v424_v8, %v618_v1  ;;  %v88_v17 = vmul.f32 %v425_v9, %v618_v1  ;;  %v565_v28 = vld [vmem:[%s782_s0 + $0x20] sm:$0xff]  }
   0x5   :  { %v89_v18 = vmul.f32 %v428_v10, %v618_v1  ;;  %v90_v19 = vmul.f32 %v429_v11, %v618_v1  ;;  %v91_v22 = vmul.f32 %v432_v14, %v618_v1  ;;  %v92_v23 = vmul.f32 %v433_v15, %v618_v1  ;;  %v569_v0 = vld [vmem:[%s782_s0 + $0x40] sm:$0xff]   ;;  %v570_v11 = vld [vmem:[%s782_s0 + $0x48] sm:$0xff]  }
   0x6   :  { %v124_v20 = vadd.f32 %v632_v7, %v85_v12  ;;  %v125_v21 = vadd.f32 %v632_v7, %v86_v13  ;;  %v126_v24 = vadd.f32 %v632_v7, %v87_v16  ;;  %v127_v25 = vadd.f32 %v632_v7, %v88_v17  ;;  %v571_v16 = vld [vmem:[%s782_s0 + $0x50] sm:$0xff]  }
   0x7   :  { %v128_v26 = vadd.f32 %v632_v7, %v89_v18  ;;  %v129_v27 = vadd.f32 %v632_v7, %v90_v19  ;;  %v130_v31 = vadd.f32 %v632_v7, %v91_v22  ;;  %v131_v32 = vadd.f32 %v632_v7, %v92_v23 }
   0x8   :  { %v156_v29 = vmax.f32 %v124_v20, 0.0  ;;  %v157_v30 = vmax.f32 %v125_v21, 0.0  ;;  %v158_v34 = vmax.f32 %v126_v24, 0.0  ;;  %v159_v35 = vmax.f32 %v127_v25, 0.0  ;;  %v572_v25 = vld [vmem:[%s782_s0 + $0x58] sm:$0xff]  }
   0x9   :  { %v160_v36 = vmax.f32 %v128_v26, 0.0  ;;  %v161_v37 = vmax.f32 %v129_v27, 0.0  ;;  %v162_v40 = vmax.f32 %v130_v31, 0.0  ;;  %v163_v41 = vmax.f32 %v131_v32, 0.0 }
   0xa   :  { %v485_v39 = vpack.c.bf16 %v157_v30, %v156_v29  ;;  %v436_v42 = vunpack.c.l.bf16 %v565_v28  ;;  %v490_v44 = vpack.c.bf16 %v159_v35, %v158_v34  ;;  %v437_v46 = vunpack.c.h.bf16 %v565_v28 }
   0xb   :  { %v495_v45 = vpack.c.bf16 %v161_v37, %v160_v36  ;;  %v440_v47 = vunpack.c.l.bf16 %v566_v33  ;;  %v500_v48 = vpack.c.bf16 %v163_v41, %v162_v40  ;;  %v441_v50 = vunpack.c.h.bf16 %v566_v33 }
   0xc   :  { %486 = vst [vmem:[%s785_s3] sm:$0xff] %v485_v39   ;;  %v93_v49 = vmul.f32 %v436_v42, %v618_v1  ;;  %v444_v51 = vunpack.c.l.bf16 %v567_v38  ;;  %577 = vst [vmem:[%s785_s3 + $0x8] sm:$0xff] %v490_v44   ;;  %v94_v52 = vmul.f32 %v437_v46, %v618_v1  ;;  %v445_v54 = vunpack.c.h.bf16 %v567_v38  ;;  %v573_v38 = vld [vmem:[%s782_s0 + $0x60] sm:$0xff]  }
   0xd   :  { %578 = vst [vmem:[%s785_s3 + $0x10] sm:$0xff] %v495_v45   ;;  %v95_v53 = vmul.f32 %v440_v47, %v618_v1  ;;  %v448_v55 = vunpack.c.l.bf16 %v568_v43  ;;  %579 = vst [vmem:[%s785_s3 + $0x18] sm:$0xff] %v500_v48   ;;  %v96_v57 = vmul.f32 %v441_v50, %v618_v1  ;;  %v449_v59 = vunpack.c.h.bf16 %v568_v43 }
   0xe   :  { %v132_v56 = vadd.f32 %v632_v7, %v93_v49  ;;  %v97_v58 = vmul.f32 %v444_v51, %v618_v1  ;;  %v133_v60 = vadd.f32 %v632_v7, %v94_v52  ;;  %v98_v62 = vmul.f32 %v445_v54, %v618_v1  ;;  %v574_v51 = vld [vmem:[%s782_s0 + $0x68] sm:$0xff]  }
   0xf   :  { %v134_v61 = vadd.f32 %v632_v7, %v95_v53  ;;  %v99_v63 = vmul.f32 %v448_v55, %v618_v1  ;;  %v135_v3 = vadd.f32 %v632_v7, %v96_v57  ;;  %v100_v5 = vmul.f32 %v449_v59, %v618_v1 }
  0x10   :  { %v164_v2 = vmax.f32 %v132_v56, 0.0  ;;  %v136_v4 = vadd.f32 %v632_v7, %v97_v58  ;;  %v165_v6 = vmax.f32 %v133_v60, 0.0  ;;  %v137_v9 = vadd.f32 %v632_v7, %v98_v62  ;;  %v575_v60 = vld [vmem:[%s782_s0 + $0x70] sm:$0xff]  }
  0x11   :  { %v166_v8 = vmax.f32 %v134_v61, 0.0  ;;  %v138_v10 = vadd.f32 %v632_v7, %v99_v63  ;;  %v167_v12 = vmax.f32 %v135_v3, 0.0  ;;  %v139_v14 = vadd.f32 %v632_v7, %v100_v5 }
  0x12   :  { %v168_v13 = vmax.f32 %v136_v4, 0.0  ;;  %v452_v15 = vunpack.c.l.bf16 %v569_v0  ;;  %v505_v17 = vpack.c.bf16 %v165_v6, %v164_v2  ;;  %v169_v18 = vmax.f32 %v137_v9, 0.0  ;;  %v576_v2 = vld [vmem:[%s782_s0 + $0x78] sm:$0xff]  }
  0x13   :  { %v170_v19 = vmax.f32 %v138_v10, 0.0  ;;  %v453_v20 = vunpack.c.h.bf16 %v569_v0  ;;  %v510_v21 = vpack.c.bf16 %v167_v12, %v166_v8  ;;  %v171_v22 = vmax.f32 %v139_v14, 0.0 }
  0x14   :  { %v101_v23 = vmul.f32 %v452_v15, %v618_v1  ;;  %v456_v24 = vunpack.c.l.bf16 %v570_v11  ;;  %580 = vst [vmem:[%s785_s3 + $0x20] sm:$0xff] %v505_v17   ;;  %v515_v26 = vpack.c.bf16 %v169_v18, %v168_v13  ;;  %v457_v28 = vunpack.c.h.bf16 %v570_v11 }
  0x15   :  { %v102_v27 = vmul.f32 %v453_v20, %v618_v1  ;;  %v460_v29 = vunpack.c.l.bf16 %v571_v16  ;;  %581 = vst [vmem:[%s785_s3 + $0x28] sm:$0xff] %v510_v21   ;;  %v520_v30 = vpack.c.bf16 %v171_v22, %v170_v19  ;;  %v461_v33 = vunpack.c.h.bf16 %v571_v16 }
  0x16   :  { %v140_v31 = vadd.f32 %v632_v7, %v101_v23  ;;  %v103_v32 = vmul.f32 %v456_v24, %v618_v1  ;;  %582 = vst [vmem:[%s785_s3 + $0x30] sm:$0xff] %v515_v26   ;;  %v104_v35 = vmul.f32 %v457_v28, %v618_v1  ;;  %v464_v37 = vunpack.c.l.bf16 %v572_v25 }
  0x17   :  { %v141_v34 = vadd.f32 %v632_v7, %v102_v27  ;;  %v105_v36 = vmul.f32 %v460_v29, %v618_v1  ;;  %583 = vst [vmem:[%s785_s3 + $0x38] sm:$0xff] %v520_v30   ;;  %v106_v41 = vmul.f32 %v461_v33, %v618_v1  ;;  %v465_v42 = vunpack.c.h.bf16 %v572_v25 }
  0x18   :  { %v172_v39 = vmax.f32 %v140_v31, 0.0  ;;  %v142_v40 = vadd.f32 %v632_v7, %v103_v32  ;;  %v143_v44 = vadd.f32 %v632_v7, %v104_v35  ;;  %v107_v46 = vmul.f32 %v464_v37, %v618_v1 }
  0x19   :  { %v173_v43 = vmax.f32 %v141_v34, 0.0  ;;  %v144_v45 = vadd.f32 %v632_v7, %v105_v36  ;;  %v145_v48 = vadd.f32 %v632_v7, %v106_v41  ;;  %v108_v49 = vmul.f32 %v465_v42, %v618_v1 }
  0x1a   :  { %v174_v47 = vmax.f32 %v142_v40, 0.0  ;;  %v468_v50 = vunpack.c.l.bf16 %v573_v38  ;;  %v175_v53 = vmax.f32 %v143_v44, 0.0  ;;  %v146_v55 = vadd.f32 %v632_v7, %v107_v46 }
  0x1b   :  { %v525_v52 = vpack.c.bf16 %v173_v43, %v172_v39  ;;  %v176_v54 = vmax.f32 %v144_v45, 0.0  ;;  %v177_v56 = vmax.f32 %v145_v48, 0.0  ;;  %v147_v57 = vadd.f32 %v632_v7, %v108_v49 }
  0x1c   :  { %v469_v58 = vunpack.c.h.bf16 %v573_v38  ;;  %v109_v59 = vmul.f32 %v468_v50, %v618_v1  ;;  %v530_v61 = vpack.c.bf16 %v175_v53, %v174_v47  ;;  %v178_v62 = vmax.f32 %v146_v55, 0.0 }
  0x1d   :  { %584 = vst [vmem:[%s785_s3 + $0x40] sm:$0xff] %v525_v52   ;;  %v472_v63 = vunpack.c.l.bf16 %v574_v51  ;;  %v473_v0 = vunpack.c.h.bf16 %v574_v51  ;;  %v535_v3 = vpack.c.bf16 %v177_v56, %v176_v54  ;;  %v179_v4 = vmax.f32 %v147_v57, 0.0 }
  0x1e   :  { %v110_v5 = vmul.f32 %v469_v58, %v618_v1  ;;  %v148_v6 = vadd.f32 %v632_v7, %v109_v59  ;;  %585 = vst [vmem:[%s785_s3 + $0x48] sm:$0xff] %v530_v61   ;;  %v476_v10 = vunpack.c.l.bf16 %v575_v60  ;;  %v477_v11 = vunpack.c.h.bf16 %v575_v60 }
  0x1f   :  { %v111_v8 = vmul.f32 %v472_v63, %v618_v1  ;;  %v112_v9 = vmul.f32 %v473_v0, %v618_v1  ;;  %586 = vst [vmem:[%s785_s3 + $0x50] sm:$0xff] %v535_v3   ;;  %v540_v12 = vpack.c.bf16 %v179_v4, %v178_v62  ;;  %v480_v15 = vunpack.c.l.bf16 %v576_v2 }
  0x20   :  { %v149_v13 = vadd.f32 %v632_v7, %v110_v5  ;;  %v180_v14 = vmax.f32 %v148_v6, 0.0  ;;  %v113_v18 = vmul.f32 %v476_v10, %v618_v1  ;;  %v114_v19 = vmul.f32 %v477_v11, %v618_v1 }
  0x21   :  { %v150_v16 = vadd.f32 %v632_v7, %v111_v8  ;;  %v151_v17 = vadd.f32 %v632_v7, %v112_v9  ;;  %587 = vst [vmem:[%s785_s3 + $0x58] sm:$0xff] %v540_v12   ;;  %v481_v21 = vunpack.c.h.bf16 %v576_v2  ;;  %v115_v22 = vmul.f32 %v480_v15, %v618_v1 }
  0x22   :  { %v181_v20 = vmax.f32 %v149_v13, 0.0  ;;  %v152_v25 = vadd.f32 %v632_v7, %v113_v18  ;;  %v153_v26 = vadd.f32 %v632_v7, %v114_v19 }
  0x23   :  { %v182_v23 = vmax.f32 %v150_v16, 0.0  ;;  %v183_v24 = vmax.f32 %v151_v17, 0.0  ;;  %v116_v28 = vmul.f32 %v481_v21, %v618_v1  ;;  %v154_v29 = vadd.f32 %v632_v7, %v115_v22 }
  0x24   :  { %v545_v27 = vpack.c.bf16 %v181_v20, %v180_v14  ;;  %v184_v31 = vmax.f32 %v152_v25, 0.0  ;;  %v185_v32 = vmax.f32 %v153_v26, 0.0 }
  0x25   :  { %v550_v30 = vpack.c.bf16 %v183_v24, %v182_v23  ;;  %v155_v33 = vadd.f32 %v632_v7, %v116_v28  ;;  %v186_v34 = vmax.f32 %v154_v29, 0.0 }
  0x26   :  { %588 = vst [vmem:[%s785_s3 + $0x60] sm:$0xff] %v545_v27   ;;  %v555_v35 = vpack.c.bf16 %v185_v32, %v184_v31 }
  0x27   :  { %589 = vst [vmem:[%s785_s3 + $0x68] sm:$0xff] %v550_v30   ;;  %v187_v36 = vmax.f32 %v155_v33, 0.0 }
  0x28   :  { %590 = vst [vmem:[%s785_s3 + $0x70] sm:$0xff] %v555_v35  }
  0x29   :  { %v560_v1 = vpack.c.bf16 %v187_v36, %v186_v34 }
  0x2b   :  { %591 = vst [vmem:[%s785_s3 + $0x78] sm:$0xff] %v560_v1  }

// kernel: cdck5_forward.10
= control target key start
LH: loop header
LB: loop body
LE: loop exit
PB: predicated region body
PF: predicated region fallthrough
CT: control target
= control target key end

     0   :  { %vm183_vm0 = vcmask 1043456   ;;  %vm134_vm1 = vcmask 64512   ;;  %v895_v18 = vmov 0.0   ;;  %s1114_s1 = inlined_call_operand.vmem [shape: bf16[8,128], index: 1, kind: input, shape index: {}]   ;;  %s1115_s0 = inlined_call_operand.vmem [shape: bf16[256,8], index: 0, kind: input, shape index: {}]   ;;  %s1116_s3 = inlined_call_operand.vmem [shape: f32[1,128], index: 3, kind: output, shape index: {1}]   ;;  %s1117_s4 = inlined_call_operand.vmem [shape: f32[1,128], index: 4, kind: output, shape index: {2}]   ;;  %s1118_s2 = inlined_call_operand.vmem [shape: bf16[256,128], index: 2, kind: output, shape index: {0}]  }
   0x1   :  { %v53_v0 = vld [vmem:[%s1114_s1] sm:$0xf]  ;;  %v880_v3 = vld [vmem:[%s1115_s0 + $0x8] sm:$0xff]   ;;  %v881_v4 = vld [vmem:[%s1115_s0 + $0x10] sm:$0xff]   ;;  %19 = vst [vmem:[%s1116_s3] sm:$0x1] %v895_v18 }
   0x2   :  { %876 = vmatprep.subr.msk.bf16.mxu0 %vm183_vm0, %v53_v0  ;;  %v185_v1 = vsel %vm183_vm0, %v53_v0, 0  ;;  %v879_v2 = vld [vmem:[%s1115_s0] sm:$0xff]   ;;  %877 = vmatprep.subr.msk.bf16.mxu1 %vm183_vm0, %v53_v0  ;;  %v882_v5 = vld [vmem:[%s1115_s0 + $0x18] sm:$0xff]   ;;  %v888_v8 = vld [vmem:[%s1115_s0 + $0x48] sm:$0xff]   ;;  %20 = vst [vmem:[%s1117_s4] sm:$0x1] %v895_v18 }
   0x3   :  { %841 = vmatpush3.bf16.msra.mxu0 %v185_v1  ;;  %875 = vmatpush3.bf16.msra.mxu1 %v185_v1  ;;  %v883_v6 = vld [vmem:[%s1115_s0 + $0x20] sm:$0xff]   ;;  %v889_v9 = vld [vmem:[%s1115_s0 + $0x50] sm:$0xff]   ;;  %v890_v10 = vld [vmem:[%s1115_s0 + $0x58] sm:$0xff]  }
   0x4   :  { %842 = vmatprep.mubr.msk.bf16.mxu0 %vm134_vm1, %v879_v2  ;;  %v887_v7 = vld [vmem:[%s1115_s0 + $0x40] sm:$0xff]   ;;  %v884_v11 = vld [vmem:[%s1115_s0 + $0x28] sm:$0xff]   ;;  %v885_v13 = vld [vmem:[%s1115_s0 + $0x30] sm:$0xff]  }
   0x5   :  { %858 = vmatprep.mubr.msk.bf16.mxu1 %vm134_vm1, %v887_v7  ;;  %v891_v12 = vld [vmem:[%s1115_s0 + $0x60] sm:$0xff]   ;;  %v892_v14 = vld [vmem:[%s1115_s0 + $0x68] sm:$0xff]   ;;  %v886_v15 = vld [vmem:[%s1115_s0 + $0x38] sm:$0xff]  }
   0x6   :  { %843 = vmatmul.mubr.msk.bf16.vlgmr.msra.gmra.mrb[0].mxu0 %vm134_vm1, %v880_v3  ;;  %859 = vmatmul.mubr.msk.bf16.vlgmr.msra.gmra.mrb[0].mxu1 %vm134_vm1, %v888_v8  ;;  %v893_v16 = vld [vmem:[%s1115_s0 + $0x70] sm:$0xff]   ;;  %v894_v17 = vld [vmem:[%s1115_s0 + $0x78] sm:$0xff]  }
   0x7   :  { %846 = vmatprep.mubr.msk.bf16.mxu0 %vm134_vm1, %v881_v4  ;;  %862 = vmatprep.mubr.msk.bf16.mxu1 %vm134_vm1, %v889_v9 }
   0xe   :  { %847 = vmatmul.mubr.msk.bf16.gmra.mrb[4].mxu0 %vm134_vm1, %v882_v5  ;;  %863 = vmatmul.mubr.msk.bf16.gmra.mrb[4].mxu1 %vm134_vm1, %v890_v10 }
   0xf   :  { %850 = vmatprep.mubr.msk.bf16.mxu0 %vm134_vm1, %v883_v6  ;;  %866 = vmatprep.mubr.msk.bf16.mxu1 %vm134_vm1, %v891_v12 }
  0x16   :  { %851 = vmatmul.mubr.msk.bf16.gmra.mrb[8].mxu0 %vm134_vm1, %v884_v11  ;;  %867 = vmatmul.mubr.msk.bf16.gmra.mrb[8].mxu1 %vm134_vm1, %v892_v14 }
  0x17   :  { %854 = vmatprep.mubr.msk.bf16.mxu0 %vm134_vm1, %v885_v13  ;;  %870 = vmatprep.mubr.msk.bf16.mxu1 %vm134_vm1, %v893_v16 }
  0x1e   :  { %855 = vmatmul.mubr.msk.bf16.gmra.mrb[12].mxu0 %vm134_vm1, %v886_v15  ;;  %871 = vmatmul.mubr.msk.bf16.gmra.mrb[12].mxu1 %vm134_vm1, %v894_v17 }
  0xd9   :  { %v844_v19 = vpop.f32.mrb[0].mxu0  ;;  %v1000_v31 = vpop.f32.mrb[0].mxu1 }
  0xda   :  { %v221_v20 = vpop.f32.mrb[1].mxu0  ;;  %v551_v28 = vmul.f32 %v844_v19, %v844_v19  ;;  %v1002_v36 = vpop.f32.mrb[1].mxu1 }
  0xdb   :  { %v845_v21 = vpop.f32.mrb[2].mxu0  ;;  %v549_v24 = vmul.f32 %v221_v20, %v221_v20  ;;  %v1004_v38 = vpop.f32.mrb[2].mxu1 }
  0xdc   :  { %v736_v22 = vpack.c.bf16 %v845_v21, %v844_v19  ;;  %v224_v23 = vpop.f32.mrb[3].mxu0  ;;  %v552_v32 = vmul.f32 %v845_v21, %v845_v21  ;;  %v776_v43 = vpack.c.bf16 %v1004_v38, %v1000_v31  ;;  %v1008_v44 = vpop.f32.mrb[3].mxu1 }
  0xdd   :  { %v731_v25 = vpack.c.bf16 %v224_v23, %v221_v20  ;;  %v509_v26 = vadd.f32 %v224_v23, %v221_v20  ;;  %v550_v27 = vmul.f32 %v224_v23, %v224_v23  ;;  %v771_v47 = vpack.c.bf16 %v1008_v44, %v1002_v36 }
  0xde   :  { %808 = vst [vmem:[%s1118_s2 + $0x8] sm:$0xff] %v736_v22   ;;  %816 = vst [vmem:[%s1118_s2 + $0x48] sm:$0xff] %v776_v43  }
  0xdf   :  { %732 = vst [vmem:[%s1118_s2] sm:$0xff] %v731_v25   ;;  %v510_v29 = vadd.f32 %v844_v19, %v509_v26  ;;  %v581_v30 = vadd.f32 %v550_v27, %v549_v24  ;;  %815 = vst [vmem:[%s1118_s2 + $0x40] sm:$0xff] %v771_v47   ;;  %v565_v47 = vmul.f32 %v1002_v36, %v1002_v36 }
  0xe1   :  { %v582_v33 = vadd.f32 %v581_v30, %v551_v28  ;;  %v848_v34 = vpop.f32.mrb[4].mxu0  ;;  %v511_v35 = vadd.f32 %v845_v21, %v510_v29  ;;  %v1024_v55 = vpop.f32.mrb[4].mxu1 }
  0xe2   :  { %v237_v37 = vpop.f32.mrb[5].mxu0  ;;  %v555_v52 = vmul.f32 %v848_v34, %v848_v34  ;;  %v1026_v60 = vpop.f32.mrb[5].mxu1 }
  0xe3   :  { %v512_v39 = vadd.f32 %v511_v35, %v237_v37  ;;  %v553_v40 = vmul.f32 %v237_v37, %v237_v37  ;;  %v583_v41 = vadd.f32 %v582_v33, %v552_v32  ;;  %v849_v42 = vpop.f32.mrb[6].mxu0  ;;  %v1028_v62 = vpop.f32.mrb[6].mxu1 }
  0xe4   :  { %v746_v45 = vpack.c.bf16 %v849_v42, %v848_v34  ;;  %v240_v46 = vpop.f32.mrb[7].mxu0  ;;  %v556_v56 = vmul.f32 %v849_v42, %v849_v42  ;;  %v786_v3 = vpack.c.bf16 %v1028_v62, %v1024_v55  ;;  %v1032_v4 = vpop.f32.mrb[7].mxu1 }
  0xe5   :  { %v584_v48 = vadd.f32 %v583_v41, %v553_v40  ;;  %v741_v49 = vpack.c.bf16 %v240_v46, %v237_v37  ;;  %v513_v50 = vadd.f32 %v512_v39, %v240_v46  ;;  %v554_v51 = vmul.f32 %v240_v46, %v240_v46 }
  0xe6   :  { %810 = vst [vmem:[%s1118_s2 + $0x18] sm:$0xff] %v746_v45   ;;  %v781_v7 = vpack.c.bf16 %v1032_v4, %v1026_v60  ;;  %818 = vst [vmem:[%s1118_s2 + $0x58] sm:$0xff] %v786_v3  }
  0xe7   :  { %809 = vst [vmem:[%s1118_s2 + $0x10] sm:$0xff] %v741_v49   ;;  %v514_v53 = vadd.f32 %v848_v34, %v513_v50  ;;  %v585_v54 = vadd.f32 %v584_v48, %v554_v51 }
  0xe8   :  { %817 = vst [vmem:[%s1118_s2 + $0x50] sm:$0xff] %v781_v7   ;;  %v570_v7 = vmul.f32 %v1032_v4, %v1032_v4 }
  0xe9   :  { %v586_v57 = vadd.f32 %v585_v54, %v555_v52  ;;  %v852_v58 = vpop.f32.mrb[8].mxu0  ;;  %v515_v59 = vadd.f32 %v849_v42, %v514_v53  ;;  %v1048_v15 = vpop.f32.mrb[8].mxu1 }
  0xea   :  { %v253_v61 = vpop.f32.mrb[9].mxu0  ;;  %v559_v12 = vmul.f32 %v852_v58, %v852_v58  ;;  %v317_v20 = vpop.f32.mrb[9].mxu1 }
  0xeb   :  { %v516_v63 = vadd.f32 %v515_v59, %v253_v61  ;;  %v557_v0 = vmul.f32 %v253_v61, %v253_v61  ;;  %v587_v1 = vadd.f32 %v586_v57, %v556_v56  ;;  %v853_v2 = vpop.f32.mrb[10].mxu0  ;;  %v1050_v22 = vpop.f32.mrb[10].mxu1 }
  0xec   :  { %v756_v5 = vpack.c.bf16 %v853_v2, %v852_v58  ;;  %v256_v6 = vpop.f32.mrb[11].mxu0  ;;  %v560_v16 = vmul.f32 %v853_v2, %v853_v2  ;;  %v796_v27 = vpack.c.bf16 %v1050_v22, %v1048_v15  ;;  %v320_v28 = vpop.f32.mrb[11].mxu1 }
  0xed   :  { %v588_v8 = vadd.f32 %v587_v1, %v557_v0  ;;  %v751_v9 = vpack.c.bf16 %v256_v6, %v253_v61  ;;  %v517_v10 = vadd.f32 %v516_v63, %v256_v6  ;;  %v558_v11 = vmul.f32 %v256_v6, %v256_v6 }
  0xee   :  { %812 = vst [vmem:[%s1118_s2 + $0x28] sm:$0xff] %v756_v5   ;;  %v791_v32 = vpack.c.bf16 %v320_v28, %v317_v20  ;;  %820 = vst [vmem:[%s1118_s2 + $0x68] sm:$0xff] %v796_v27   ;;  %v568_v63 = vmul.f32 %v1004_v38, %v1004_v38  ;;  %v569_v1 = vmul.f32 %v1026_v60, %v1026_v60 }
  0xef   :  { %811 = vst [vmem:[%s1118_s2 + $0x20] sm:$0xff] %v751_v9   ;;  %v518_v13 = vadd.f32 %v852_v58, %v517_v10  ;;  %v589_v14 = vadd.f32 %v588_v8, %v558_v11  ;;  %v566_v58 = vmul.f32 %v1008_v44, %v1008_v44 }
  0xf0   :  { %819 = vst [vmem:[%s1118_s2 + $0x60] sm:$0xff] %v791_v32  }
  0xf1   :  { %v590_v17 = vadd.f32 %v589_v14, %v559_v12  ;;  %v856_v18 = vpop.f32.mrb[12].mxu0  ;;  %v519_v19 = vadd.f32 %v853_v2, %v518_v13  ;;  %v872_v42 = vpop.f32.mrb[12].mxu1 }
  0xf2   :  { %v269_v21 = vpop.f32.mrb[13].mxu0  ;;  %v563_v39 = vmul.f32 %v856_v18, %v856_v18  ;;  %v333_v48 = vpop.f32.mrb[13].mxu1 }
  0xf3   :  { %v520_v23 = vadd.f32 %v519_v19, %v269_v21  ;;  %v561_v24 = vmul.f32 %v269_v21, %v269_v21  ;;  %v591_v25 = vadd.f32 %v590_v17, %v560_v16  ;;  %v857_v26 = vpop.f32.mrb[14].mxu0  ;;  %v873_v49 = vpop.f32.mrb[14].mxu1  ;;  %v574_v17 = vmul.f32 %v320_v28, %v320_v28 }
  0xf4   :  { %v766_v29 = vpack.c.bf16 %v857_v26, %v856_v18  ;;  %v272_v30 = vpop.f32.mrb[15].mxu0  ;;  %v564_v43 = vmul.f32 %v857_v26, %v857_v26  ;;  %v806_v52 = vpack.c.bf16 %v873_v49, %v872_v42  ;;  %v336_v53 = vpop.f32.mrb[15].mxu1  ;;  %v580_v32 = vmul.f32 %v873_v49, %v873_v49 }
  0xf5   :  { %v592_v33 = vadd.f32 %v591_v25, %v561_v24  ;;  %v761_v34 = vpack.c.bf16 %v272_v30, %v269_v21  ;;  %v521_v35 = vadd.f32 %v520_v23, %v272_v30  ;;  %v562_v37 = vmul.f32 %v272_v30, %v272_v30 }
  0xf6   :  { %814 = vst [vmem:[%s1118_s2 + $0x38] sm:$0xff] %v766_v29   ;;  %v801_v54 = vpack.c.bf16 %v336_v53, %v333_v48  ;;  %822 = vst [vmem:[%s1118_s2 + $0x78] sm:$0xff] %v806_v52   ;;  %v577_v24 = vmul.f32 %v333_v48, %v333_v48  ;;  %v578_v27 = vmul.f32 %v336_v53, %v336_v53 }
  0xf7   :  { %813 = vst [vmem:[%s1118_s2 + $0x30] sm:$0xff] %v761_v34   ;;  %v522_v40 = vadd.f32 %v856_v18, %v521_v35  ;;  %v593_v41 = vadd.f32 %v592_v33, %v562_v37  ;;  %v579_v29 = vmul.f32 %v872_v42, %v872_v42 }
  0xf8   :  { %821 = vst [vmem:[%s1118_s2 + $0x70] sm:$0xff] %v801_v54  }
  0xf9   :  { %v594_v45 = vadd.f32 %v593_v41, %v563_v39  ;;  %v523_v46 = vadd.f32 %v857_v26, %v522_v40 }
  0xfb   :  { %v524_v50 = vadd.f32 %v523_v46, %v1002_v36  ;;  %v595_v51 = vadd.f32 %v594_v45, %v564_v43  ;;  %v567_v36 = vmul.f32 %v1000_v31, %v1000_v31 }
  0xfd   :  { %v596_v56 = vadd.f32 %v595_v51, %v565_v47  ;;  %v525_v57 = vadd.f32 %v524_v50, %v1008_v44  ;;  %v508_v47 = vld [vmem:[%s1116_s3] sm:$0x1] }
  0xff   :  { %v526_v59 = vadd.f32 %v1000_v31, %v525_v57  ;;  %v597_v61 = vadd.f32 %v596_v56, %v566_v58  ;;  %v571_v31 = vmul.f32 %v1024_v55, %v1024_v55 }
 0x101   :  { %v598_v0 = vadd.f32 %v597_v61, %v567_v36  ;;  %v527_v44 = vadd.f32 %v1004_v38, %v526_v59  ;;  %v572_v38 = vmul.f32 %v1028_v62, %v1028_v62 }
 0x103   :  { %v528_v2 = vadd.f32 %v527_v44, %v1026_v60  ;;  %v599_v3 = vadd.f32 %v598_v0, %v568_v63  ;;  %v573_v60 = vmul.f32 %v317_v20, %v317_v20 }
 0x105   :  { %v600_v5 = vadd.f32 %v599_v3, %v569_v1  ;;  %v529_v6 = vadd.f32 %v528_v2, %v1032_v4  ;;  %v575_v4 = vmul.f32 %v1048_v15, %v1048_v15 }
 0x107   :  { %v530_v8 = vadd.f32 %v1024_v55, %v529_v6  ;;  %v601_v9 = vadd.f32 %v600_v5, %v570_v7  ;;  %v576_v55 = vmul.f32 %v1050_v22, %v1050_v22 }
 0x109   :  { %v602_v10 = vadd.f32 %v601_v9, %v571_v31  ;;  %v531_v11 = vadd.f32 %v1028_v62, %v530_v8 }
 0x10b   :  { %v532_v12 = vadd.f32 %v531_v11, %v317_v20  ;;  %v603_v13 = vadd.f32 %v602_v10, %v572_v38 }
 0x10d   :  { %v604_v14 = vadd.f32 %v603_v13, %v573_v60  ;;  %v533_v16 = vadd.f32 %v532_v12, %v320_v28 }
 0x10f   :  { %v534_v18 = vadd.f32 %v1048_v15, %v533_v16  ;;  %v605_v19 = vadd.f32 %v604_v14, %v574_v17 }
 0x111   :  { %v606_v21 = vadd.f32 %v605_v19, %v575_v4  ;;  %v535_v23 = vadd.f32 %v1050_v22, %v534_v18 }
 0x113   :  { %v536_v62 = vadd.f32 %v535_v23, %v333_v48  ;;  %v607_v25 = vadd.f32 %v606_v21, %v576_v55 }
 0x115   :  { %v608_v20 = vadd.f32 %v607_v25, %v577_v24  ;;  %v537_v26 = vadd.f32 %v536_v62, %v336_v53 }
 0x117   :  { %v538_v28 = vadd.f32 %v872_v42, %v537_v26  ;;  %v609_v30 = vadd.f32 %v608_v20, %v578_v27 }
 0x119   :  { %v539_v33 = vadd.f32 %v873_v49, %v538_v28  ;;  %v610_v34 = vadd.f32 %v609_v30, %v579_v29  ;;  %v548_v49 = vld [vmem:[%s1117_s4] sm:$0x1] }
 0x11b   :  { %v540_v15 = vrot.slane %v539_v33, 4  ;;  %v611_v35 = vadd.f32 %v610_v34, %v580_v32 }
 0x11d   :  { %v541_v37 = vadd.f32 %v540_v15, %v539_v33  ;;  %v612_v39 = vrot.slane %v611_v35, 4 }
 0x11f   :  { %v542_v40 = vrot.slane %v541_v37, 2  ;;  %v613_v41 = vadd.f32 %v612_v39, %v611_v35 }
 0x121   :  { %v543_v43 = vadd.f32 %v542_v40, %v541_v37  ;;  %v614_v22 = vrot.slane %v613_v41, 2 }
 0x123   :  { %v544_v45 = vrot.slane %v543_v43, 1  ;;  %v615_v46 = vadd.f32 %v614_v22, %v613_v41 }
 0x125   :  { %v545_v48 = vadd.f32 %v544_v45, %v543_v43  ;;  %v616_v42 = vrot.slane %v615_v46, 1 }
 0x127   :  { %v546_v50 = vadd.f32 %v545_v48, %v508_v47  ;;  %v617_v51 = vadd.f32 %v616_v42, %v615_v46 }
 0x129   :  { %547 = vst [vmem:[%s1116_s3] sm:$0x1] %v546_v50  ;;  %v618_v52 = vadd.f32 %v617_v51, %v548_v49 }
 0x12b   :  { %619 = vst [vmem:[%s1117_s4] sm:$0x1] %v618_v52 }

// kernel: cdck5_forward.13
= control target key start
LH: loop header
LB: loop body
LE: loop exit
PB: predicated region body
PF: predicated region fallthrough
CT: control target
= control target key end

     0   :  { %s222_s0 = inlined_call_operand.vmem [shape: bf16[64,128], index: 0, kind: input, shape index: {}]   ;;  %s223_s1 = inlined_call_operand.vmem [shape: f32[1,128], index: 1, kind: input, shape index: {}]   ;;  %s224_s2 = inlined_call_operand.vmem [shape: f32[1,128], index: 2, kind: input, shape index: {}]   ;;  %s225_s3 = inlined_call_operand.vmem [shape: bf16[64,128], index: 3, kind: output, shape index: {}]  }
   0x1   :  { %v131_v0 = vld [vmem:[%s222_s0] sm:$0xff]   ;;  %v166_v4 = vld [vmem:[%s222_s0 + $0x8] sm:$0xff]   ;;  %v167_v5 = vld [vmem:[%s222_s0 + $0x10] sm:$0xff]  }
   0x2   :  { %v112_v1 = vld [vmem:[%s223_s1] ss:$0 sm:$0xff]  ;;  %v132_v2 = vunpack.c.l.bf16 %v131_v0  ;;  %v133_v3 = vunpack.c.h.bf16 %v131_v0  ;;  %v168_v6 = vld [vmem:[%s222_s0 + $0x18] sm:$0xff]   ;;  %v136_v8 = vunpack.c.l.bf16 %v166_v4  ;;  %v137_v9 = vunpack.c.h.bf16 %v166_v4 }
   0x3   :  { %v113_v7 = vld [vmem:[%s224_s2] ss:$0 sm:$0xff]  ;;  %v140_v10 = vunpack.c.l.bf16 %v167_v5  ;;  %v141_v11 = vunpack.c.h.bf16 %v167_v5  ;;  %v144_v14 = vunpack.c.l.bf16 %v168_v6  ;;  %v145_v15 = vunpack.c.h.bf16 %v168_v6 }
   0x4   :  { %v37_v12 = vmul.f32 %v132_v2, %v112_v1  ;;  %v38_v13 = vmul.f32 %v133_v3, %v112_v1  ;;  %v39_v16 = vmul.f32 %v136_v8, %v112_v1  ;;  %v40_v17 = vmul.f32 %v137_v9, %v112_v1 }
   0x5   :  { %v41_v18 = vmul.f32 %v140_v10, %v112_v1  ;;  %v42_v19 = vmul.f32 %v141_v11, %v112_v1  ;;  %v43_v22 = vmul.f32 %v144_v14, %v112_v1  ;;  %v44_v23 = vmul.f32 %v145_v15, %v112_v1 }
   0x6   :  { %v52_v20 = vadd.f32 %v113_v7, %v37_v12  ;;  %v53_v21 = vadd.f32 %v113_v7, %v38_v13  ;;  %v54_v24 = vadd.f32 %v113_v7, %v39_v16  ;;  %v55_v25 = vadd.f32 %v113_v7, %v40_v17 }
   0x7   :  { %v56_v26 = vadd.f32 %v113_v7, %v41_v18  ;;  %v57_v27 = vadd.f32 %v113_v7, %v42_v19  ;;  %v58_v30 = vadd.f32 %v113_v7, %v43_v22  ;;  %v59_v31 = vadd.f32 %v113_v7, %v44_v23 }
   0x8   :  { %v60_v28 = vmax.f32 %v52_v20, 0.0  ;;  %v61_v29 = vmax.f32 %v53_v21, 0.0  ;;  %v62_v32 = vmax.f32 %v54_v24, 0.0  ;;  %v63_v33 = vmax.f32 %v55_v25, 0.0 }
   0x9   :  { %v64_v34 = vmax.f32 %v56_v26, 0.0  ;;  %v65_v35 = vmax.f32 %v57_v27, 0.0  ;;  %v66_v37 = vmax.f32 %v58_v30, 0.0  ;;  %v67_v38 = vmax.f32 %v59_v31, 0.0 }
   0xa   :  { %v149_v36 = vpack.c.bf16 %v61_v29, %v60_v28  ;;  %v154_v39 = vpack.c.bf16 %v63_v33, %v62_v32 }
   0xb   :  { %v159_v40 = vpack.c.bf16 %v65_v35, %v64_v34  ;;  %v164_v41 = vpack.c.bf16 %v67_v38, %v66_v37 }
   0xc   :  { %150 = vst [vmem:[%s225_s3] sm:$0xff] %v149_v36   ;;  %169 = vst [vmem:[%s225_s3 + $0x8] sm:$0xff] %v154_v39  }
   0xd   :  { %170 = vst [vmem:[%s225_s3 + $0x10] sm:$0xff] %v159_v40   ;;  %171 = vst [vmem:[%s225_s3 + $0x18] sm:$0xff] %v164_v41  }

// kernel: cdck5_forward.12
= control target key start
LH: loop header
LB: loop body
LE: loop exit
PB: predicated region body
PF: predicated region fallthrough
CT: control target
= control target key end

     0   :  { %v819_v48 = vmov 0.0   ;;  %s1019_s1 = inlined_call_operand.vmem [shape: bf16[512,128], index: 1, kind: input, shape index: {}]   ;;  %s1020_s0 = inlined_call_operand.vmem [shape: bf16[64,512], index: 0, kind: input, shape index: {}]   ;;  %s1021_s3 = inlined_call_operand.vmem [shape: f32[1,128], index: 3, kind: output, shape index: {1}]   ;;  %s1022_s4 = inlined_call_operand.vmem [shape: f32[1,128], index: 4, kind: output, shape index: {2}]   ;;  %s1023_s2 = inlined_call_operand.vmem [shape: bf16[64,128], index: 2, kind: output, shape index: {0}]  }
   0x1   :  { %v763_v0 = vld [vmem:[%s1019_s1 + $0x40] sm:$0xff]   ;;  %v767_v4 = vld [vmem:[%s1019_s1 + $0x48] sm:$0xff]   ;;  %v771_v8 = vld [vmem:[%s1019_s1 + $0x50] sm:$0xff]   ;;  %19 = vst [vmem:[%s1021_s3] sm:$0x1] %v819_v48 }
   0x2   :  { %v764_v1 = vld [vmem:[%s1019_s1 + $0xc0] sm:$0xff]   ;;  %682 = vmatprep.subr.bf16.mxu0 %v763_v0  ;;  %v768_v5 = vld [vmem:[%s1019_s1 + $0xc8] sm:$0xff]   ;;  %v772_v9 = vld [vmem:[%s1019_s1 + $0xd0] sm:$0xff]   ;;  %20 = vst [vmem:[%s1022_s4] sm:$0x1] %v819_v48 }
   0x3   :  { %v765_v2 = vld [vmem:[%s1019_s1] sm:$0xff]   ;;  %722 = vmatprep.subr.bf16.mxu1 %v764_v1  ;;  %v769_v6 = vld [vmem:[%s1019_s1 + $0x8] sm:$0xff]   ;;  %v773_v10 = vld [vmem:[%s1019_s1 + $0x10] sm:$0xff]  }
   0x4   :  { %v766_v3 = vld [vmem:[%s1019_s1 + $0x80] sm:$0xff]   ;;  %683 = vmatpush3.bf16.msra.mxu0 %v765_v2  ;;  %v770_v7 = vld [vmem:[%s1019_s1 + $0x88] sm:$0xff]   ;;  %v774_v11 = vld [vmem:[%s1019_s1 + $0x90] sm:$0xff]  }
   0x5   :  { %723 = vmatpush3.bf16.msra.mxu1 %v766_v3  ;;  %684 = vmatprep.subr.bf16.mxu0 %v767_v4  ;;  %v775_v12 = vld [vmem:[%s1019_s1 + $0x58] sm:$0xff]   ;;  %v779_v16 = vld [vmem:[%s1019_s1 + $0x60] sm:$0xff]   ;;  %v783_v20 = vld [vmem:[%s1019_s1 + $0x68] sm:$0xff]  }
   0x6   :  { %724 = vmatprep.subr.bf16.mxu1 %v768_v5  ;;  %v776_v13 = vld [vmem:[%s1019_s1 + $0xd8] sm:$0xff]   ;;  %v780_v17 = vld [vmem:[%s1019_s1 + $0xe0] sm:$0xff]   ;;  %v784_v21 = vld [vmem:[%s1019_s1 + $0xe8] sm:$0xff]  }
   0x7   :  { %v777_v14 = vld [vmem:[%s1019_s1 + $0x18] sm:$0xff]   ;;  %v781_v18 = vld [vmem:[%s1019_s1 + $0x20] sm:$0xff]   ;;  %v785_v22 = vld [vmem:[%s1019_s1 + $0x28] sm:$0xff]  }
   0x8   :  { %685 = vmatpush3.bf16.msra.mxu0 %v769_v6  ;;  %v778_v15 = vld [vmem:[%s1019_s1 + $0x98] sm:$0xff]   ;;  %v782_v19 = vld [vmem:[%s1019_s1 + $0xa0] sm:$0xff]   ;;  %v786_v23 = vld [vmem:[%s1019_s1 + $0xa8] sm:$0xff]  }
   0x9   :  { %725 = vmatpush3.bf16.msra.mxu1 %v770_v7  ;;  %686 = vmatprep.subr.bf16.mxu0 %v771_v8  ;;  %v787_v24 = vld [vmem:[%s1019_s1 + $0x70] sm:$0xff]   ;;  %v791_v28 = vld [vmem:[%s1019_s1 + $0x78] sm:$0xff]  }
   0xa   :  { %726 = vmatprep.subr.bf16.mxu1 %v772_v9  ;;  %v788_v25 = vld [vmem:[%s1019_s1 + $0xf0] sm:$0xff]   ;;  %v792_v29 = vld [vmem:[%s1019_s1 + $0xf8] sm:$0xff]  }
   0xb   :  { %v789_v26 = vld [vmem:[%s1019_s1 + $0x30] sm:$0xff]   ;;  %v793_v30 = vld [vmem:[%s1019_s1 + $0x38] sm:$0xff]  }
   0xc   :  { %687 = vmatpush3.bf16.msra.mxu0 %v773_v10  ;;  %v790_v27 = vld [vmem:[%s1019_s1 + $0xb0] sm:$0xff]   ;;  %v794_v31 = vld [vmem:[%s1019_s1 + $0xb8] sm:$0xff]  }
   0xd   :  { %727 = vmatpush3.bf16.msra.mxu1 %v774_v11  ;;  %688 = vmatprep.subr.bf16.mxu0 %v775_v12  ;;  %v795_v32 = vld [vmem:[%s1020_s0] ss:$16 sps:$4 sm:$0xff]   ;;  %v797_v33 = vld [vmem:[%s1020_s0 + $0x4] ss:$16 sps:$4 sm:$0xff]   ;;  %v798_v34 = vld [vmem:[%s1020_s0 + $0x8] ss:$16 sps:$4 sm:$0xff]  }
   0xe   :  { %728 = vmatprep.subr.bf16.mxu1 %v776_v13  ;;  %v800_v35 = vld [vmem:[%s1020_s0 + $0xc] ss:$16 sps:$4 sm:$0xff]   ;;  %405 = vmatprep.mubr.bf16.mxu0 %v797_v33  ;;  %v801_v36 = vld [vmem:[%s1020_s0 + $0x24] ss:$16 sps:$4 sm:$0xff]   ;;  %v805_v38 = vld [vmem:[%s1020_s0 + $0x20] ss:$16 sps:$4 sm:$0xff]  }
   0xf   :  { %470 = vmatprep.mubr.bf16.mxu1 %v800_v35  ;;  %v803_v37 = vld [vmem:[%s1020_s0 + $0x2c] ss:$16 sps:$4 sm:$0xff]   ;;  %v806_v39 = vld [vmem:[%s1020_s0 + $0x28] ss:$16 sps:$4 sm:$0xff]   ;;  %v807_v40 = vld [vmem:[%s1020_s0 + $0x44] ss:$16 sps:$4 sm:$0xff]  }
  0x10   :  { %689 = vmatpush3.bf16.msra.mxu0 %v777_v14  ;;  %v809_v41 = vld [vmem:[%s1020_s0 + $0x4c] ss:$16 sps:$4 sm:$0xff]   ;;  %v811_v42 = vld [vmem:[%s1020_s0 + $0x40] ss:$16 sps:$4 sm:$0xff]   ;;  %v812_v43 = vld [vmem:[%s1020_s0 + $0x48] ss:$16 sps:$4 sm:$0xff]  }
  0x11   :  { %729 = vmatpush3.bf16.msra.mxu1 %v778_v15  ;;  %690 = vmatprep.subr.bf16.mxu0 %v779_v16  ;;  %v813_v44 = vld [vmem:[%s1020_s0 + $0x64] ss:$16 sps:$4 sm:$0xff]   ;;  %v815_v45 = vld [vmem:[%s1020_s0 + $0x6c] ss:$16 sps:$4 sm:$0xff]   ;;  %v817_v46 = vld [vmem:[%s1020_s0 + $0x60] ss:$16 sps:$4 sm:$0xff]  }
  0x12   :  { %730 = vmatprep.subr.bf16.mxu1 %v780_v17  ;;  %v818_v47 = vld [vmem:[%s1020_s0 + $0x68] ss:$16 sps:$4 sm:$0xff]  }
  0x14   :  { %691 = vmatpush3.bf16.msra.mxu0 %v781_v18 }
  0x15   :  { %731 = vmatpush3.bf16.msra.mxu1 %v782_v19  ;;  %692 = vmatprep.subr.bf16.mxu0 %v783_v20 }
  0x16   :  { %732 = vmatprep.subr.bf16.mxu1 %v784_v21 }
  0x18   :  { %693 = vmatpush3.bf16.msra.mxu0 %v785_v22 }
  0x19   :  { %733 = vmatpush3.bf16.msra.mxu1 %v786_v23  ;;  %694 = vmatprep.subr.bf16.mxu0 %v787_v24 }
  0x1a   :  { %734 = vmatprep.subr.bf16.mxu1 %v788_v25 }
  0x1c   :  { %695 = vmatpush3.bf16.msra.mxu0 %v789_v26 }
  0x1d   :  { %735 = vmatpush3.bf16.msra.mxu1 %v790_v27  ;;  %696 = vmatprep.subr.bf16.mxu0 %v791_v28 }
  0x1e   :  { %736 = vmatprep.subr.bf16.mxu1 %v792_v29 }
  0x20   :  { %697 = vmatpush3.bf16.msra.mxu0 %v793_v30 }
  0x21   :  { %737 = vmatpush3.bf16.msra.mxu1 %v794_v31 }
  0x23   :  { %406 = vmatmul.mubr.bf16.vlgmr.msra.gmra.mrb[0].mxu0 %v795_v32 }
  0x24   :  { %471 = vmatmul.mubr.bf16.vlgmr.msra.gmra.mrb[0].mxu1 %v798_v34  ;;  %413 = vmatprep.mubr.bf16.mxu0 %v801_v36 }
  0x25   :  { %478 = vmatprep.mubr.bf16.mxu1 %v803_v37 }
  0x2b   :  { %414 = vmatmul.mubr.bf16.gmra.mrb[4].mxu0 %v805_v38 }
  0x2c   :  { %479 = vmatmul.mubr.bf16.gmra.mrb[4].mxu1 %v806_v39  ;;  %421 = vmatprep.mubr.bf16.mxu0 %v807_v40 }
  0x2d   :  { %486 = vmatprep.mubr.bf16.mxu1 %v809_v41 }
  0x33   :  { %422 = vmatmul.mubr.bf16.gmra.mrb[8].mxu0 %v811_v42 }
  0x34   :  { %487 = vmatmul.mubr.bf16.gmra.mrb[8].mxu1 %v812_v43  ;;  %429 = vmatprep.mubr.bf16.mxu0 %v813_v44 }
  0x35   :  { %494 = vmatprep.mubr.bf16.mxu1 %v815_v45 }
  0x3b   :  { %430 = vmatmul.mubr.bf16.gmra.mrb[12].mxu0 %v817_v46 }
  0x3c   :  { %495 = vmatmul.mubr.bf16.gmra.mrb[12].mxu1 %v818_v47 }
  0xf6   :  { %v698_v49 = vpop.f32.mrb[0].mxu0 }
  0xf7   :  { %v738_v50 = vpop.f32.mrb[0].mxu1  ;;  %v699_v51 = vpop.f32.mrb[1].mxu0 }
  0xf8   :  { %v700_v52 = vadd.f32 %v699_v51, %v698_v49  ;;  %v739_v53 = vpop.f32.mrb[1].mxu1  ;;  %v701_v54 = vpop.f32.mrb[2].mxu0 }
  0xf9   :  { %v740_v55 = vadd.f32 %v739_v53, %v738_v50  ;;  %v741_v56 = vpop.f32.mrb[2].mxu1  ;;  %v702_v57 = vpop.f32.mrb[3].mxu0 }
  0xfa   :  { %v703_v58 = vadd.f32 %v702_v57, %v701_v54  ;;  %v742_v59 = vpop.f32.mrb[3].mxu1 }
  0xfb   :  { %v473_v60 = vadd.f32 %v740_v55, %v700_v52  ;;  %v743_v61 = vadd.f32 %v742_v59, %v741_v56 }
  0xfd   :  { %v476_v62 = vadd.f32 %v743_v61, %v703_v58  ;;  %v560_v0 = vmul.f32 %v473_v60, %v473_v60 }
  0xfe   :  { %v704_v63 = vpop.f32.mrb[4].mxu0 }
  0xff   :  { %v662_v1 = vpack.c.bf16 %v476_v62, %v473_v60  ;;  %v544_v2 = vadd.f32 %v476_v62, %v473_v60  ;;  %v561_v3 = vmul.f32 %v476_v62, %v476_v62  ;;  %v744_v4 = vpop.f32.mrb[4].mxu1  ;;  %v705_v5 = vpop.f32.mrb[5].mxu0 }
 0x100   :  { %v706_v6 = vadd.f32 %v705_v5, %v704_v63  ;;  %v745_v7 = vpop.f32.mrb[5].mxu1  ;;  %v707_v8 = vpop.f32.mrb[6].mxu0 }
 0x101   :  { %663 = vst [vmem:[%s1023_s2] sm:$0xff] %v662_v1   ;;  %v568_v9 = vadd.f32 %v561_v3, %v560_v0  ;;  %v746_v10 = vadd.f32 %v745_v7, %v744_v4  ;;  %v747_v11 = vpop.f32.mrb[6].mxu1  ;;  %v708_v12 = vpop.f32.mrb[7].mxu0 }
 0x102   :  { %v709_v13 = vadd.f32 %v708_v12, %v707_v8  ;;  %v748_v14 = vpop.f32.mrb[7].mxu1  ;;  %v543_v12 = vld [vmem:[%s1021_s3] sm:$0x1] }
 0x103   :  { %v481_v15 = vadd.f32 %v746_v10, %v706_v6  ;;  %v749_v16 = vadd.f32 %v748_v14, %v747_v11 }
 0x105   :  { %v545_v17 = vadd.f32 %v544_v2, %v481_v15  ;;  %v562_v18 = vmul.f32 %v481_v15, %v481_v15  ;;  %v484_v19 = vadd.f32 %v749_v16, %v709_v13 }
 0x106   :  { %v710_v20 = vpop.f32.mrb[8].mxu0 }
 0x107   :  { %v569_v21 = vadd.f32 %v568_v9, %v562_v18  ;;  %v667_v22 = vpack.c.bf16 %v484_v19, %v481_v15  ;;  %v546_v23 = vadd.f32 %v545_v17, %v484_v19  ;;  %v563_v24 = vmul.f32 %v484_v19, %v484_v19  ;;  %v750_v25 = vpop.f32.mrb[8].mxu1  ;;  %v711_v26 = vpop.f32.mrb[9].mxu0  ;;  %v559_v15 = vld [vmem:[%s1022_s4] sm:$0x1] }
 0x108   :  { %v712_v27 = vadd.f32 %v711_v26, %v710_v20  ;;  %v751_v28 = vpop.f32.mrb[9].mxu1  ;;  %v713_v29 = vpop.f32.mrb[10].mxu0 }
 0x109   :  { %679 = vst [vmem:[%s1023_s2 + $0x8] sm:$0xff] %v667_v22   ;;  %v570_v30 = vadd.f32 %v569_v21, %v563_v24  ;;  %v752_v31 = vadd.f32 %v751_v28, %v750_v25  ;;  %v753_v32 = vpop.f32.mrb[10].mxu1  ;;  %v714_v33 = vpop.f32.mrb[11].mxu0 }
 0x10a   :  { %v715_v34 = vadd.f32 %v714_v33, %v713_v29  ;;  %v754_v35 = vpop.f32.mrb[11].mxu1 }
 0x10b   :  { %v489_v36 = vadd.f32 %v752_v31, %v712_v27  ;;  %v755_v37 = vadd.f32 %v754_v35, %v753_v32 }
 0x10d   :  { %v547_v38 = vadd.f32 %v546_v23, %v489_v36  ;;  %v564_v39 = vmul.f32 %v489_v36, %v489_v36  ;;  %v492_v40 = vadd.f32 %v755_v37, %v715_v34 }
 0x10e   :  { %v716_v41 = vpop.f32.mrb[12].mxu0 }
 0x10f   :  { %v571_v42 = vadd.f32 %v570_v30, %v564_v39  ;;  %v672_v43 = vpack.c.bf16 %v492_v40, %v489_v36  ;;  %v548_v44 = vadd.f32 %v547_v38, %v492_v40  ;;  %v565_v45 = vmul.f32 %v492_v40, %v492_v40  ;;  %v756_v46 = vpop.f32.mrb[12].mxu1  ;;  %v717_v47 = vpop.f32.mrb[13].mxu0 }
 0x110   :  { %v718_v48 = vadd.f32 %v717_v47, %v716_v41  ;;  %v757_v49 = vpop.f32.mrb[13].mxu1  ;;  %v719_v50 = vpop.f32.mrb[14].mxu0 }
 0x111   :  { %680 = vst [vmem:[%s1023_s2 + $0x10] sm:$0xff] %v672_v43   ;;  %v572_v51 = vadd.f32 %v571_v42, %v565_v45  ;;  %v758_v52 = vadd.f32 %v757_v49, %v756_v46  ;;  %v759_v53 = vpop.f32.mrb[14].mxu1  ;;  %v720_v54 = vpop.f32.mrb[15].mxu0 }
 0x112   :  { %v721_v55 = vadd.f32 %v720_v54, %v719_v50  ;;  %v760_v56 = vpop.f32.mrb[15].mxu1 }
 0x113   :  { %v497_v57 = vadd.f32 %v758_v52, %v718_v48  ;;  %v761_v58 = vadd.f32 %v760_v56, %v759_v53 }
 0x115   :  { %v549_v59 = vadd.f32 %v548_v44, %v497_v57  ;;  %v566_v60 = vmul.f32 %v497_v57, %v497_v57  ;;  %v500_v61 = vadd.f32 %v761_v58, %v721_v55 }
 0x117   :  { %v573_v62 = vadd.f32 %v572_v51, %v566_v60  ;;  %v677_v63 = vpack.c.bf16 %v500_v61, %v497_v57  ;;  %v550_v0 = vadd.f32 %v549_v59, %v500_v61  ;;  %v567_v1 = vmul.f32 %v500_v61, %v500_v61 }
 0x119   :  { %681 = vst [vmem:[%s1023_s2 + $0x18] sm:$0xff] %v677_v63   ;;  %v551_v2 = vrot.slane %v550_v0, 4  ;;  %v574_v3 = vadd.f32 %v573_v62, %v567_v1 }
 0x11b   :  { %v552_v4 = vadd.f32 %v551_v2, %v550_v0  ;;  %v575_v5 = vrot.slane %v574_v3, 4 }
 0x11d   :  { %v553_v6 = vrot.slane %v552_v4, 2  ;;  %v576_v7 = vadd.f32 %v575_v5, %v574_v3 }
 0x11f   :  { %v554_v8 = vadd.f32 %v553_v6, %v552_v4  ;;  %v577_v9 = vrot.slane %v576_v7, 2 }
 0x121   :  { %v555_v10 = vrot.slane %v554_v8, 1  ;;  %v578_v11 = vadd.f32 %v577_v9, %v576_v7 }
 0x123   :  { %v556_v13 = vadd.f32 %v555_v10, %v554_v8  ;;  %v579_v14 = vrot.slane %v578_v11, 1 }
 0x125   :  { %v557_v16 = vadd.f32 %v556_v13, %v543_v12  ;;  %v580_v17 = vadd.f32 %v579_v14, %v578_v11 }
 0x127   :  { %558 = vst [vmem:[%s1021_s3] sm:$0x1] %v557_v16  ;;  %v581_v18 = vadd.f32 %v580_v17, %v559_v15 }
 0x129   :  { %582 = vst [vmem:[%s1022_s4] sm:$0x1] %v581_v18 }

// kernel: cdck5_forward.15
= control target key start
LH: loop header
LB: loop body
LE: loop exit
PB: predicated region body
PF: predicated region fallthrough
CT: control target
= control target key end

     0   :  { %v28_v0 = vlaneseq  ;;  %s164_s0 = inlined_call_operand.vmem [shape: bf16[32,256], index: 0, kind: input, shape index: {}]   ;;  %s165_s1 = inlined_call_operand.vmem [shape: f32[1,256], index: 1, kind: input, shape index: {}]   ;;  %s166_s2 = inlined_call_operand.vmem [shape: f32[1,256], index: 2, kind: input, shape index: {}]   ;;  %s167_s3 = inlined_call_operand.vmem [shape: bf16[32,256], index: 3, kind: output, shape index: {}]  }
   0x1   :  { %v14_v1 = vld [vmem:[%s164_s0] sm:$0xff]  ;;  %v15_v3 = vld [vmem:[%s164_s0 + $0x8] sm:$0xff]  ;;  %v16_v4 = vld [vmem:[%s164_s0 + $0x10] sm:$0xff] }
   0x2   :  { %v29_v2 = vshrl.u32 %v28_v0, 7  ;;  %v17_v5 = vld [vmem:[%s164_s0 + $0x18] sm:$0xff]  ;;  %v18_v6 = vunpack.c.l.bf16 %v14_v1  ;;  %v19_v7 = vunpack.c.h.bf16 %v14_v1  ;;  %v26_v8 = vld [vmem:[%s165_s1] sm:$0x3]  ;;  %v20_v12 = vunpack.c.l.bf16 %v15_v3 }
   0x3   :  { %v46_v9 = vld [vmem:[%s166_s2] sm:$0x3]  ;;  %v21_v13 = vunpack.c.h.bf16 %v15_v3  ;;  %v22_v14 = vunpack.c.l.bf16 %v16_v4  ;;  %v23_v15 = vunpack.c.h.bf16 %v16_v4  ;;  %v24_v16 = vunpack.c.l.bf16 %v17_v5 }
   0x4   :  { %v30_v10 = vsub.s32 0, %v29_v2  ;;  %v34_v11 = vsub.s32 1, %v29_v2  ;;  %v25_v17 = vunpack.c.h.bf16 %v17_v5 }
   0x6   :  { %v31_v18 = vrot.slane %v26_v8, %v30_v10  ;;  %v35_v19 = vrot.slane %v26_v8, %v34_v11  ;;  %v51_v20 = vrot.slane %v46_v9, %v30_v10  ;;  %v55_v21 = vrot.slane %v46_v9, %v34_v11 }
   0x8   :  { %v38_v22 = vmul.f32 %v31_v18, %v18_v6  ;;  %v39_v23 = vmul.f32 %v35_v19, %v19_v7  ;;  %v40_v24 = vmul.f32 %v31_v18, %v20_v12  ;;  %v41_v25 = vmul.f32 %v35_v19, %v21_v13 }
   0x9   :  { %v42_v26 = vmul.f32 %v31_v18, %v22_v14  ;;  %v43_v27 = vmul.f32 %v35_v19, %v23_v15  ;;  %v44_v28 = vmul.f32 %v31_v18, %v24_v16  ;;  %v45_v29 = vmul.f32 %v35_v19, %v25_v17 }
   0xa   :  { %v58_v30 = vadd.f32 %v51_v20, %v38_v22  ;;  %v59_v31 = vadd.f32 %v55_v21, %v39_v23  ;;  %v60_v32 = vadd.f32 %v51_v20, %v40_v24  ;;  %v61_v33 = vadd.f32 %v55_v21, %v41_v25 }
   0xb   :  { %v62_v34 = vadd.f32 %v51_v20, %v42_v26  ;;  %v63_v35 = vadd.f32 %v55_v21, %v43_v27  ;;  %v64_v36 = vadd.f32 %v51_v20, %v44_v28  ;;  %v65_v37 = vadd.f32 %v55_v21, %v45_v29 }
   0xc   :  { %v66_v38 = vmax.f32 %v58_v30, 0.0  ;;  %v67_v39 = vmax.f32 %v59_v31, 0.0  ;;  %v68_v40 = vmax.f32 %v60_v32, 0.0  ;;  %v69_v41 = vmax.f32 %v61_v33, 0.0 }
   0xd   :  { %v70_v42 = vmax.f32 %v62_v34, 0.0  ;;  %v71_v43 = vmax.f32 %v63_v35, 0.0  ;;  %v72_v44 = vmax.f32 %v64_v36, 0.0  ;;  %v73_v45 = vmax.f32 %v65_v37, 0.0 }
   0xe   :  { %v110_v46 = vpack.c.bf16 %v67_v39, %v66_v38  ;;  %v111_v47 = vpack.c.bf16 %v69_v41, %v68_v40 }
   0xf   :  { %v112_v48 = vpack.c.bf16 %v71_v43, %v70_v42  ;;  %v113_v49 = vpack.c.bf16 %v73_v45, %v72_v44 }
  0x10   :  { %98 = vst [vmem:[%s167_s3] sm:$0xff] %v110_v46  ;;  %99 = vst [vmem:[%s167_s3 + $0x8] sm:$0xff] %v111_v47 }
  0x11   :  { %100 = vst [vmem:[%s167_s3 + $0x10] sm:$0xff] %v112_v48  ;;  %101 = vst [vmem:[%s167_s3 + $0x18] sm:$0xff] %v113_v49 }

// kernel: cdck5_forward.16
= control target key start
LH: loop header
LB: loop body
LE: loop exit
PB: predicated region body
PF: predicated region fallthrough
CT: control target
= control target key end

     0   :  { %v52_v36 = vlaneseq  ;;  %s584_s1 = inlined_call_operand.vmem [shape: bf16[256,256], index: 1, kind: input, shape index: {}]   ;;  %s585_s0 = inlined_call_operand.vmem [shape: bf16[32,256], index: 0, kind: input, shape index: {}]   ;;  %s586_s2 = inlined_call_operand.vmem [shape: f32[1,256], index: 2, kind: input, shape index: {}]   ;;  %s587_s3 = inlined_call_operand.vmem [shape: f32[32,256], index: 3, kind: output, shape index: {}]  }
   0x1   :  { %v375_v0 = vld [vmem:[%s584_s1 + $0x4] ss:$8 sps:$4 sm:$0xff]   ;;  %v377_v1 = vld [vmem:[%s584_s1] ss:$8 sps:$4 sm:$0xff]   ;;  %v378_v2 = vld [vmem:[%s584_s1 + $0x14] ss:$8 sps:$4 sm:$0xff]  }
   0x2   :  { %242 = vmatprep.subr.bf16.mxu0 %v375_v0  ;;  %343 = vmatprep.subr.bf16.mxu1 %v375_v0  ;;  %v380_v3 = vld [vmem:[%s584_s1 + $0x10] ss:$8 sps:$4 sm:$0xff]   ;;  %v381_v4 = vld [vmem:[%s584_s1 + $0x24] ss:$8 sps:$4 sm:$0xff]   ;;  %v383_v5 = vld [vmem:[%s584_s1 + $0x20] ss:$8 sps:$4 sm:$0xff]  }
   0x3   :  { %243 = vmatpush1.bf16.msra.mxu0 %v377_v1  ;;  %359 = vmatpush1.bf16.msra.mxu1 %v377_v1  ;;  %v384_v6 = vld [vmem:[%s584_s1 + $0x34] ss:$8 sps:$4 sm:$0xff]   ;;  %v386_v7 = vld [vmem:[%s584_s1 + $0x30] ss:$8 sps:$4 sm:$0xff]   ;;  %v387_v8 = vld [vmem:[%s584_s1 + $0x44] ss:$8 sps:$4 sm:$0xff]  }
   0x4   :  { %244 = vmatprep.subr.bf16.mxu0 %v378_v2  ;;  %344 = vmatprep.subr.bf16.mxu1 %v378_v2  ;;  %v389_v9 = vld [vmem:[%s584_s1 + $0x40] ss:$8 sps:$4 sm:$0xff]   ;;  %v390_v10 = vld [vmem:[%s584_s1 + $0x54] ss:$8 sps:$4 sm:$0xff]   ;;  %v392_v11 = vld [vmem:[%s584_s1 + $0x50] ss:$8 sps:$4 sm:$0xff]  }
   0x5   :  { %v393_v12 = vld [vmem:[%s584_s1 + $0x64] ss:$8 sps:$4 sm:$0xff]   ;;  %v395_v14 = vld [vmem:[%s584_s1 + $0x60] ss:$8 sps:$4 sm:$0xff]   ;;  %v428_v15 = vld [vmem:[%s585_s0 + $0x14] ss:$8 sps:$4 sm:$0xff]  }
   0x6   :  { %v425_v13 = vld [vmem:[%s585_s0 + $0x4] ss:$8 sps:$4 sm:$0xff]   ;;  %v396_v16 = vld [vmem:[%s584_s1 + $0x74] ss:$8 sps:$4 sm:$0xff]   ;;  %284 = vmatprep.mubr.bf16.mxu1 %v428_v15  ;;  %v398_v17 = vld [vmem:[%s584_s1 + $0x70] ss:$8 sps:$4 sm:$0xff]  }
   0x7   :  { %245 = vmatpush1.bf16.msra.mxu0 %v380_v3  ;;  %360 = vmatpush1.bf16.msra.mxu1 %v380_v3  ;;  %v399_v18 = vld [vmem:[%s584_s1 + $0x84] ss:$8 sps:$4 sm:$0xff]   ;;  %v401_v19 = vld [vmem:[%s584_s1 + $0x80] ss:$8 sps:$4 sm:$0xff]   ;;  %v402_v20 = vld [vmem:[%s584_s1 + $0x94] ss:$8 sps:$4 sm:$0xff]  }
   0x8   :  { %246 = vmatprep.subr.bf16.mxu0 %v381_v4  ;;  %345 = vmatprep.subr.bf16.mxu1 %v381_v4  ;;  %v404_v21 = vld [vmem:[%s584_s1 + $0x90] ss:$8 sps:$4 sm:$0xff]   ;;  %v405_v22 = vld [vmem:[%s584_s1 + $0xa4] ss:$8 sps:$4 sm:$0xff]   ;;  %v407_v23 = vld [vmem:[%s584_s1 + $0xa0] ss:$8 sps:$4 sm:$0xff]  }
   0x9   :  { %274 = vmatprep.mubr.bf16.mxu0 %v425_v13  ;;  %v408_v24 = vld [vmem:[%s584_s1 + $0xb4] ss:$8 sps:$4 sm:$0xff]   ;;  %v410_v25 = vld [vmem:[%s584_s1 + $0xb0] ss:$8 sps:$4 sm:$0xff]   ;;  %v411_v26 = vld [vmem:[%s584_s1 + $0xc4] ss:$8 sps:$4 sm:$0xff]  }
   0xa   :  { %v413_v27 = vld [vmem:[%s584_s1 + $0xc0] ss:$8 sps:$4 sm:$0xff]   ;;  %v414_v28 = vld [vmem:[%s584_s1 + $0xd4] ss:$8 sps:$4 sm:$0xff]   ;;  %v416_v29 = vld [vmem:[%s584_s1 + $0xd0] ss:$8 sps:$4 sm:$0xff]  }
   0xb   :  { %247 = vmatpush1.bf16.msra.mxu0 %v383_v5  ;;  %361 = vmatpush1.bf16.msra.mxu1 %v383_v5  ;;  %v417_v30 = vld [vmem:[%s584_s1 + $0xe4] ss:$8 sps:$4 sm:$0xff]   ;;  %v419_v31 = vld [vmem:[%s584_s1 + $0xe0] ss:$8 sps:$4 sm:$0xff]   ;;  %v420_v32 = vld [vmem:[%s584_s1 + $0xf4] ss:$8 sps:$4 sm:$0xff]  }
   0xc   :  { %248 = vmatprep.subr.bf16.mxu0 %v384_v6  ;;  %346 = vmatprep.subr.bf16.mxu1 %v384_v6  ;;  %v422_v33 = vld [vmem:[%s584_s1 + $0xf0] ss:$8 sps:$4 sm:$0xff]   ;;  %v423_v34 = vld [vmem:[%s585_s0] ss:$8 sps:$4 sm:$0xff]   ;;  %v53_v37 = vshrl.u32 %v52_v36, 7 }
   0xd   :  { %v426_v35 = vld [vmem:[%s585_s0 + $0x10] ss:$8 sps:$4 sm:$0xff]   ;;  %v50_v39 = vld [vmem:[%s586_s2] sm:$0x3] }
   0xe   :  { %v54_v38 = vsub.s32 0, %v53_v37  ;;  %v58_v40 = vsub.s32 1, %v53_v37 }
   0xf   :  { %249 = vmatpush1.bf16.msra.mxu0 %v386_v7  ;;  %362 = vmatpush1.bf16.msra.mxu1 %v386_v7 }
  0x10   :  { %250 = vmatprep.subr.bf16.mxu0 %v387_v8  ;;  %347 = vmatprep.subr.bf16.mxu1 %v387_v8  ;;  %v55_v41 = vrot.slane %v50_v39, %v54_v38  ;;  %v59_v42 = vrot.slane %v50_v39, %v58_v40 }
  0x13   :  { %251 = vmatpush1.bf16.msra.mxu0 %v389_v9  ;;  %363 = vmatpush1.bf16.msra.mxu1 %v389_v9 }
  0x14   :  { %252 = vmatprep.subr.bf16.mxu0 %v390_v10  ;;  %348 = vmatprep.subr.bf16.mxu1 %v390_v10 }
  0x17   :  { %253 = vmatpush1.bf16.msra.mxu0 %v392_v11  ;;  %364 = vmatpush1.bf16.msra.mxu1 %v392_v11 }
  0x18   :  { %254 = vmatprep.subr.bf16.mxu0 %v393_v12  ;;  %349 = vmatprep.subr.bf16.mxu1 %v393_v12 }
  0x1b   :  { %255 = vmatpush1.bf16.msra.mxu0 %v395_v14  ;;  %365 = vmatpush1.bf16.msra.mxu1 %v395_v14 }
  0x1c   :  { %256 = vmatprep.subr.bf16.mxu0 %v396_v16  ;;  %350 = vmatprep.subr.bf16.mxu1 %v396_v16 }
  0x1f   :  { %257 = vmatpush1.bf16.msra.mxu0 %v398_v17  ;;  %366 = vmatpush1.bf16.msra.mxu1 %v398_v17 }
  0x20   :  { %258 = vmatprep.subr.bf16.mxu0 %v399_v18  ;;  %351 = vmatprep.subr.bf16.mxu1 %v399_v18 }
  0x23   :  { %259 = vmatpush1.bf16.msra.mxu0 %v401_v19  ;;  %367 = vmatpush1.bf16.msra.mxu1 %v401_v19 }
  0x24   :  { %260 = vmatprep.subr.bf16.mxu0 %v402_v20  ;;  %352 = vmatprep.subr.bf16.mxu1 %v402_v20 }
  0x27   :  { %261 = vmatpush1.bf16.msra.mxu0 %v404_v21  ;;  %368 = vmatpush1.bf16.msra.mxu1 %v404_v21 }
  0x28   :  { %262 = vmatprep.subr.bf16.mxu0 %v405_v22  ;;  %353 = vmatprep.subr.bf16.mxu1 %v405_v22 }
  0x2b   :  { %263 = vmatpush1.bf16.msra.mxu0 %v407_v23  ;;  %369 = vmatpush1.bf16.msra.mxu1 %v407_v23 }
  0x2c   :  { %264 = vmatprep.subr.bf16.mxu0 %v408_v24  ;;  %354 = vmatprep.subr.bf16.mxu1 %v408_v24 }
  0x2f   :  { %265 = vmatpush1.bf16.msra.mxu0 %v410_v25  ;;  %370 = vmatpush1.bf16.msra.mxu1 %v410_v25 }
  0x30   :  { %266 = vmatprep.subr.bf16.mxu0 %v411_v26  ;;  %355 = vmatprep.subr.bf16.mxu1 %v411_v26 }
  0x33   :  { %267 = vmatpush1.bf16.msra.mxu0 %v413_v27  ;;  %371 = vmatpush1.bf16.msra.mxu1 %v413_v27 }
  0x34   :  { %268 = vmatprep.subr.bf16.mxu0 %v414_v28  ;;  %356 = vmatprep.subr.bf16.mxu1 %v414_v28 }
  0x37   :  { %269 = vmatpush1.bf16.msra.mxu0 %v416_v29  ;;  %372 = vmatpush1.bf16.msra.mxu1 %v416_v29 }
  0x38   :  { %270 = vmatprep.subr.bf16.mxu0 %v417_v30  ;;  %357 = vmatprep.subr.bf16.mxu1 %v417_v30 }
  0x3b   :  { %271 = vmatpush1.bf16.msra.mxu0 %v419_v31  ;;  %373 = vmatpush1.bf16.msra.mxu1 %v419_v31 }
  0x3c   :  { %272 = vmatprep.subr.bf16.mxu0 %v420_v32  ;;  %358 = vmatprep.subr.bf16.mxu1 %v420_v32 }
  0x3f   :  { %273 = vmatpush1.bf16.msra.mxu0 %v422_v33  ;;  %374 = vmatpush1.bf16.msra.mxu1 %v422_v33 }
  0x42   :  { %275 = vmatmul.mubr.bf16.vlgmr.msra.gmra.mrb[0].mxu0 %v423_v34  ;;  %285 = vmatmul.mubr.bf16.vlgmr.msra.gmra.mrb[0].mxu1 %v426_v35 }
 0x115   :  { %v276_v43 = vpop.f32.mrb[0].mxu0  ;;  %v286_v44 = vpop.f32.mrb[0].mxu1 }
 0x116   :  { %v277_v45 = vadd.f32 %v276_v43, %v55_v41  ;;  %v287_v46 = vadd.f32 %v286_v44, %v55_v41  ;;  %v278_v47 = vpop.f32.mrb[1].mxu0  ;;  %v288_v48 = vpop.f32.mrb[1].mxu1 }
 0x117   :  { %v279_v49 = vadd.f32 %v278_v47, %v59_v42  ;;  %v289_v50 = vadd.f32 %v288_v48, %v59_v42  ;;  %v280_v51 = vpop.f32.mrb[2].mxu0  ;;  %v290_v52 = vpop.f32.mrb[2].mxu1 }
 0x118   :  { %295 = vst [vmem:[%s587_s3] sm:$0xff] %v277_v45  ;;  %299 = vst [vmem:[%s587_s3 + $0x20] sm:$0xff] %v287_v46  ;;  %v281_v53 = vadd.f32 %v280_v51, %v55_v41  ;;  %v291_v54 = vadd.f32 %v290_v52, %v55_v41  ;;  %v282_v55 = vpop.f32.mrb[3].mxu0  ;;  %v292_v56 = vpop.f32.mrb[3].mxu1 }
 0x119   :  { %296 = vst [vmem:[%s587_s3 + $0x8] sm:$0xff] %v279_v49  ;;  %300 = vst [vmem:[%s587_s3 + $0x28] sm:$0xff] %v289_v50  ;;  %v283_v57 = vadd.f32 %v282_v55, %v59_v42  ;;  %v293_v58 = vadd.f32 %v292_v56, %v59_v42 }
 0x11a   :  { %297 = vst [vmem:[%s587_s3 + $0x10] sm:$0xff] %v281_v53  ;;  %301 = vst [vmem:[%s587_s3 + $0x30] sm:$0xff] %v291_v54 }
 0x11b   :  { %298 = vst [vmem:[%s587_s3 + $0x18] sm:$0xff] %v283_v57  ;;  %302 = vst [vmem:[%s587_s3 + $0x38] sm:$0xff] %v293_v58 }

// kernel: cdck5_forward.14
= control target key start
LH: loop header
LB: loop body
LE: loop exit
PB: predicated region body
PF: predicated region fallthrough
CT: control target
= control target key end

     0   :  { %s1177_s1 = inlined_call_operand.vmem [shape: bf16[512,256], index: 1, kind: input, shape index: {}]   ;;  %s1178_s0 = inlined_call_operand.vmem [shape: bf16[32,512], index: 0, kind: input, shape index: {}]   ;;  %s1179_s3 = inlined_call_operand.vmem [shape: f32[1,256], index: 3, kind: output, shape index: {1}]   ;;  %s1180_s4 = inlined_call_operand.vmem [shape: f32[1,256], index: 4, kind: output, shape index: {2}]   ;;  %s1181_s2 = inlined_call_operand.vmem [shape: bf16[32,256], index: 2, kind: output, shape index: {0}]  }
   0x1   :  { %v782_v0 = vld [vmem:[%s1177_s1 + $0x4] ss:$8 sps:$4 sm:$0xff]   ;;  %v786_v2 = vld [vmem:[%s1177_s1] ss:$8 sps:$4 sm:$0xff]   ;;  %v788_v4 = vld [vmem:[%s1177_s1 + $0x14] ss:$8 sps:$4 sm:$0xff]  }
   0x2   :  { %v784_v1 = vld [vmem:[%s1177_s1 + $0x104] ss:$8 sps:$4 sm:$0xff]   ;;  %456 = vmatprep.subr.bf16.mxu1 %v782_v0  ;;  %v787_v3 = vld [vmem:[%s1177_s1 + $0x100] ss:$8 sps:$4 sm:$0xff]   ;;  %v790_v5 = vld [vmem:[%s1177_s1 + $0x114] ss:$8 sps:$4 sm:$0xff]  }
   0x3   :  { %509 = vmatprep.subr.bf16.mxu0 %v784_v1  ;;  %457 = vmatpush1.bf16.msra.mxu1 %v786_v2  ;;  %v792_v6 = vld [vmem:[%s1177_s1 + $0x10] ss:$8 sps:$4 sm:$0xff]   ;;  %v794_v8 = vld [vmem:[%s1177_s1 + $0x24] ss:$8 sps:$4 sm:$0xff]   ;;  %v798_v10 = vld [vmem:[%s1177_s1 + $0x20] ss:$8 sps:$4 sm:$0xff]  }
   0x4   :  { %510 = vmatpush1.bf16.msra.mxu0 %v787_v3  ;;  %458 = vmatprep.subr.bf16.mxu1 %v788_v4  ;;  %v793_v7 = vld [vmem:[%s1177_s1 + $0x110] ss:$8 sps:$4 sm:$0xff]   ;;  %v796_v9 = vld [vmem:[%s1177_s1 + $0x124] ss:$8 sps:$4 sm:$0xff]   ;;  %v799_v11 = vld [vmem:[%s1177_s1 + $0x120] ss:$8 sps:$4 sm:$0xff]  }
   0x5   :  { %511 = vmatprep.subr.bf16.mxu0 %v790_v5  ;;  %v800_v12 = vld [vmem:[%s1177_s1 + $0x34] ss:$8 sps:$4 sm:$0xff]   ;;  %v804_v14 = vld [vmem:[%s1177_s1 + $0x30] ss:$8 sps:$4 sm:$0xff]   ;;  %v806_v16 = vld [vmem:[%s1177_s1 + $0x44] ss:$8 sps:$4 sm:$0xff]  }
   0x6   :  { %v802_v13 = vld [vmem:[%s1177_s1 + $0x134] ss:$8 sps:$4 sm:$0xff]   ;;  %v805_v15 = vld [vmem:[%s1177_s1 + $0x130] ss:$8 sps:$4 sm:$0xff]   ;;  %v808_v17 = vld [vmem:[%s1177_s1 + $0x144] ss:$8 sps:$4 sm:$0xff]  }
   0x7   :  { %459 = vmatpush1.bf16.msra.mxu1 %v792_v6  ;;  %v810_v18 = vld [vmem:[%s1177_s1 + $0x40] ss:$8 sps:$4 sm:$0xff]   ;;  %v812_v20 = vld [vmem:[%s1177_s1 + $0x54] ss:$8 sps:$4 sm:$0xff]   ;;  %v816_v22 = vld [vmem:[%s1177_s1 + $0x50] ss:$8 sps:$4 sm:$0xff]  }
   0x8   :  { %512 = vmatpush1.bf16.msra.mxu0 %v793_v7  ;;  %460 = vmatprep.subr.bf16.mxu1 %v794_v8  ;;  %v811_v19 = vld [vmem:[%s1177_s1 + $0x140] ss:$8 sps:$4 sm:$0xff]   ;;  %v814_v21 = vld [vmem:[%s1177_s1 + $0x154] ss:$8 sps:$4 sm:$0xff]   ;;  %v817_v23 = vld [vmem:[%s1177_s1 + $0x150] ss:$8 sps:$4 sm:$0xff]   ;;  %v18_v8 = vlaneseq }
   0x9   :  { %513 = vmatprep.subr.bf16.mxu0 %v796_v9  ;;  %v818_v24 = vld [vmem:[%s1177_s1 + $0x64] ss:$8 sps:$4 sm:$0xff]   ;;  %v822_v26 = vld [vmem:[%s1177_s1 + $0x60] ss:$8 sps:$4 sm:$0xff]   ;;  %v824_v28 = vld [vmem:[%s1177_s1 + $0x74] ss:$8 sps:$4 sm:$0xff]  }
   0xa   :  { %v820_v25 = vld [vmem:[%s1177_s1 + $0x164] ss:$8 sps:$4 sm:$0xff]   ;;  %v823_v27 = vld [vmem:[%s1177_s1 + $0x160] ss:$8 sps:$4 sm:$0xff]   ;;  %v826_v29 = vld [vmem:[%s1177_s1 + $0x174] ss:$8 sps:$4 sm:$0xff]  }
   0xb   :  { %461 = vmatpush1.bf16.msra.mxu1 %v798_v10  ;;  %v828_v30 = vld [vmem:[%s1177_s1 + $0x70] ss:$8 sps:$4 sm:$0xff]   ;;  %v830_v32 = vld [vmem:[%s1177_s1 + $0x84] ss:$8 sps:$4 sm:$0xff]   ;;  %v834_v34 = vld [vmem:[%s1177_s1 + $0x80] ss:$8 sps:$4 sm:$0xff]  }
   0xc   :  { %514 = vmatpush1.bf16.msra.mxu0 %v799_v11  ;;  %462 = vmatprep.subr.bf16.mxu1 %v800_v12  ;;  %v829_v31 = vld [vmem:[%s1177_s1 + $0x170] ss:$8 sps:$4 sm:$0xff]   ;;  %v832_v33 = vld [vmem:[%s1177_s1 + $0x184] ss:$8 sps:$4 sm:$0xff]   ;;  %v835_v35 = vld [vmem:[%s1177_s1 + $0x180] ss:$8 sps:$4 sm:$0xff]  }
   0xd   :  { %515 = vmatprep.subr.bf16.mxu0 %v802_v13  ;;  %v836_v36 = vld [vmem:[%s1177_s1 + $0x94] ss:$8 sps:$4 sm:$0xff]   ;;  %v840_v38 = vld [vmem:[%s1177_s1 + $0x90] ss:$8 sps:$4 sm:$0xff]   ;;  %v842_v40 = vld [vmem:[%s1177_s1 + $0xa4] ss:$8 sps:$4 sm:$0xff]  }
   0xe   :  { %v838_v37 = vld [vmem:[%s1177_s1 + $0x194] ss:$8 sps:$4 sm:$0xff]   ;;  %v841_v39 = vld [vmem:[%s1177_s1 + $0x190] ss:$8 sps:$4 sm:$0xff]   ;;  %v844_v41 = vld [vmem:[%s1177_s1 + $0x1a4] ss:$8 sps:$4 sm:$0xff]  }
   0xf   :  { %463 = vmatpush1.bf16.msra.mxu1 %v804_v14  ;;  %v846_v42 = vld [vmem:[%s1177_s1 + $0xa0] ss:$8 sps:$4 sm:$0xff]   ;;  %v848_v44 = vld [vmem:[%s1177_s1 + $0xb4] ss:$8 sps:$4 sm:$0xff]   ;;  %v852_v46 = vld [vmem:[%s1177_s1 + $0xb0] ss:$8 sps:$4 sm:$0xff]  }
  0x10   :  { %516 = vmatpush1.bf16.msra.mxu0 %v805_v15  ;;  %464 = vmatprep.subr.bf16.mxu1 %v806_v16  ;;  %v847_v43 = vld [vmem:[%s1177_s1 + $0x1a0] ss:$8 sps:$4 sm:$0xff]   ;;  %v850_v45 = vld [vmem:[%s1177_s1 + $0x1b4] ss:$8 sps:$4 sm:$0xff]   ;;  %v853_v47 = vld [vmem:[%s1177_s1 + $0x1b0] ss:$8 sps:$4 sm:$0xff]  }
  0x11   :  { %517 = vmatprep.subr.bf16.mxu0 %v808_v17  ;;  %v854_v48 = vld [vmem:[%s1177_s1 + $0xc4] ss:$8 sps:$4 sm:$0xff]   ;;  %v858_v52 = vld [vmem:[%s1177_s1 + $0xc0] ss:$8 sps:$4 sm:$0xff]   ;;  %v860_v54 = vld [vmem:[%s1177_s1 + $0xd4] ss:$8 sps:$4 sm:$0xff]  }
  0x12   :  { %v880_v49 = vld [vmem:[%s1178_s0 + $0x4] ss:$16 sps:$4 sm:$0xff]   ;;  %v883_v51 = vld [vmem:[%s1178_s0 + $0xc] ss:$16 sps:$4 sm:$0xff]   ;;  %v859_v53 = vld [vmem:[%s1177_s1 + $0x1c0] ss:$8 sps:$4 sm:$0xff]  }
  0x13   :  { %465 = vmatpush1.bf16.msra.mxu1 %v810_v18  ;;  %v856_v50 = vld [vmem:[%s1177_s1 + $0x1c4] ss:$8 sps:$4 sm:$0xff]   ;;  %488 = vmatprep.mubr.bf16.mxu1 %v880_v49  ;;  %v862_v55 = vld [vmem:[%s1177_s1 + $0x1d4] ss:$8 sps:$4 sm:$0xff]   ;;  %v864_v56 = vld [vmem:[%s1177_s1 + $0xd0] ss:$8 sps:$4 sm:$0xff]  }
  0x14   :  { %518 = vmatpush1.bf16.msra.mxu0 %v811_v19  ;;  %466 = vmatprep.subr.bf16.mxu1 %v812_v20  ;;  %v865_v57 = vld [vmem:[%s1177_s1 + $0x1d0] ss:$8 sps:$4 sm:$0xff]   ;;  %v866_v58 = vld [vmem:[%s1177_s1 + $0xe4] ss:$8 sps:$4 sm:$0xff]   ;;  %v870_v60 = vld [vmem:[%s1177_s1 + $0xe0] ss:$8 sps:$4 sm:$0xff]  }
  0x15   :  { %519 = vmatprep.subr.bf16.mxu0 %v814_v21  ;;  %541 = vmatprep.mubr.bf16.mxu0 %v883_v51  ;;  %v868_v59 = vld [vmem:[%s1177_s1 + $0x1e4] ss:$8 sps:$4 sm:$0xff]   ;;  %v871_v61 = vld [vmem:[%s1177_s1 + $0x1e0] ss:$8 sps:$4 sm:$0xff]   ;;  %v872_v62 = vld [vmem:[%s1177_s1 + $0xf4] ss:$8 sps:$4 sm:$0xff]  }
  0x16   :  { %v874_v63 = vld [vmem:[%s1177_s1 + $0x1f4] ss:$8 sps:$4 sm:$0xff]   ;;  %v876_v0 = vld [vmem:[%s1177_s1 + $0xf0] ss:$8 sps:$4 sm:$0xff]   ;;  %vm1134_vm0 = vcmp.lt.s32.totalorder %v18_v8, 256  ;;  %v890_v10 = vmov 0.0  }
  0x17   :  { %467 = vmatpush1.bf16.msra.mxu1 %v816_v22  ;;  %v877_v1 = vld [vmem:[%s1177_s1 + $0x1f0] ss:$8 sps:$4 sm:$0xff]   ;;  %v884_v4 = vld [vmem:[%s1178_s0 + $0x24] ss:$16 sps:$4 sm:$0xff]   ;;  %v886_v5 = vld [vmem:[%s1178_s0 + $0x2c] ss:$16 sps:$4 sm:$0xff]  }
  0x18   :  { %520 = vmatpush1.bf16.msra.mxu0 %v817_v23  ;;  %468 = vmatprep.subr.bf16.mxu1 %v818_v24  ;;  %v878_v2 = vld [vmem:[%s1178_s0] ss:$16 sps:$4 sm:$0xff]   ;;  %v881_v3 = vld [vmem:[%s1178_s0 + $0x8] ss:$16 sps:$4 sm:$0xff]   ;;  %22 = vst.msk [vmem:[%s1179_s3] sm:$0x3] %vm1134_vm0, %v890_v10 }
  0x19   :  { %521 = vmatprep.subr.bf16.mxu0 %v820_v25  ;;  %v888_v6 = vld [vmem:[%s1178_s0 + $0x20] ss:$16 sps:$4 sm:$0xff]   ;;  %v889_v7 = vld [vmem:[%s1178_s0 + $0x28] ss:$16 sps:$4 sm:$0xff]   ;;  %23 = vst.msk [vmem:[%s1180_s4] sm:$0x3] %vm1134_vm0, %v890_v10 }
  0x1b   :  { %469 = vmatpush1.bf16.msra.mxu1 %v822_v26 }
  0x1c   :  { %522 = vmatpush1.bf16.msra.mxu0 %v823_v27  ;;  %470 = vmatprep.subr.bf16.mxu1 %v824_v28 }
  0x1d   :  { %523 = vmatprep.subr.bf16.mxu0 %v826_v29 }
  0x1f   :  { %471 = vmatpush1.bf16.msra.mxu1 %v828_v30 }
  0x20   :  { %524 = vmatpush1.bf16.msra.mxu0 %v829_v31  ;;  %472 = vmatprep.subr.bf16.mxu1 %v830_v32 }
  0x21   :  { %525 = vmatprep.subr.bf16.mxu0 %v832_v33 }
  0x23   :  { %473 = vmatpush1.bf16.msra.mxu1 %v834_v34 }
  0x24   :  { %526 = vmatpush1.bf16.msra.mxu0 %v835_v35  ;;  %474 = vmatprep.subr.bf16.mxu1 %v836_v36 }
  0x25   :  { %527 = vmatprep.subr.bf16.mxu0 %v838_v37 }
  0x27   :  { %475 = vmatpush1.bf16.msra.mxu1 %v840_v38 }
  0x28   :  { %528 = vmatpush1.bf16.msra.mxu0 %v841_v39  ;;  %476 = vmatprep.subr.bf16.mxu1 %v842_v40 }
  0x29   :  { %529 = vmatprep.subr.bf16.mxu0 %v844_v41 }
  0x2b   :  { %477 = vmatpush1.bf16.msra.mxu1 %v846_v42 }
  0x2c   :  { %530 = vmatpush1.bf16.msra.mxu0 %v847_v43  ;;  %478 = vmatprep.subr.bf16.mxu1 %v848_v44 }
  0x2d   :  { %531 = vmatprep.subr.bf16.mxu0 %v850_v45 }
  0x2f   :  { %479 = vmatpush1.bf16.msra.mxu1 %v852_v46 }
  0x30   :  { %532 = vmatpush1.bf16.msra.mxu0 %v853_v47  ;;  %480 = vmatprep.subr.bf16.mxu1 %v854_v48 }
  0x31   :  { %533 = vmatprep.subr.bf16.mxu0 %v856_v50 }
  0x33   :  { %481 = vmatpush1.bf16.msra.mxu1 %v858_v52 }
  0x34   :  { %534 = vmatpush1.bf16.msra.mxu0 %v859_v53  ;;  %482 = vmatprep.subr.bf16.mxu1 %v860_v54 }
  0x35   :  { %535 = vmatprep.subr.bf16.mxu0 %v862_v55 }
  0x37   :  { %483 = vmatpush1.bf16.msra.mxu1 %v864_v56 }
  0x38   :  { %536 = vmatpush1.bf16.msra.mxu0 %v865_v57  ;;  %484 = vmatprep.subr.bf16.mxu1 %v866_v58 }
  0x39   :  { %537 = vmatprep.subr.bf16.mxu0 %v868_v59 }
  0x3b   :  { %485 = vmatpush1.bf16.msra.mxu1 %v870_v60 }
  0x3c   :  { %538 = vmatpush1.bf16.msra.mxu0 %v871_v61  ;;  %486 = vmatprep.subr.bf16.mxu1 %v872_v62 }
  0x3d   :  { %539 = vmatprep.subr.bf16.mxu0 %v874_v63 }
  0x3f   :  { %487 = vmatpush1.bf16.msra.mxu1 %v876_v0  ;;  %v891_v0 = vmov 1966171168  }
  0x40   :  { %540 = vmatpush1.bf16.msra.mxu0 %v877_v1  ;;  %v613_v1 = vunpack.c.l.s4 %v891_v0 }
  0x42   :  { %489 = vmatmul.mubr.bf16.vlgmr.msra.gmra.mrb[0].mxu1 %v878_v2 }
  0x43   :  { %542 = vmatmul.mubr.bf16.vlgmr.msra.gmra.mrb[0].mxu0 %v881_v3  ;;  %498 = vmatprep.mubr.bf16.mxu1 %v884_v4 }
  0x44   :  { %551 = vmatprep.mubr.bf16.mxu0 %v886_v5 }
  0x4a   :  { %499 = vmatmul.mubr.bf16.gmra.mrb[4].mxu1 %v888_v6 }
  0x4b   :  { %552 = vmatmul.mubr.bf16.gmra.mrb[4].mxu0 %v889_v7 }
 0x115   :  { %v490_v11 = vpop.f32.mrb[0].mxu1 }
 0x116   :  { %v543_v12 = vpop.f32.mrb[0].mxu0  ;;  %v492_v14 = vpop.f32.mrb[1].mxu1 }
 0x117   :  { %v544_v13 = vadd.f32 %v543_v12, %v490_v11  ;;  %v545_v15 = vpop.f32.mrb[1].mxu0  ;;  %v494_v17 = vpop.f32.mrb[2].mxu1  ;;  %v614_v12 = vunpack.c.0.s8 %v613_v1 }
 0x118   :  { %v546_v16 = vadd.f32 %v545_v15, %v492_v14  ;;  %v547_v18 = vpop.f32.mrb[2].mxu0  ;;  %v496_v20 = vpop.f32.mrb[3].mxu1 }
 0x119   :  { %v548_v19 = vadd.f32 %v547_v18, %v494_v17  ;;  %v549_v21 = vpop.f32.mrb[3].mxu0  ;;  %v634_v24 = vmul.f32 %v544_v13, %v544_v13 }
 0x11a   :  { %v768_v22 = vpack.c.bf16 %v546_v16, %v544_v13  ;;  %v550_v23 = vadd.f32 %v549_v21, %v496_v20  ;;  %v635_v27 = vmul.f32 %v546_v16, %v546_v16 }
 0x11b   :  { %v591_v25 = vadd.f32 %v548_v19, %v544_v13  ;;  %v636_v26 = vmul.f32 %v548_v19, %v548_v19  ;;  %v616_v13 = vshrl.u32 %v18_v8, 7 }
 0x11c   :  { %586 = vst [vmem:[%s1181_s2] sm:$0xff] %v768_v22  ;;  %v769_v28 = vpack.c.bf16 %v550_v23, %v548_v19  ;;  %v600_v29 = vadd.f32 %v550_v23, %v546_v16  ;;  %v637_v30 = vmul.f32 %v550_v23, %v550_v23 }
 0x11d   :  { %v642_v31 = vadd.f32 %v636_v26, %v634_v24  ;;  %v500_v33 = vpop.f32.mrb[4].mxu1  ;;  %v617_v22 = vsub.s32 %v614_v12, %v616_v13 }
 0x11e   :  { %587 = vst [vmem:[%s1181_s2 + $0x8] sm:$0xff] %v769_v28  ;;  %v651_v32 = vadd.f32 %v637_v30, %v635_v27  ;;  %v553_v34 = vpop.f32.mrb[4].mxu0  ;;  %v502_v36 = vpop.f32.mrb[5].mxu1 }
 0x11f   :  { %v554_v35 = vadd.f32 %v553_v34, %v500_v33  ;;  %v555_v37 = vpop.f32.mrb[5].mxu0  ;;  %v504_v39 = vpop.f32.mrb[6].mxu1 }
 0x120   :  { %v556_v38 = vadd.f32 %v555_v37, %v502_v36  ;;  %v557_v40 = vpop.f32.mrb[6].mxu0  ;;  %v506_v44 = vpop.f32.mrb[7].mxu1 }
 0x121   :  { %v592_v41 = vadd.f32 %v591_v25, %v554_v35  ;;  %v638_v42 = vmul.f32 %v554_v35, %v554_v35  ;;  %v558_v43 = vadd.f32 %v557_v40, %v504_v39  ;;  %v559_v45 = vpop.f32.mrb[7].mxu0 }
 0x122   :  { %v770_v46 = vpack.c.bf16 %v556_v38, %v554_v35  ;;  %v601_v47 = vadd.f32 %v600_v29, %v556_v38  ;;  %v639_v48 = vmul.f32 %v556_v38, %v556_v38  ;;  %v560_v49 = vadd.f32 %v559_v45, %v506_v44  ;;  %v590_v29 = vld [vmem:[%s1179_s3] sm:$0x3] }
 0x123   :  { %v643_v50 = vadd.f32 %v642_v31, %v638_v42  ;;  %v593_v51 = vadd.f32 %v592_v41, %v558_v43  ;;  %v640_v52 = vmul.f32 %v558_v43, %v558_v43  ;;  %v633_v31 = vld [vmem:[%s1180_s4] sm:$0x3] }
 0x124   :  { %588 = vst [vmem:[%s1181_s2 + $0x10] sm:$0xff] %v770_v46  ;;  %v652_v53 = vadd.f32 %v651_v32, %v639_v48  ;;  %v771_v54 = vpack.c.bf16 %v560_v49, %v558_v43  ;;  %v602_v55 = vadd.f32 %v601_v47, %v560_v49  ;;  %v641_v56 = vmul.f32 %v560_v49, %v560_v49 }
 0x125   :  { %v594_v57 = vrot.slane %v593_v51, 4  ;;  %v644_v58 = vadd.f32 %v643_v50, %v640_v52 }
 0x126   :  { %589 = vst [vmem:[%s1181_s2 + $0x18] sm:$0xff] %v771_v54  ;;  %v603_v59 = vrot.slane %v602_v55, 4  ;;  %v653_v60 = vadd.f32 %v652_v53, %v641_v56 }
 0x127   :  { %v595_v61 = vadd.f32 %v594_v57, %v593_v51  ;;  %v645_v62 = vrot.slane %v644_v58, 4 }
 0x128   :  { %v604_v63 = vadd.f32 %v603_v59, %v602_v55  ;;  %v654_v2 = vrot.slane %v653_v60, 4 }
 0x129   :  { %v596_v3 = vrot.slane %v595_v61, 2  ;;  %v646_v4 = vadd.f32 %v645_v62, %v644_v58 }
 0x12a   :  { %v605_v5 = vrot.slane %v604_v63, 2  ;;  %v655_v6 = vadd.f32 %v654_v2, %v653_v60 }
 0x12b   :  { %v597_v7 = vadd.f32 %v596_v3, %v595_v61  ;;  %v647_v10 = vrot.slane %v646_v4, 2 }
 0x12c   :  { %v606_v11 = vadd.f32 %v605_v5, %v604_v63  ;;  %v656_v14 = vrot.slane %v655_v6, 2 }
 0x12d   :  { %v598_v15 = vrot.slane %v597_v7, 1  ;;  %v648_v16 = vadd.f32 %v647_v10, %v646_v4 }
 0x12e   :  { %v607_v17 = vrot.slane %v606_v11, 1  ;;  %v657_v18 = vadd.f32 %v656_v14, %v655_v6 }
 0x12f   :  { %v599_v19 = vadd.f32 %v598_v15, %v597_v7  ;;  %v649_v20 = vrot.slane %v648_v16, 1 }
 0x130   :  { %v608_v21 = vadd.f32 %v607_v17, %v606_v11  ;;  %v658_v23 = vrot.slane %v657_v18, 1 }
 0x131   :  { %v650_v24 = vadd.f32 %v649_v20, %v648_v16 }
 0x132   :  { %v611_v25 = vcombine.low %v599_v19, %v608_v21  ;;  %v659_v26 = vadd.f32 %v658_v23, %v657_v18 }
 0x134   :  { %v618_v27 = vrot.slane %v611_v25, %v617_v22  ;;  %v662_v28 = vcombine.low %v650_v24, %v659_v26 }
 0x136   :  { %v625_v8 = vrot.slane %v618_v27, %v617_v22  ;;  %v669_v30 = vrot.slane %v662_v28, %v617_v22 }
 0x138   :  { %v627_v32 = vadd.f32 %v625_v8, %v590_v29  ;;  %v676_v33 = vrot.slane %v669_v30, %v617_v22 }
 0x13a   :  { %632 = vst.msk [vmem:[%s1179_s3] sm:$0x3] %vm1134_vm0, %v627_v32  ;;  %v678_v34 = vadd.f32 %v676_v33, %v633_v31 }
 0x13c   :  { %679 = vst.msk [vmem:[%s1180_s4] sm:$0x3] %vm1134_vm0, %v678_v34 }

// kernel: cdck5_forward.17
= control target key start
LH: loop header
LB: loop body
LE: loop exit
PB: predicated region body
PF: predicated region fallthrough
CT: control target
= control target key end

     0   :  { %s339_s1 = inlined_call_operand.vmem [shape: bf16[256,128], index: 1, kind: input, shape index: {}]   ;;  %s340_s0 = inlined_call_operand.vmem [shape: bf16[8,256], index: 0, kind: input, shape index: {}]   ;;  %s341_s2 = inlined_call_operand.vmem [shape: f32[1,128], index: 2, kind: input, shape index: {}]   ;;  %s342_s3 = inlined_call_operand.vmem [shape: f32[8,128], index: 3, kind: output, shape index: {}]  }
   0x1   :  { %v244_v0 = vld [vmem:[%s339_s1 + $0x40] sm:$0xff]   ;;  %v246_v2 = vld [vmem:[%s339_s1 + $0x48] sm:$0xff]   ;;  %v248_v4 = vld [vmem:[%s339_s1 + $0x50] sm:$0xff]  }
   0x2   :  { %v245_v1 = vld [vmem:[%s339_s1] sm:$0xff]   ;;  %222 = vmatprep.subr.bf16.mxu0 %v244_v0  ;;  %v247_v3 = vld [vmem:[%s339_s1 + $0x8] sm:$0xff]   ;;  %v249_v5 = vld [vmem:[%s339_s1 + $0x10] sm:$0xff]  }
   0x3   :  { %223 = vmatpush3.bf16.msra.mxu0 %v245_v1  ;;  %v250_v6 = vld [vmem:[%s339_s1 + $0x58] sm:$0xff]   ;;  %v252_v8 = vld [vmem:[%s339_s1 + $0x60] sm:$0xff]   ;;  %v254_v10 = vld [vmem:[%s339_s1 + $0x68] sm:$0xff]  }
   0x4   :  { %224 = vmatprep.subr.bf16.mxu0 %v246_v2  ;;  %v251_v7 = vld [vmem:[%s339_s1 + $0x18] sm:$0xff]   ;;  %v253_v9 = vld [vmem:[%s339_s1 + $0x20] sm:$0xff]   ;;  %v255_v13 = vld [vmem:[%s339_s1 + $0x28] sm:$0xff]  }
   0x5   :  { %v15_v11 = vld [vmem:[%s340_s0] sm:$0xff]  ;;  %v256_v14 = vld [vmem:[%s339_s1 + $0x70] sm:$0xff]   ;;  %v258_v16 = vld [vmem:[%s339_s1 + $0x78] sm:$0xff]  }
   0x6   :  { %v205_v12 = vcombine.high %v15_v11, %v15_v11  ;;  %v257_v15 = vld [vmem:[%s339_s1 + $0x30] sm:$0xff]   ;;  %v259_v17 = vld [vmem:[%s339_s1 + $0x38] sm:$0xff]   ;;  %v204_v18 = vcombine.low %v15_v11, %v15_v11  ;;  %v203_v20 = vld [vmem:[%s341_s2] ss:$0 sm:$0xff] }
   0x7   :  { %225 = vmatpush3.bf16.msra.mxu0 %v247_v3 }
   0x8   :  { %226 = vmatprep.subr.bf16.mxu0 %v248_v4  ;;  %190 = vmatprep.mubr.bf16.mxu0 %v205_v12 }
   0xb   :  { %227 = vmatpush3.bf16.msra.mxu0 %v249_v5 }
   0xc   :  { %228 = vmatprep.subr.bf16.mxu0 %v250_v6 }
   0xf   :  { %229 = vmatpush3.bf16.msra.mxu0 %v251_v7 }
  0x10   :  { %230 = vmatprep.subr.bf16.mxu0 %v252_v8 }
  0x13   :  { %231 = vmatpush3.bf16.msra.mxu0 %v253_v9 }
  0x14   :  { %232 = vmatprep.subr.bf16.mxu0 %v254_v10 }
  0x17   :  { %233 = vmatpush3.bf16.msra.mxu0 %v255_v13 }
  0x18   :  { %234 = vmatprep.subr.bf16.mxu0 %v256_v14 }
  0x1b   :  { %235 = vmatpush3.bf16.msra.mxu0 %v257_v15 }
  0x1c   :  { %236 = vmatprep.subr.bf16.mxu0 %v258_v16 }
  0x1f   :  { %237 = vmatpush3.bf16.msra.mxu0 %v259_v17 }
  0x22   :  { %191 = vmatmul.mubr.bf16.vlgmr.msra.gmra.mrb[0].mxu0 %v204_v18 }
  0xf5   :  { %v238_v19 = vpop.f32.mrb[0].mxu0 }
  0xf6   :  { %v239_v21 = vpop.f32.mrb[1].mxu0 }
  0xf7   :  { %v240_v22 = vadd.f32 %v239_v21, %v238_v19  ;;  %v241_v23 = vpop.f32.mrb[2].mxu0 }
  0xf8   :  { %v242_v24 = vpop.f32.mrb[3].mxu0 }
  0xf9   :  { %v193_v25 = vadd.f32 %v240_v22, %v203_v20 }
  0xfb   :  { %198 = vst [vmem:[%s342_s3] sm:$0xff] %v193_v25 }

// kernel: cdck5_forward.18
= control target key start
LH: loop header
LB: loop body
LE: loop exit
PB: predicated region body
PF: predicated region fallthrough
CT: control target
= control target key end

     0   :  { %v921_v0 = vmov 0.0   ;;  %vm922_vm0 = vmmov 0   ;;  %vm78_vm1 = vcmask 1043456   ;;  %vm74_vm2 = vcmask 326656   ;;  %s923_s14 = smov 48   ;;  %s925_s21 = smov 88   ;;  %s1193_s2 = inlined_call_operand.vmem [shape: bf16[40,128], index: 2, kind: input, shape index: {}]   ;;  %s1194_s1 = inlined_call_operand.vmem [shape: f32[2,2,40], index: 1, kind: input, shape index: {}]   ;;  %s1195_s3 = inlined_call_operand.vmem [shape: f32[1,128], index: 3, kind: input, shape index: {}]   ;;  %s1196_s0 = inlined_call_operand.vmem [shape: f32[3,2,128], index: 0, kind: input, shape index: {}]   ;;  %s1197_s6 = inlined_call_operand.vmem [shape: bf16[40,128], index: 6, kind: input, shape index: {}]   ;;  %s1198_s4 = inlined_call_operand.vmem [shape: bf16[40,128], index: 4, kind: input, shape index: {}]   ;;  %s1199_s7 = inlined_call_operand.vmem [shape: f32[1,128], index: 7, kind: input, shape index: {}]   ;;  %s1200_s5 = inlined_call_operand.vmem [shape: f32[1,128], index: 5, kind: input, shape index: {}]   ;;  %s1201_s8 = inlined_call_operand.vmem [shape: f32[2,2,40], index: 8, kind: output, shape index: {}]  }
   0x1   :  { %780 = vmatprep.subr.bf16.mxu0 %v921_v0  ;;  %v976_v1 = vld [vmem:[%s1193_s2] sm:$0xff]   ;;  %786 = vmatprep.mubr.msk.bf16.mxu0 %vm922_vm0, %v921_v0  ;;  %v987_v2 = vld [vmem:[%s1193_s2 + $0x8] sm:$0xff]   ;;  %v878_v3 = vld [vmem:[%s1193_s2 + $0x10] ss:$0 sps:$4 sm:$0xff]   ;;  %vm701_vm3 = vcmask 320512  }
   0x2   :  { %790 = vmatprep.subr.bf16.mxu1 %v921_v0  ;;  %796 = vmatprep.mubr.msk.bf16.mxu1 %vm922_vm0, %v921_v0  ;;  %v48_v4 = vld [vmem:[%s1194_s1] sm:$0x3]  ;;  %v999_v5 = vsel %vm78_vm1, %v878_v3, 0  ;;  %v1025_v25 = vld [vmem:[%s1197_s6 + $0x8] sm:$0xff]   ;;  %v881_v26 = vld [vmem:[%s1197_s6 + $0x10] ss:$0 sps:$4 sm:$0xff]  }
   0x3   :  { %781 = vmatpush3.bf16.msra.mxu0 %v976_v1  ;;  %v52_v6 = vpack.c.bf16 %v48_v4, %v48_v4  ;;  %v1009_v7 = vld [vmem:[%s1195_s3] ss:$0 sm:$0xff]  ;;  %s924_s3 = smov 80   ;;  %v1042_v28 = vld [vmem:[%s1198_s4 + $0x8] sm:$0xff]   ;;  %v1047_v29 = vld [vmem:[%s1194_s1 + $0x2] sm:$0x3] }
   0x4   :  { %782 = vmatprep.subr.bf16.mxu0 %v921_v0  ;;  %v51_v13 = vld [vmem:[%s1196_s0] sm:$0x3]  ;;  %v884_v30 = vld [vmem:[%s1198_s4 + $0x10] ss:$0 sps:$4 sm:$0xff]   ;;  %v1056_v31 = vsel %vm78_vm1, %v881_v26, 0  ;;  %v223_v32 = vpack.c.bf16 %v1047_v29, %v1047_v29 }
   0x5   :  { %v1020_v23 = vld [vmem:[%s1197_s6] sm:$0xff]   ;;  %s926_s6 = smov 40   ;;  %v1065_v33 = vsel %vm78_vm1, %v884_v30, 0 }
   0x6   :  { %v1036_v27 = vld [vmem:[%s1198_s4] sm:$0xff]  }
   0x7   :  { %783 = vmatpush3.bf16.msra.mxu0 %v987_v2  ;;  %791 = vmatpush3.bf16.msra.mxu1 %v1036_v27  ;;  %v1087_v41 = vld [vmem:[%s1199_s7] ss:$0 sm:$0xff] }
   0x8   :  { %784 = vmatprep.subr.bf16.mxu0 %v921_v0  ;;  %792 = vmatprep.subr.bf16.mxu1 %v921_v0  ;;  %v1112_v48 = vld [vmem:[%s1200_s5] ss:$0 sm:$0xff] }
   0xb   :  { %785 = vmatpush3.bf16.msra.mxu0 %v999_v5  ;;  %793 = vmatpush3.bf16.msra.mxu1 %v1042_v28 }
   0xc   :  { %800 = vmatprep.subr.bf16.mxu0 %v921_v0  ;;  %794 = vmatprep.subr.bf16.mxu1 %v921_v0 }
   0xe   :  { %787 = vmatmul.mubr.msk.bf16.vlgmr.msra.gmra.mrb[0].mxu0 %vm74_vm2, %v52_v6  ;;  %v731_v6 = vld [vmem:[%s1196_s0 + $0x2] sm:$0x3] }
   0xf   :  { %806 = vmatprep.mubr.msk.bf16.mxu0 %vm922_vm0, %v921_v0  ;;  %801 = vmatpush3.bf16.msra.mxu0 %v1020_v23 }
  0x10   :  { %802 = vmatprep.subr.bf16.mxu0 %v921_v0  ;;  %795 = vmatpush3.bf16.msra.mxu1 %v1065_v33 }
  0x11   :  { %810 = vmatprep.subr.bf16.mxu1 %v921_v0 }
  0x13   :  { %803 = vmatpush3.bf16.msra.mxu0 %v1025_v25 }
  0x14   :  { %804 = vmatprep.subr.bf16.mxu0 %v921_v0 }
  0x17   :  { %805 = vmatpush3.bf16.msra.mxu0 %v1056_v31 }
  0x18   :  { %820 = vmatprep.subr.bf16.mxu0 %v921_v0 }
  0x1a   :  { %807 = vmatmul.mubr.msk.bf16.vlgmr.msra.gmra.mrb[4].mxu0 %vm74_vm2, %v223_v32 }
  0x1b   :  { %821 = vmatpush3.bf16.msra.mxu0 %v1036_v27  ;;  %826 = vmatprep.mubr.msk.bf16.mxu0 %vm922_vm0, %v921_v0 }
  0x1c   :  { %822 = vmatprep.subr.bf16.mxu0 %v921_v0 }
  0x1f   :  { %823 = vmatpush3.bf16.msra.mxu0 %v1042_v28 }
  0x20   :  { %824 = vmatprep.subr.bf16.mxu0 %v921_v0 }
  0x23   :  { %825 = vmatpush3.bf16.msra.mxu0 %v1065_v33 }
  0x24   :  { %840 = vmatprep.subr.bf16.mxu0 %v921_v0 }
  0xe1   :  { %v116_v8 = vpop.f32.mrb[0].mxu0 }
  0xe2   :  { %v117_v9 = vadd.f32 %v1009_v7, %v116_v8  ;;  %v788_v10 = vpop.f32.mrb[1].mxu0 }
  0xe3   :  { %v119_v11 = vpop.f32.mrb[2].mxu0 }
  0xe4   :  { %130 = vrot.lane.b32.xlu0 %v117_v9, %s923_s14  ;;  %v789_v12 = vpop.f32.mrb[3].mxu0  ;;  %v122_v14 = vadd.f32 %v117_v9, %v51_v13 }
  0xe6   :  { %v719_v15 = vmul.f32 -1.442695, %v122_v14 }
  0xe8   :  { %885 = vpow2.f32 %v719_v15 }
  0xed   :  { %v285_v42 = vpop.f32.mrb[4].mxu0 }
  0xee   :  { %v286_v43 = vadd.f32 %v1087_v41, %v285_v42  ;;  %v808_v44 = vpop.f32.mrb[5].mxu0 }
  0xef   :  { %v288_v45 = vpop.f32.mrb[6].mxu0 }
  0xf0   :  { %v809_v46 = vpop.f32.mrb[7].mxu0 }
  0xf2   :  { %v886_v16 = vpop.eup %885 }
  0xf3   :  { %v126_v17 = vadd.f32 1.0, %v886_v16 }
  0xf5   :  { %887 = vrcp.f32 %v126_v17 }
  0xff   :  { %v888_v18 = vpop.eup %887 }
 0x100   :  { %v140_v35 = vsub.f32 1.0, %v888_v18 }
 0x156   :  { %v131_v19 = vpop.permute.xlu0 %130 }
 0x157   :  { %v133_v20 = vmul.f32 %v888_v18, %v131_v19 }
 0x159   :  { %135 = vrot.lane.b32.xlu0 %v133_v20, %s924_s3 }
 0x1cb   :  { %v136_v21 = vpop.permute.xlu0 %135 }
 0x1cc   :  { %v138_v22 = vadd.f32 %v136_v21, %v51_v13 }
 0x1ce   :  { %889 = vtanh.f32 %v138_v22 }
 0x1d8   :  { %v890_v24 = vpop.eup %889 }
 0x1d9   :  { %142 = vrot.lane.b32.xlu1 %v890_v24, %s925_s21 }
 0x1dd   :  { %147 = vrot.lane.b32.xlu1 %v48_v4, %s926_s6 }
 0x1e1   :  { %299 = vrot.lane.b32.xlu1 %v286_v43, %s923_s14 }
 0x24b   :  { %v143_v34 = vpop.permute.xlu1 %142 }
 0x24c   :  { %v145_v37 = vmul.f32 %v143_v34, %v140_v35 }
 0x24f   :  { %v148_v36 = vpop.permute.xlu1 %147 }
 0x250   :  { %v150_v38 = vmul.f32 %v888_v18, %v148_v36 }
 0x252   :  { %v1079_v39 = vadd.f32 %v150_v38, %v145_v37 }
 0x253   :  { %v300_v63 = vpop.permute.xlu1 %299 }
 0x254   :  { %v152_v40 = vpack.c.bf16 %v1079_v39, %v1079_v39 }
 0x256   :  { %160 = vrot.lane.b32.xlu0 %v152_v40, %s925_s21 }
 0x2c8   :  { %v161_v47 = vpop.permute.xlu0 %160 }
 0x2c9   :  { %797 = vmatmul.mubr.msk.bf16.vlgmr.msra.gmra.mrb[0].mxu1 %vm74_vm2, %v161_v47 }
 0x2ca   :  { %811 = vmatpush3.bf16.msra.mxu1 %v976_v1  ;;  %816 = vmatprep.mubr.msk.bf16.mxu1 %vm922_vm0, %v921_v0 }
 0x2cb   :  { %812 = vmatprep.subr.bf16.mxu1 %v921_v0 }
 0x2ce   :  { %813 = vmatpush3.bf16.msra.mxu1 %v987_v2 }
 0x2cf   :  { %814 = vmatprep.subr.bf16.mxu1 %v921_v0 }
 0x2d2   :  { %815 = vmatpush3.bf16.msra.mxu1 %v999_v5 }
 0x2d3   :  { %830 = vmatprep.subr.bf16.mxu1 %v921_v0 }
 0x2d5   :  { %817 = vmatmul.mubr.msk.bf16.vlgmr.msra.gmra.mrb[4].mxu1 %vm74_vm2, %v161_v47 }
 0x2d6   :  { %831 = vmatpush3.bf16.msra.mxu1 %v1020_v23  ;;  %836 = vmatprep.mubr.msk.bf16.mxu1 %vm922_vm0, %v921_v0 }
 0x2d7   :  { %832 = vmatprep.subr.bf16.mxu1 %v921_v0 }
 0x2da   :  { %833 = vmatpush3.bf16.msra.mxu1 %v1025_v25 }
 0x2db   :  { %834 = vmatprep.subr.bf16.mxu1 %v921_v0 }
 0x2de   :  { %835 = vmatpush3.bf16.msra.mxu1 %v1056_v31 }
 0x2df   :  { %850 = vmatprep.subr.bf16.mxu1 %v921_v0 }
 0x39c   :  { %v217_v49 = vpop.f32.mrb[0].mxu1 }
 0x39d   :  { %v218_v50 = vadd.f32 %v1112_v48, %v217_v49  ;;  %v798_v51 = vpop.f32.mrb[1].mxu1 }
 0x39e   :  { %v220_v52 = vpop.f32.mrb[2].mxu1 }
 0x39f   :  { %v291_v53 = vadd.f32 %v286_v43, %v218_v50  ;;  %v799_v54 = vpop.f32.mrb[3].mxu1 }
 0x3a1   :  { %v730_v55 = vmul.f32 -1.442695, %v291_v53 }
 0x3a3   :  { %891 = vpow2.f32 %v730_v55 }
 0x3a8   :  { %v357_v56 = vpop.f32.mrb[4].mxu1 }
 0x3a9   :  { %v358_v57 = vadd.f32 %v1009_v7, %v357_v56  ;;  %v818_v58 = vpop.f32.mrb[5].mxu1  ;;  %v737_v56 = vld [vmem:[%s1196_s0 + $0x4] sm:$0x3] }
 0x3aa   :  { %v360_v59 = vpop.f32.mrb[6].mxu1 }
 0x3ab   :  { %371 = vrot.lane.b32.xlu0 %v358_v57, %s923_s14  ;;  %v819_v60 = vpop.f32.mrb[7].mxu1  ;;  %v363_v8 = vadd.f32 %v731_v6, %v358_v57 }
 0x3ad   :  { %v892_v61 = vpop.eup %891  ;;  %v733_v9 = vmul.f32 -1.442695, %v363_v8 }
 0x3ae   :  { %v295_v62 = vadd.f32 1.0, %v892_v61 }
 0x3b0   :  { %893 = vrcp.f32 %v295_v62 }
 0x3b1   :  { %895 = vpow2.f32 %v733_v9 }
 0x3ba   :  { %v894_v3 = vpop.eup %893 }
 0x3bb   :  { %v302_v4 = vmul.f32 %v894_v3, %v300_v63  ;;  %v896_v10 = vpop.eup %895  ;;  %v309_v22 = vsub.f32 1.0, %v894_v3 }
 0x3bc   :  { %v367_v11 = vadd.f32 1.0, %v896_v10 }
 0x3bd   :  { %304 = vrot.lane.b32.xlu1 %v302_v4, %s924_s3 }
 0x3be   :  { %897 = vrcp.f32 %v367_v11 }
 0x3c8   :  { %v898_v12 = vpop.eup %897 }
 0x3c9   :  { %v381_v34 = vsub.f32 1.0, %v898_v12  ;;  %v387_v36 = vmul.f32 %v898_v12, %v1079_v39 }
 0x41d   :  { %v372_v13 = vpop.permute.xlu0 %371 }
 0x41e   :  { %v374_v14 = vmul.f32 %v898_v12, %v372_v13 }
 0x420   :  { %376 = vrot.lane.b32.xlu0 %v374_v14, %s924_s3 }
 0x424   :  { %316 = vrot.lane.b32.xlu0 %v1047_v29, %s926_s6 }
 0x42f   :  { %v305_v15 = vpop.permute.xlu1 %304 }
 0x430   :  { %v307_v16 = vadd.f32 %v305_v15, %v218_v50 }
 0x432   :  { %899 = vtanh.f32 %v307_v16 }
 0x43c   :  { %v900_v17 = vpop.eup %899 }
 0x43d   :  { %311 = vrot.lane.b32.xlu1 %v900_v17, %s925_s21 }
 0x492   :  { %v377_v18 = vpop.permute.xlu0 %376 }
 0x493   :  { %v379_v19 = vadd.f32 %v731_v6, %v377_v18 }
 0x495   :  { %901 = vtanh.f32 %v379_v19 }
 0x496   :  { %v317_v21 = vpop.permute.xlu0 %316 }
 0x497   :  { %v319_v26 = vmul.f32 %v894_v3, %v317_v21 }
 0x49f   :  { %v902_v20 = vpop.eup %901 }
 0x4a0   :  { %383 = vrot.lane.b32.xlu1 %v902_v20, %s925_s21 }
 0x4af   :  { %v312_v24 = vpop.permute.xlu1 %311 }
 0x4b0   :  { %v314_v30 = vmul.f32 %v312_v24, %v309_v22 }
 0x4b2   :  { %v1126_v32 = vadd.f32 %v319_v26, %v314_v30 }
 0x4b4   :  { %v436_v29 = vpack.c.bf16 %v1126_v32, %v1126_v32 }
 0x4b6   :  { %438 = vrot.lane.b32.xlu0 %v436_v29, %s925_s21 }
 0x512   :  { %v384_v35 = vpop.permute.xlu1 %383 }
 0x513   :  { %v386_v37 = vmul.f32 %v384_v35, %v381_v34 }
 0x515   :  { %v1132_v38 = vadd.f32 %v387_v36, %v386_v37 }
 0x517   :  { %v389_v40 = vpack.c.bf16 %v1132_v38, %v1132_v38 }
 0x519   :  { %391 = vrot.lane.b32.xlu1 %v389_v40, %s925_s21 }
 0x528   :  { %v439_v42 = vpop.permute.xlu0 %438 }
 0x529   :  { %837 = vmatmul.mubr.msk.bf16.vlgmr.msra.gmra.mrb[8].mxu1 %vm74_vm2, %v439_v42 }
 0x52a   :  { %851 = vmatpush3.bf16.msra.mxu1 %v1036_v27  ;;  %856 = vmatprep.mubr.msk.bf16.mxu1 %vm922_vm0, %v921_v0 }
 0x52b   :  { %852 = vmatprep.subr.bf16.mxu1 %v921_v0 }
 0x52e   :  { %853 = vmatpush3.bf16.msra.mxu1 %v1042_v28 }
 0x52f   :  { %854 = vmatprep.subr.bf16.mxu1 %v921_v0 }
 0x532   :  { %855 = vmatpush3.bf16.msra.mxu1 %v1065_v33 }
 0x58b   :  { %v392_v39 = vpop.permute.xlu1 %391 }
 0x58c   :  { %827 = vmatmul.mubr.msk.bf16.vlgmr.msra.gmra.mrb[8].mxu0 %vm74_vm2, %v392_v39 }
 0x58d   :  { %841 = vmatpush3.bf16.msra.mxu0 %v976_v1  ;;  %846 = vmatprep.mubr.msk.bf16.mxu0 %vm922_vm0, %v921_v0 }
 0x58e   :  { %842 = vmatprep.subr.bf16.mxu0 %v921_v0 }
 0x591   :  { %843 = vmatpush3.bf16.msra.mxu0 %v987_v2 }
 0x592   :  { %844 = vmatprep.subr.bf16.mxu0 %v921_v0 }
 0x595   :  { %845 = vmatpush3.bf16.msra.mxu0 %v999_v5 }
 0x596   :  { %860 = vmatprep.subr.bf16.mxu0 %v921_v0 }
 0x598   :  { %847 = vmatmul.mubr.msk.bf16.vlgmr.msra.gmra.mrb[12].mxu0 %vm74_vm2, %v392_v39 }
 0x599   :  { %861 = vmatpush3.bf16.msra.mxu0 %v1020_v23  ;;  %866 = vmatprep.mubr.msk.bf16.mxu0 %vm922_vm0, %v921_v0 }
 0x59a   :  { %862 = vmatprep.subr.bf16.mxu0 %v921_v0 }
 0x59d   :  { %863 = vmatpush3.bf16.msra.mxu0 %v1025_v25 }
 0x59e   :  { %864 = vmatprep.subr.bf16.mxu0 %v921_v0 }
 0x5a1   :  { %865 = vmatpush3.bf16.msra.mxu0 %v1056_v31 }
 0x5fc   :  { %v477_v1 = vpop.f32.mrb[8].mxu1 }
 0x5fd   :  { %v478_v2 = vadd.f32 %v1087_v41, %v477_v1  ;;  %v838_v5 = vpop.f32.mrb[9].mxu1 }
 0x5fe   :  { %v480_v27 = vpop.f32.mrb[10].mxu1 }
 0x5ff   :  { %491 = vrot.lane.b32.xlu0 %v478_v2, %s923_s14  ;;  %v839_v28 = vpop.f32.mrb[11].mxu1 }
 0x65f   :  { %v430_v23 = vpop.f32.mrb[8].mxu0 }
 0x660   :  { %v431_v33 = vadd.f32 %v1112_v48, %v430_v23  ;;  %v828_v43 = vpop.f32.mrb[9].mxu0 }
 0x661   :  { %v433_v44 = vpop.f32.mrb[10].mxu0 }
 0x662   :  { %v483_v45 = vadd.f32 %v478_v2, %v431_v33  ;;  %v829_v46 = vpop.f32.mrb[11].mxu0 }
 0x664   :  { %v736_v25 = vmul.f32 -1.442695, %v483_v45 }
 0x666   :  { %903 = vpow2.f32 %v736_v25 }
 0x66b   :  { %v545_v0 = vpop.f32.mrb[12].mxu0 }
 0x66c   :  { %v546_v31 = vadd.f32 %v1009_v7, %v545_v0  ;;  %v848_v47 = vpop.f32.mrb[13].mxu0 }
 0x66d   :  { %v548_v49 = vpop.f32.mrb[14].mxu0 }
 0x66e   :  { %559 = vrot.lane.b32.xlu1 %v546_v31, %s923_s14  ;;  %v849_v50 = vpop.f32.mrb[15].mxu0  ;;  %v551_v57 = vadd.f32 %v737_v56, %v546_v31 }
 0x670   :  { %v904_v51 = vpop.eup %903  ;;  %v739_v58 = vmul.f32 -1.442695, %v551_v57 }
 0x671   :  { %v487_v52 = vadd.f32 1.0, %v904_v51  ;;  %v492_v54 = vpop.permute.xlu0 %491 }
 0x673   :  { %905 = vrcp.f32 %v487_v52 }
 0x674   :  { %907 = vpow2.f32 %v739_v58 }
 0x67d   :  { %v906_v53 = vpop.eup %905 }
 0x67e   :  { %v494_v55 = vmul.f32 %v906_v53, %v492_v54  ;;  %v908_v7 = vpop.eup %907  ;;  %v501_v10 = vsub.f32 1.0, %v906_v53  ;;  %v507_v12 = vmul.f32 %v906_v53, %v1126_v32 }
 0x67f   :  { %v555_v59 = vadd.f32 1.0, %v908_v7 }
 0x680   :  { %496 = vrot.lane.b32.xlu0 %v494_v55, %s924_s3 }
 0x681   :  { %909 = vrcp.f32 %v555_v59 }
 0x68b   :  { %v910_v60 = vpop.eup %909 }
 0x68c   :  { %v569_v16 = vsub.f32 1.0, %v910_v60  ;;  %v575_v18 = vmul.f32 %v910_v60, %v1132_v38 }
 0x6e0   :  { %v560_v61 = vpop.permute.xlu1 %559 }
 0x6e1   :  { %v562_v62 = vmul.f32 %v910_v60, %v560_v61 }
 0x6e3   :  { %564 = vrot.lane.b32.xlu1 %v562_v62, %s924_s3 }
 0x6f2   :  { %v497_v63 = vpop.permute.xlu0 %496 }
 0x6f3   :  { %v499_v3 = vadd.f32 %v497_v63, %v431_v33 }
 0x6f5   :  { %911 = vtanh.f32 %v499_v3 }
 0x6ff   :  { %v912_v4 = vpop.eup %911 }
 0x700   :  { %503 = vrot.lane.b32.xlu0 %v912_v4, %s925_s21 }
 0x755   :  { %v565_v6 = vpop.permute.xlu1 %564 }
 0x756   :  { %v567_v8 = vadd.f32 %v737_v56, %v565_v6 }
 0x758   :  { %913 = vtanh.f32 %v567_v8 }
 0x762   :  { %v914_v9 = vpop.eup %913 }
 0x763   :  { %571 = vrot.lane.b32.xlu1 %v914_v9, %s925_s21 }
 0x772   :  { %v504_v11 = vpop.permute.xlu0 %503 }
 0x773   :  { %v506_v13 = vmul.f32 %v504_v11, %v501_v10 }
 0x775   :  { %v508_v14 = vadd.f32 %v507_v12, %v506_v13 }
 0x777   :  { %v624_v15 = vpack.c.bf16 %v508_v14, %v508_v14 }
 0x779   :  { %626 = vrot.lane.b32.xlu0 %v624_v15, %s925_s21 }
 0x7d5   :  { %v572_v17 = vpop.permute.xlu1 %571 }
 0x7d6   :  { %v574_v19 = vmul.f32 %v572_v17, %v569_v16 }
 0x7d8   :  { %v576_v20 = vadd.f32 %v575_v18, %v574_v19 }
 0x7da   :  { %v577_v21 = vpack.c.bf16 %v576_v20, %v576_v20 }
 0x7dc   :  { %579 = vrot.lane.b32.xlu1 %v577_v21, %s925_s21 }
 0x7eb   :  { %v627_v22 = vpop.permute.xlu0 %626 }
 0x7ec   :  { %867 = vmatmul.mubr.msk.bf16.vlgmr.msra.gmra.mrb[16].mxu0 %vm74_vm2, %v627_v22 }
 0x84e   :  { %v580_v24 = vpop.permute.xlu1 %579 }
 0x84f   :  { %857 = vmatmul.mubr.msk.bf16.vlgmr.msra.gmra.mrb[12].mxu1 %vm74_vm2, %v580_v24 }
 0x8bf   :  { %v665_v26 = vpop.f32.mrb[16].mxu0 }
 0x8c0   :  { %v666_v30 = vadd.f32 %v1087_v41, %v665_v26  ;;  %v868_v32 = vpop.f32.mrb[17].mxu0 }
 0x8c1   :  { %v668_v29 = vpop.f32.mrb[18].mxu0 }
 0x8c2   :  { %679 = vrot.lane.b32.xlu0 %v666_v30, %s923_s14  ;;  %v869_v34 = vpop.f32.mrb[19].mxu0 }
 0x922   :  { %v618_v35 = vpop.f32.mrb[12].mxu1 }
 0x923   :  { %v619_v36 = vadd.f32 %v1112_v48, %v618_v35  ;;  %v858_v37 = vpop.f32.mrb[13].mxu1 }
 0x924   :  { %v621_v38 = vpop.f32.mrb[14].mxu1 }
 0x925   :  { %v671_v40 = vadd.f32 %v666_v30, %v619_v36  ;;  %v859_v42 = vpop.f32.mrb[15].mxu1 }
 0x927   :  { %v742_v39 = vmul.f32 -1.442695, %v671_v40 }
 0x929   :  { %915 = vpow2.f32 %v742_v39 }
 0x933   :  { %v916_v1 = vpop.eup %915 }
 0x934   :  { %v675_v2 = vadd.f32 1.0, %v916_v1  ;;  %v680_v27 = vpop.permute.xlu0 %679 }
 0x936   :  { %917 = vrcp.f32 %v675_v2 }
 0x940   :  { %v918_v5 = vpop.eup %917 }
 0x941   :  { %v682_v41 = vmul.f32 %v918_v5, %v680_v27  ;;  %v689_v43 = vsub.f32 1.0, %v918_v5  ;;  %v695_v45 = vmul.f32 %v918_v5, %v508_v14 }
 0x943   :  { %684 = vrot.lane.b32.xlu1 %v682_v41, %s924_s3 }
 0x947   :  { %698 = vrot.lane.b32.xlu1 %v576_v20, %s925_s21 }
 0x9b5   :  { %v685_v28 = vpop.permute.xlu1 %684 }
 0x9b6   :  { %v687_v23 = vadd.f32 %v685_v28, %v619_v36 }
 0x9b8   :  { %919 = vtanh.f32 %v687_v23 }
 0x9b9   :  { %v699_v48 = vpop.permute.xlu1 %698 }
 0x9ba   :  { %702 = vst.msk [vmem:[%s1201_s8] sm:$0x3] %vm701_vm3, %v699_v48 }
 0x9c2   :  { %v920_v33 = vpop.eup %919 }
 0x9c3   :  { %691 = vrot.lane.b32.xlu0 %v920_v33, %s925_s21 }
 0xa35   :  { %v692_v44 = vpop.permute.xlu0 %691 }
 0xa36   :  { %v694_v46 = vmul.f32 %v692_v44, %v689_v43 }
 0xa38   :  { %v696_v25 = vadd.f32 %v695_v45, %v694_v46 }
 0xa3a   :  { %704 = vrot.lane.b32.xlu0 %v696_v25, %s925_s21 }
 0xaac   :  { %v705_v0 = vpop.permute.xlu0 %704 }
 0xaad   :  { %743 = vst.msk [vmem:[%s1201_s8 + $0x2] sm:$0x3] %vm701_vm3, %v705_v0 }

// kernel: cdck5_forward.19
= control target key start
LH: loop header
LB: loop body
LE: loop exit
PB: predicated region body
PF: predicated region fallthrough
CT: control target
= control target key end

     0   :  { %11 = vsyncpa [#allocation3], 0  ;;  %v956_v8 = vmov 0   ;;  %vm189_vm0 = vcmask 1043456   ;;  %s1155_s0 = inlined_call_operand.vmem [shape: bf16[4,2,256], index: 0, kind: input, shape index: {}]   ;;  %s1156_s1 = inlined_call_operand.vmem [shape: bf16[2,40], index: 1, kind: input, shape index: {}]   ;;  %s1157_s2 = inlined_call_operand.vmem [shape: bf16[40,1024], index: 2, kind: input, shape index: {}]   ;;  %s1158_s3 = inlined_call_operand.vmem [shape: f32[1,1024], index: 3, kind: input, shape index: {}]   ;;  %s1159_s4 = inlined_call_operand.hbm [shape: f32[1,1], index: 4, kind: output, shape index: {0}]   ;;  %s1160_s5 = inlined_call_operand.hbm [shape: s32[1,1], index: 5, kind: output, shape index: {1}]  }
   0x1   :  { %v23_v0 = vld [vmem:[%s1157_s2] sm:$0xff]  ;;  %v24_v2 = vld [vmem:[%s1157_s2 + $0x8] sm:$0xff]  ;;  %287 = vmatprep.mubr.bf16.mxu1 %v956_v8  ;;  %246 = vmatprep.mubr.bf16.mxu0 %v956_v8  ;;  %v25_v23 = vld [vmem:[%s1157_s2 + $0x10] sm:$0xff] }
   0x2   :  { %v27_v1 = vld [vmem:[%s1157_s2 + $0x20] sm:$0xff]  ;;  %v28_v4 = vld [vmem:[%s1157_s2 + $0x28] sm:$0xff]  ;;  %v29_v24 = vld [vmem:[%s1157_s2 + $0x30] sm:$0xff] }
   0x3   :  { %v830_v3 = vcombine.high %v23_v0, %v27_v1  ;;  %v829_v5 = vcombine.low %v23_v0, %v27_v1  ;;  %v31_v6 = vld [vmem:[%s1157_s2 + $0x40] sm:$0xff]  ;;  %v832_v9 = vcombine.high %v24_v2, %v28_v4  ;;  %v831_v10 = vcombine.low %v24_v2, %v28_v4  ;;  %v32_v12 = vld [vmem:[%s1157_s2 + $0x48] sm:$0xff]  ;;  %v26_v25 = vld [vmem:[%s1157_s2 + $0x18] sm:$0xff] }
   0x4   :  { %v35_v7 = vld [vmem:[%s1157_s2 + $0x60] sm:$0xff]  ;;  %v36_v13 = vld [vmem:[%s1157_s2 + $0x68] sm:$0xff]  ;;  %v30_v26 = vld [vmem:[%s1157_s2 + $0x38] sm:$0xff] }
   0x5   :  { %v838_v11 = vcombine.high %v31_v6, %v35_v7  ;;  %v39_v14 = vld [vmem:[%s1157_s2 + $0x80] sm:$0xff]  ;;  %214 = vmatprep.subr.bf16.mxu0 %v830_v3  ;;  %v840_v15 = vcombine.high %v32_v12, %v36_v13  ;;  %v40_v16 = vld [vmem:[%s1157_s2 + $0x88] sm:$0xff]  ;;  %255 = vmatprep.subr.bf16.mxu1 %v832_v9  ;;  %v837_v17 = vcombine.low %v31_v6, %v35_v7 }
   0x6   :  { %215 = vmatpush1.bf16.msra.mxu0 %v829_v5  ;;  %256 = vmatpush1.bf16.msra.mxu1 %v831_v10  ;;  %v839_v18 = vcombine.low %v32_v12, %v36_v13  ;;  %v846_v19 = vcombine.high %v39_v14, %v39_v14  ;;  %v845_v20 = vcombine.low %v39_v14, %v39_v14 }
   0x7   :  { %216 = vmatprep.subr.bf16.mxu0 %v838_v11  ;;  %257 = vmatprep.subr.bf16.mxu1 %v840_v15  ;;  %v848_v21 = vcombine.high %v40_v16, %v40_v16  ;;  %v847_v22 = vcombine.low %v40_v16, %v40_v16 }
   0x8   :  { %12 = vsyncpa [#allocation5], 0  ;;  %v191_v27 = vsel %vm189_vm0, %v845_v20, 0  ;;  %v834_v28 = vcombine.high %v25_v23, %v29_v24  ;;  %v836_v30 = vcombine.high %v26_v25, %v30_v26  ;;  %v33_v31 = vld [vmem:[%s1157_s2 + $0x50] sm:$0xff]  ;;  %v34_v33 = vld [vmem:[%s1157_s2 + $0x58] sm:$0xff]  ;;  %vm185_vm1 = vcmask 326656  }
   0x9   :  { %v197_v29 = vsel %vm189_vm0, %v847_v22, 0  ;;  %v37_v32 = vld [vmem:[%s1157_s2 + $0x70] sm:$0xff]  ;;  %v38_v34 = vld [vmem:[%s1157_s2 + $0x78] sm:$0xff]  ;;  %v22_v35 = vld [vmem:[%s1156_s1] sm:$0x1]  ;;  %v833_v36 = vcombine.low %v25_v23, %v29_v24  ;;  %v835_v37 = vcombine.low %v26_v25, %v30_v26  ;;  %v45_v50 = vlaneseq  ;;  %s958_s20 = smov [#allocation2]  }
   0xa   :  { %217 = vmatpush1.bf16.msra.mxu0 %v837_v17  ;;  %258 = vmatpush1.bf16.msra.mxu1 %v839_v18  ;;  %v842_v38 = vcombine.high %v33_v31, %v37_v32  ;;  %v844_v39 = vcombine.high %v34_v33, %v38_v34  ;;  %v41_v40 = vld [vmem:[%s1157_s2 + $0x90] sm:$0xff]  ;;  %v42_v41 = vld [vmem:[%s1157_s2 + $0x98] sm:$0xff]  ;;  %v841_v42 = vcombine.low %v33_v31, %v37_v32  ;;  %v957_v51 = vmov 1966171168   ;;  %v43_v3 = vld [vmem:[%s1158_s3] sm:$0xff]  ;;  %s807_s21 = sshll.u32 %s958_s20, 4  ;;  %s808_s21 = int_to_ptr.vmem [resolvable:$true] %s807_s21 }
   0xb   :  { %853 = vmatprep.subr.msk.bf16.mxu0 %vm189_vm0, %v846_v19  ;;  %855 = vmatprep.subr.msk.bf16.mxu1 %vm189_vm0, %v848_v21  ;;  %v843_v43 = vcombine.low %v34_v33, %v38_v34  ;;  %v850_v44 = vcombine.high %v41_v40, %v41_v40  ;;  %v849_v45 = vcombine.low %v41_v40, %v41_v40  ;;  %v395_v52 = vunpack.c.l.s4 %v957_v51  ;;  %v1075_v55 = vld.sshfl [vmem:[%s1155_s0 + $0x2] sm:$0x11 pattern:$0x75316420]  ;;  %s908_s22 = scalar_lea.vmem %s808_s21, 16  ;;  %s912_s23 = scalar_lea.vmem %s808_s21, 32 }
   0xc   :  { %v852_v46 = vcombine.high %v42_v41, %v42_v41  ;;  %v851_v47 = vcombine.low %v42_v41, %v42_v41  ;;  %v1070_v53 = vshrl.u32 %v45_v50, 7  ;;  %v489_v57 = vcombine.high %v1075_v55, %v1075_v55  ;;  %v861_v60 = vld.sshfl [vmem:[%s1155_s0] sm:$0x11 pattern:$0x75316420]  ;;  %p909_p0 = scmp.ne.s32.totalorder %s808_s21, %s908_s22  ;;  %p913_p1 = scmp.lt.s32.totalorder %s808_s21, %s808_s21 }
   0xd   :  { %v203_v48 = vsel %vm189_vm0, %v849_v45, 0  ;;  %v396_v54 = vunpack.c.0.s8 %v395_v52  ;;  %v393_v61 = vcombine.high %v861_v60, %v861_v60  ;;  %v865_v25 = vld.sshfl [vmem:[%s1155_s0 + $0x4] sm:$0x11 pattern:$0x75316420]  ;;  %vm450_vm2 = vcmask 9216   ;;  %p914_p2 = scmp.lt.s32.totalorder %s912_s23, %s908_s22 }
   0xe   :  { %219 = vmatpush1.bf16.msra.mxu0 %v191_v27  ;;  %260 = vmatpush1.bf16.msra.mxu1 %v197_v29  ;;  %v209_v49 = vsel %vm189_vm0, %v851_v47, 0  ;;  %v47_v0 = vsub.s32 0, %v1070_v53  ;;  %v55_v1 = vsub.s32 2, %v1070_v53  ;;  %v51_v2 = vsub.s32 1, %v1070_v53 }
   0xf   :  { %296 = vmatprep.subr.bf16.mxu0 %v834_v28  ;;  %337 = vmatprep.subr.bf16.mxu1 %v836_v30  ;;  %v1078_v56 = vsub.s32 %v396_v54, %v1070_v53  ;;  %v59_v4 = vsub.s32 3, %v1070_v53  ;;  %v63_v27 = vsub.s32 4, %v1070_v53  ;;  %v867_v28 = vld.sshfl [vmem:[%s1155_s0 + $0x6] sm:$0x11 pattern:$0x75316420]  ;;  %v583_v32 = vcombine.high %v865_v25, %v865_v25  ;;  %p915_p3 = por %p914_p2, %p913_p1 }
  0x10   :  { %v48_v5 = vrot.slane %v43_v3, %v47_v0  ;;  %v56_v6 = vrot.slane %v43_v3, %v55_v1  ;;  %v52_v7 = vrot.slane %v43_v3, %v51_v2  ;;  %v71_v29 = vsub.s32 6, %v1070_v53 }
  0x11   :  { %854 = vmatmul.mubr.msk.bf16.vlgmr.msra.gmra.mrb[0].mxu0 %vm185_vm1, %v22_v35  ;;  %856 = vmatmul.mubr.msk.bf16.vlgmr.msra.gmra.mrb[0].mxu1 %vm185_vm1, %v22_v35  ;;  %v503_v58 = vrot.slane %v489_v57, %v1078_v56  ;;  %v496_v59 = vrot.slane %v1075_v55, %v1078_v56  ;;  %v407_v62 = vrot.slane %v393_v61, %v1078_v56  ;;  %v67_v30 = vsub.s32 5, %v1070_v53  ;;  %p916_p4 = pnand %p915_p3, %p909_p0 }
  0x12   :  { %297 = vmatpush1.bf16.msra.mxu0 %v833_v36  ;;  %338 = vmatpush1.bf16.msra.mxu1 %v835_v37  ;;  %v400_v63 = vrot.slane %v861_v60, %v1078_v56  ;;  %v60_v9 = vrot.slane %v43_v3, %v59_v4  ;;  %v75_v31 = vsub.s32 7, %v1070_v53  ;;  %v677_v33 = vcombine.high %v867_v28, %v867_v28 }
  0x13   :  { %298 = vmatprep.subr.bf16.mxu0 %v842_v38  ;;  %339 = vmatprep.subr.bf16.mxu1 %v844_v39  ;;  %v64_v34 = vrot.slane %v43_v3, %v63_v27  ;;  %v68_v36 = vrot.slane %v43_v3, %v67_v30  ;;  %v597_v38 = vrot.slane %v583_v32, %v1078_v56  ;;  %vm782_vm8 = vcmask 15360  }
  0x14   :  { %328 = vmatprep.mubr.bf16.mxu0 %v956_v8  ;;  %369 = vmatprep.mubr.bf16.mxu1 %v956_v8  ;;  %v76_v37 = vrot.slane %v43_v3, %v75_v31  ;;  %v691_v40 = vrot.slane %v677_v33, %v1078_v56  ;;  %v590_v60 = vrot.slane %v865_v25, %v1078_v56  ;;  %vm798_vm10 = vcmask 0  }
  0x15   :  { %v684_v61 = vrot.slane %v867_v28, %v1078_v56 }
  0x16   :  { %299 = vmatpush1.bf16.msra.mxu0 %v841_v42  ;;  %340 = vmatpush1.bf16.msra.mxu1 %v843_v43 }
  0x17   :  { %857 = vmatprep.subr.msk.bf16.mxu0 %vm189_vm0, %v850_v44  ;;  %859 = vmatprep.subr.msk.bf16.mxu1 %vm189_vm0, %v852_v46 }
  0x1a   :  { %301 = vmatpush1.bf16.msra.mxu0 %v203_v48  ;;  %342 = vmatpush1.bf16.msra.mxu1 %v209_v49 }
  0x1d   :  { %858 = vmatmul.mubr.msk.bf16.vlgmr.msra.gmra.mrb[4].mxu0 %vm185_vm1, %v22_v35  ;;  %860 = vmatmul.mubr.msk.bf16.vlgmr.msra.gmra.mrb[4].mxu1 %vm185_vm1, %v22_v35  ;;  %v72_v35 = vrot.slane %v43_v3, %v71_v29 }
  0x1e   :  { %538 = vmatprep.mubr.bf16.mxu1 %v503_v58  ;;  %442 = vmatprep.mubr.bf16.mxu0 %v407_v62 }
  0xe4   :  { %v248_v10 = vpop.f32.mrb[0].mxu0  ;;  %v289_v11 = vpop.f32.mrb[0].mxu1 }
  0xe5   :  { %v249_v12 = vadd.f32 %v248_v10, %v48_v5  ;;  %v250_v13 = vpop.f32.mrb[1].mxu0  ;;  %v290_v14 = vadd.f32 %v289_v11, %v56_v6  ;;  %v291_v15 = vpop.f32.mrb[1].mxu1 }
  0xe6   :  { %v251_v16 = vadd.f32 %v250_v13, %v52_v7  ;;  %v252_v17 = vpop.f32.mrb[2].mxu0  ;;  %v292_v18 = vadd.f32 %v291_v15, %v60_v9  ;;  %v293_v19 = vpop.f32.mrb[2].mxu1 }
  0xe7   :  { %v382_v20 = vpack.c.bf16 %v249_v12, %v249_v12  ;;  %v253_v21 = vpop.f32.mrb[3].mxu0  ;;  %v477_v22 = vpack.c.bf16 %v290_v14, %v290_v14  ;;  %v294_v23 = vpop.f32.mrb[3].mxu1 }
  0xe8   :  { %v383_v24 = vpack.c.bf16 %v251_v16, %v251_v16  ;;  %v478_v26 = vpack.c.bf16 %v292_v18, %v292_v18 }
  0xea   :  { %410 = vmatprep.subr.bf16.mxu0 %v383_v24  ;;  %506 = vmatprep.subr.bf16.mxu1 %v478_v26 }
  0xeb   :  { %411 = vmatpush1.bf16.xpose.msra.mxu0 %v382_v20  ;;  %507 = vmatpush1.bf16.xpose.msra.mxu1 %v477_v22 }
  0xf0   :  { %v330_v39 = vpop.f32.mrb[4].mxu0  ;;  %v371_v42 = vpop.f32.mrb[4].mxu1 }
  0xf1   :  { %v331_v41 = vadd.f32 %v330_v39, %v64_v34  ;;  %v332_v43 = vpop.f32.mrb[5].mxu0  ;;  %v372_v44 = vadd.f32 %v371_v42, %v72_v35  ;;  %v373_v46 = vpop.f32.mrb[5].mxu1 }
  0xf2   :  { %v333_v45 = vadd.f32 %v332_v43, %v68_v36  ;;  %443 = vmatmul.mubr.bf16.vlgmr.msra.gmra.mrb[8].mxu0 %v400_v63  ;;  %v334_v47 = vpop.f32.mrb[6].mxu0  ;;  %v374_v49 = vadd.f32 %v373_v46, %v76_v37  ;;  %v375_v51 = vpop.f32.mrb[6].mxu1  ;;  %539 = vmatmul.mubr.bf16.vlgmr.msra.gmra.mrb[8].mxu1 %v496_v59 }
  0xf3   :  { %v571_v48 = vpack.c.bf16 %v331_v41, %v331_v41  ;;  %632 = vmatprep.mubr.bf16.mxu0 %v597_v38  ;;  %v335_v52 = vpop.f32.mrb[7].mxu0  ;;  %v376_v55 = vpop.f32.mrb[7].mxu1  ;;  %726 = vmatprep.mubr.bf16.mxu1 %v691_v40  ;;  %v665_v58 = vpack.c.bf16 %v372_v44, %v372_v44 }
  0xf4   :  { %v572_v54 = vpack.c.bf16 %v333_v45, %v333_v45  ;;  %v666_v57 = vpack.c.bf16 %v374_v49, %v374_v49  ;;  %v381_v45 = vand.u32 127, %v45_v50 }
  0xf6   :  { %600 = vmatprep.subr.bf16.mxu0 %v572_v54  ;;  %694 = vmatprep.subr.bf16.mxu1 %v666_v57  ;;  %vm463_vm3 = vcmp.eq.s32.totalorder %v1070_v53, %v381_v45 }
  0xf7   :  { %601 = vmatpush1.bf16.xpose.msra.mxu0 %v571_v48  ;;  %695 = vmatpush1.bf16.xpose.msra.mxu1 %v665_v58 }
  0xfe   :  { %633 = vmatmul.mubr.bf16.vlgmr.msra.gmra.mrb[12].mxu0 %v590_v60  ;;  %727 = vmatmul.mubr.bf16.vlgmr.msra.gmra.mrb[12].mxu1 %v684_v61 }
 0x1c5   :  { %v444_v62 = vpop.f32.mrb[8].mxu0  ;;  %v540_v59 = vpop.f32.mrb[8].mxu1 }
 0x1c6   :  { %v446_v63 = vpop.f32.mrb[9].mxu0  ;;  %v546_v0 = vsel %vm450_vm2, %v540_v59, -inf  ;;  %v542_v1 = vpop.f32.mrb[9].mxu1  ;;  %v451_v16 = vsel %vm450_vm2, %v444_v62, -inf }
 0x1c7   :  { %v447_v2 = vpop.f32.mrb[10].mxu0  ;;  %547 = vmax.xlane.f32.xlu1 %v546_v0  ;;  %v543_v3 = vpop.f32.mrb[10].mxu1 }
 0x1c8   :  { %v448_v4 = vpop.f32.mrb[11].mxu0  ;;  %v544_v5 = vpop.f32.mrb[11].mxu1 }
 0x1d1   :  { %v634_v6 = vpop.f32.mrb[12].mxu0  ;;  %v728_v7 = vpop.f32.mrb[12].mxu1 }
 0x1d2   :  { %v640_v9 = vsel %vm450_vm2, %v634_v6, -inf  ;;  %v636_v10 = vpop.f32.mrb[13].mxu0  ;;  %v730_v56 = vpop.f32.mrb[13].mxu1  ;;  %v734_v11 = vsel %vm450_vm2, %v728_v7, -inf }
 0x1d3   :  { %641 = vmax.xlane.f32.xlu1 %v640_v9  ;;  %v637_v12 = vpop.f32.mrb[14].mxu0  ;;  %735 = vmax.xlane.f32.xlu0 %v734_v11  ;;  %v731_v13 = vpop.f32.mrb[14].mxu1 }
 0x1d4   :  { %v638_v14 = vpop.f32.mrb[15].mxu0  ;;  %v732_v15 = vpop.f32.mrb[15].mxu1 }
 0x1d7   :  { %452 = vmax.xlane.f32.xlu0 %v451_v16 }
 0x254   :  { %v548_v17 = vpop.xlane.xlu1 %547 }
 0x255   :  { %v549_v18 = vsub.f32 %v540_v59, %v548_v17 }
 0x257   :  { %v550_v22 = vmul.f32 1.442695, %v549_v18 }
 0x260   :  { %v736_v19 = vpop.xlane.xlu0 %735  ;;  %v642_v20 = vpop.xlane.xlu1 %641 }
 0x261   :  { %v737_v21 = vsub.f32 %v728_v7, %v736_v19  ;;  %v643_v24 = vsub.f32 %v634_v6, %v642_v20 }
 0x263   :  { %v738_v23 = vmul.f32 1.442695, %v737_v21  ;;  %v644_v27 = vmul.f32 1.442695, %v643_v24 }
 0x264   :  { %v453_v25 = vpop.xlane.xlu0 %452 }
 0x265   :  { %890 = vpow2.f32 %v738_v23  ;;  %v454_v26 = vsub.f32 %v444_v62, %v453_v25 }
 0x266   :  { %892 = vpow2.f32 %v550_v22 }
 0x267   :  { %v455_v28 = vmul.f32 1.442695, %v454_v26 }
 0x269   :  { %894 = vpow2.f32 %v455_v28 }
 0x26a   :  { %896 = vpow2.f32 %v644_v27 }
 0x26f   :  { %v891_v29 = vpop.eup %890 }
 0x270   :  { %v740_v30 = vsel %vm450_vm2, %v891_v29, 0.0  ;;  %v893_v31 = vpop.eup %892 }
 0x271   :  { %741 = vadd.xlane.f32.xlu0 %v740_v30  ;;  %v552_v33 = vsel %vm450_vm2, %v893_v31, 0.0 }
 0x273   :  { %v895_v32 = vpop.eup %894 }
 0x274   :  { %v457_v34 = vsel %vm450_vm2, %v895_v32, 0.0  ;;  %v897_v35 = vpop.eup %896 }
 0x275   :  { %553 = vadd.xlane.f32.xlu0 %v552_v33  ;;  %458 = vadd.xlane.f32.xlu1 %v457_v34  ;;  %v646_v36 = vsel %vm450_vm2, %v897_v35, 0.0 }
 0x279   :  { %647 = vadd.xlane.f32.xlu1 %v646_v36 }
 0x2fe   :  { %v742_v37 = vpop.xlane.xlu0 %741 }
 0x2ff   :  { %898 = vlog2.f32 %v742_v37 }
 0x302   :  { %v554_v38 = vpop.xlane.xlu0 %553  ;;  %v459_v39 = vpop.xlane.xlu1 %458 }
 0x303   :  { %900 = vlog2.f32 %v554_v38 }
 0x304   :  { %902 = vlog2.f32 %v459_v39 }
 0x306   :  { %v648_v40 = vpop.xlane.xlu1 %647 }
 0x307   :  { %904 = vlog2.f32 %v648_v40 }
 0x309   :  { %v899_v41 = vpop.eup %898 }
 0x30a   :  { %v744_v42 = vmul.f32 0.6931472, %v899_v41 }
 0x30c   :  { %v745_v43 = vsub.f32 %v737_v21, %v744_v42 }
 0x30d   :  { %v901_v44 = vpop.eup %900 }
 0x30e   :  { %v903_v46 = vpop.eup %902  ;;  %v556_v47 = vmul.f32 0.6931472, %v901_v44  ;;  %v759_v48 = vmul.f32 1.442695, %v745_v43  ;;  %v746_v62 = vsel %vm463_vm3, %v745_v43, 0.0 }
 0x30f   :  { %v461_v49 = vmul.f32 0.6931472, %v903_v46  ;;  %v747_v63 = vsel %vm450_vm2, %v746_v62, 0.0 }
 0x310   :  { %v557_v51 = vsub.f32 %v549_v18, %v556_v47  ;;  %906 = vpow2.f32 %v759_v48 }
 0x311   :  { %v905_v52 = vpop.eup %904  ;;  %v462_v54 = vsub.f32 %v454_v26, %v461_v49 }
 0x312   :  { %v650_v55 = vmul.f32 0.6931472, %v905_v52  ;;  %v558_v57 = vsel %vm463_vm3, %v557_v51, 0.0 }
 0x313   :  { %v559_v58 = vsel %vm450_vm2, %v558_v57, 0.0  ;;  %v464_v60 = vsel %vm463_vm3, %v462_v54, 0.0 }
 0x314   :  { %560 = vadd.xlane.f32.xlu1 %v559_v58  ;;  %v465_v61 = vsel %vm450_vm2, %v464_v60, 0.0  ;;  %v651_v50 = vsub.f32 %v643_v24, %v650_v55 }
 0x315   :  { %466 = vadd.xlane.f32.xlu0 %v465_v61 }
 0x316   :  { %v652_v59 = vsel %vm463_vm3, %v651_v50, 0.0 }
 0x317   :  { %v653_v0 = vsel %vm450_vm2, %v652_v59, 0.0 }
 0x318   :  { %748 = vadd.xlane.f32.xlu1 %v747_v63 }
 0x319   :  { %654 = vadd.xlane.f32.xlu0 %v653_v0 }
 0x31a   :  { %v907_v1 = vpop.eup %906 }
 0x31b   :  { %v761_v2 = vsel %vm450_vm2, %v907_v1, -inf }
 0x31c   :  { %v762_v3 = vrot.slane %v761_v2, 4 }
 0x31e   :  { %v763_v4 = vmax.f32 %v761_v2, %v762_v3 }
 0x320   :  { %v764_v5 = vrot.slane %v763_v4, 2 }
 0x322   :  { %v765_v6 = vmax.f32 %v763_v4, %v764_v5 }
 0x324   :  { %v766_v7 = vrot.slane %v765_v6, 1 }
 0x326   :  { %v767_v9 = vmax.f32 %v765_v6, %v766_v7 }
 0x328   :  { %vm768_vm4 = vcmp.ge.f32.partialorder %v907_v1, %v767_v9 }
 0x329   :  { %v769_v10 = vsel %vm768_vm4, %v1070_v53, 2 }
 0x32a   :  { %v770_v56 = vsel %vm450_vm2, %v769_v10, 2147483647 }
 0x32b   :  { %v771_v11 = vrot.slane %v770_v56, 4 }
 0x32d   :  { %vm772_vm5 = vcmp.lt.s32.totalorder %v770_v56, %v771_v11 }
 0x32e   :  { %v773_v12 = vsel %vm772_vm5, %v770_v56, %v771_v11 }
 0x32f   :  { %v774_v13 = vrot.slane %v773_v12, 2 }
 0x331   :  { %vm775_vm6 = vcmp.lt.s32.totalorder %v773_v12, %v774_v13 }
 0x332   :  { %v776_v14 = vsel %vm775_vm6, %v773_v12, %v774_v13 }
 0x333   :  { %v777_v15 = vrot.slane %v776_v14, 1 }
 0x335   :  { %vm778_vm7 = vcmp.lt.s32.totalorder %v776_v14, %v777_v15 }
 0x336   :  { %v779_v16 = vsel %vm778_vm7, %v776_v14, %v777_v15 }
 0x337   :  { %vm780_vm9 = vcmp.eq.s32.totalorder %v779_v16, %v381_v45 }
 0x338   :  { %v781_v17 = vsel %vm780_vm9, 1, %v956_v8 }
 0x339   :  { %v783_v18 = vsel %vm782_vm8, %v781_v17, 0 }
 0x33a   :  { %v784_v19 = vand.u32 65535, %v783_v18  ;;  %v785_v20 = vshrl.u32 %v783_v18, 16 }
 0x33c   :  { %v786_v21 = vcvt.s32.f32 %v784_v19  ;;  %v787_v53 = vcvt.s32.f32 %v785_v20 }
 0x33e   :  { %788 = vadd.xlane.f32.xlu1 %v786_v21  ;;  %790 = vadd.xlane.f32.xlu0 %v787_v53 }
 0x3a1   :  { %v561_v22 = vpop.xlane.xlu1 %560 }
 0x3a2   :  { %v467_v23 = vpop.xlane.xlu0 %466  ;;  %v562_v24 = vrot.slane %v561_v22, 4 }
 0x3a3   :  { %v468_v25 = vrot.slane %v467_v23, 4 }
 0x3a4   :  { %v563_v26 = vadd.f32 %v562_v24, %v561_v22 }
 0x3a5   :  { %v469_v27 = vadd.f32 %v468_v25, %v467_v23  ;;  %v749_v28 = vpop.xlane.xlu1 %748 }
 0x3a6   :  { %v564_v29 = vrot.slane %v563_v26, 2  ;;  %v655_v30 = vpop.xlane.xlu0 %654  ;;  %v750_v31 = vrot.slane %v749_v28, 4 }
 0x3a7   :  { %v470_v32 = vrot.slane %v469_v27, 2  ;;  %v656_v33 = vrot.slane %v655_v30, 4 }
 0x3a8   :  { %v751_v8 = vadd.f32 %v750_v31, %v749_v28  ;;  %v565_v34 = vadd.f32 %v564_v29, %v563_v26 }
 0x3a9   :  { %v657_v35 = vadd.f32 %v656_v33, %v655_v30  ;;  %v471_v36 = vadd.f32 %v470_v32, %v469_v27 }
 0x3aa   :  { %v752_v37 = vrot.slane %v751_v8, 2  ;;  %v566_v38 = vrot.slane %v565_v34, 1 }
 0x3ab   :  { %v658_v39 = vrot.slane %v657_v35, 2  ;;  %v472_v40 = vrot.slane %v471_v36, 1 }
 0x3ac   :  { %v567_v41 = vadd.f32 %v566_v38, %v565_v34  ;;  %v753_v42 = vadd.f32 %v752_v37, %v751_v8 }
 0x3ad   :  { %v473_v43 = vadd.f32 %v472_v40, %v471_v36  ;;  %v659_v44 = vadd.f32 %v658_v39, %v657_v35 }
 0x3ae   :  { %v754_v45 = vrot.slane %v753_v42, 1 }
 0x3af   :  { %868 = vpush %v473_v43  ;;  %v660_v46 = vrot.slane %v659_v44, 1 }
 0x3b0   :  { %870 = vpush %v567_v41  ;;  %v755_v47 = vadd.f32 %v754_v45, %v753_v42 }
 0x3b1   :  { %v661_v48 = vadd.f32 %v660_v46, %v659_v44 }
 0x3b3   :  { %872 = vpush %v661_v48 }
 0x3b4   :  { %874 = vpush %v755_v47 }
 0x3cb   :  { %v791_v49 = vpop.xlane.xlu0 %790  ;;  %v789_v51 = vpop.xlane.xlu1 %788 }
 0x3cc   :  { %v793_v52 = vcvt.f32.s32 %v791_v49  ;;  %v792_v55 = vcvt.f32.s32 %v789_v51 }
 0x3ce   :  { %v794_v54 = vshll.u32 %v793_v52, 16 }
 0x3d0   :  { %v795_v57 = vadd.s32 %v794_v54, %v792_v55 }
 0x3d2   :  { %876 = vpush %v795_v57 }
 0x3e0   :  { %s869_s0 = spop %868 }
 0x3e1   :  { %v475_v58 = vstv %s869_s0  ;;  %s871_s17 = spop %870 }
 0x3e2   :  { %v569_v60 = vstv %s871_s17 }
 0x3e3   :  { %v570_v61 = vadd.f32 %v569_v60, %v475_v58 }
 0x3e4   :  { %s873_s18 = spop %872 }
 0x3e5   :  { %v663_v62 = vstv %s873_s18  ;;  %s875_s19 = spop %874 }
 0x3e6   :  { %v664_v50 = vadd.f32 %v663_v62, %v570_v61  ;;  %v757_v59 = vstv %s875_s19 }
 0x3e8   :  { %v758_v63 = vadd.f32 %v757_v59, %v664_v50 }
 0x3ea   :  { %800 = vst.msk [vmem:[#allocation2] sm:$0x1] %vm798_vm10, %v758_v63 }
 0x3eb   :  { %919 = shalt.err (!%p916_p4)
}
 0x3ec   :  { %s920_s26 = scalar_lea.hbm %s1159_s4, 16 }
 0x3ed   :  { %p921_p5 = scmp.ne.s32.totalorder %s1159_s4, %s920_s26  ;;  %p924_p6 = scmp.lt.u32.totalorder %s920_s26, %s1159_s4 }
 0x3ef   :  { %p926_p7 = pnand %p924_p6, %p921_p5 }
 0x3f1   :  { %929 = shalt.err (!%p926_p7)
}
 0x3f2   :  { %810 = dma.vmem_to_hbm [thread:$0]  %s808_s21, 16, %s1159_s4, [#allocation3]  }
 0x3f3   :  { %s959_s8 = smov [#allocation4]  }
 0x3f4   :  { %s817_s9 = sshll.u32 %s959_s8, 4  ;;  %s818_s9 = int_to_ptr.vmem [resolvable:$true] %s817_s9 }
 0x3f5   :  { %s930_s2 = scalar_lea.vmem %s818_s9, 16  ;;  %s934_s10 = scalar_lea.vmem %s818_s9, 32 }
 0x3f6   :  { %p931_p8 = scmp.ne.s32.totalorder %s818_s9, %s930_s2  ;;  %p935_p9 = scmp.lt.s32.totalorder %s818_s9, %s818_s9 }
 0x3f7   :  { %p936_p10 = scmp.lt.s32.totalorder %s934_s10, %s930_s2 }
 0x3f9   :  { %p937_p11 = por %p936_p10, %p935_p9 }
 0x3fb   :  { %p938_p12 = pnand %p937_p11, %p931_p8 }
 0x403   :  { %s877_s1 = spop %876 }
 0x404   :  { %v797_v0 = vstv %s877_s1 }
 0x405   :  { %799 = vst.msk [vmem:[#allocation4] sm:$0x1] %vm798_vm10, %v797_v0 }
 0x406   :  { %941 = shalt.err (!%p938_p12)
}
 0x407   :  { %s942_s13 = scalar_lea.hbm %s1160_s5, 16 }
 0x408   :  { %p943_p13 = scmp.ne.s32.totalorder %s1160_s5, %s942_s13  ;;  %p946_p0 = scmp.lt.u32.totalorder %s942_s13, %s1160_s5 }
 0x40a   :  { %p948_p1 = pnand %p946_p0, %p943_p13 }
 0x40c   :  { %951 = shalt.err (!%p948_p1)
}
 0x40d   :  { %820 = dma.vmem_to_hbm [thread:$0]  %s818_s9, 16, %s1160_s5, [#allocation5]  }
 0x40e   :  { %952 = dma.done.wait [#allocation3], 16  }
 0x40f   :  { %953 = vsyncadd [#allocation3], 4294967280 }
 0x410   :  { %954 = dma.done.wait [#allocation5], 16  }
 0x411   :  { %955 = vsyncadd [#allocation5], 4294967280 }
 0x412   :  { %827 = vsyncpa [#allocation3], 1 }
 0x413   :  { %828 = vsyncpa [#allocation5], 1 }

</bundles_post_ra>
